<compile_context>
chip_gen: v6e
topology: v6e:2x2x1
jax: 0.10.0
libtpu: 0.0.40
codegen_flags: <defaults>
</compile_context>

<pallas_src>
import functools

import numpy as np
import jax
import jax.numpy as jnp
from jax import lax
from jax.experimental import pallas as pl
from jax.experimental.pallas import tpu as pltpu

EPS_MASK = 1e-8   # PartialConv2d mask-ratio epsilon
GN_EPS = 1e-5     # nn.GroupNorm default eps
LN_EPS = 1e-5     # F.layer_norm default eps
NEG_SLOPE = 0.01  # nn.LeakyReLU default negative_slope


def _round_up(v, m):
    return (v + m - 1) // m * m


# ----------------------------- Pallas kernels ------------------------------

def _pconv_kernel(a_ref, w_ref, b_ref, r_ref, u_ref, o_ref, *, taps, th, wo, cin):
    """Fused im2col + matmul + PartialConv2d epilogue for one output tile.

    a: (1, rows_blk, cols_blk, C_A) halo'd NHWC input stripe, resident across
       the Cout grid axis (C_A = Cin for stride 1; 4*Cin for the
       space-to-depth-folded stride-2 layout).
    w: (3, 3, Cin, TN) weight tile.  b: (1, TN) bias.
    r/u: (1, TH, WO) mask-ratio (already times update-mask) / update-mask.
    o: (1, TH, WO, TN) output tile.
    The 9 conv taps are unrolled; each is a unit-stride static slice of the
    stripe feeding an MXU dot with f32 accumulation.
    """
    tn = w_ref.shape[-1]
    acc = jnp.zeros((th * wo, tn), jnp.float32)
    for t, (ro, co, cb) in enumerate(taps):
        dy, dx = t // 3, t % 3
        patch = a_ref[0, ro:ro + th, co:co + wo, cb:cb + cin]
        acc = acc + jnp.dot(patch.reshape(th * wo, cin), w_ref[dy, dx],
                            preferred_element_type=jnp.float32)
    res = acc.reshape(th, wo, tn)
    ratio = r_ref[0][:, :, None]
    um = u_ref[0][:, :, None]
    res = (res * ratio + b_ref[0]) * um
    o_ref[...] = res[None].astype(o_ref.dtype)


def _gn_stats_kernel(x_ref, s1_ref, s2_ref):
    # x: (1, THW, C) tile (bf16 or f32); accumulate per-channel sum / sum-sq
    # in f32 into the resident (1, 1, C) output blocks across the HW grid axis.
    t = pl.program_id(1)

    @pl.when(t == 0)
    def _():
        s1_ref[...] = jnp.zeros_like(s1_ref)
        s2_ref[...] = jnp.zeros_like(s2_ref)

    x = x_ref[...].astype(jnp.float32)
    s1_ref[...] += jnp.sum(x, axis=1, keepdims=True)
    s2_ref[...] += jnp.sum(x * x, axis=1, keepdims=True)


def _gn_scale_lrelu_kernel(x_ref, a_ref, b_ref, o_ref):
    # y = x * a + b  (a/b fold GroupNorm mean / inv-std / gamma / beta), LeakyReLU.
    y = x_ref[...].astype(jnp.float32) * a_ref[...] + b_ref[...]
    o_ref[...] = jnp.where(y >= 0, y, NEG_SLOPE * y).astype(o_ref.dtype)


def _layernorm_kernel(x_ref, o_ref):
    # x: (TM, C); normalize each row over the channel (last) dim, no affine.
    x = x_ref[...].astype(jnp.float32)
    mean = jnp.mean(x, axis=1, keepdims=True)
    xc = x - mean
    var = jnp.mean(xc * xc, axis=1, keepdims=True)
    o_ref[...] = (xc * lax.rsqrt(var + LN_EPS)).astype(o_ref.dtype)


# ------------------------------ JAX glue ------------------------------------

def _im2col(x, stride):
    """x: (N,H,W,C) -> patches (N,Ho,Wo, 9*C) for a 3x3 conv, padding=1.

    Only used for the tiny 1-channel mask count and the pure-JAX reference.
    """
    n, h, w, c = x.shape
    k, pad = 3, 1
    xp = jnp.pad(x, ((0, 0), (pad, pad), (pad, pad), (0, 0)))
    ho = (h + 2 * pad - k) // stride + 1
    wo = (w + 2 * pad - k) // stride + 1
    cols = []
    for dy in range(k):
        for dx in range(k):
            cols.append(
                xp[:, dy:dy + stride * (ho - 1) + 1:stride,
                      dx:dx + stride * (wo - 1) + 1:stride, :])
    return jnp.concatenate(cols, axis=-1), ho, wo


def partial_conv(x, mask, w, b, stride, use_pallas=True,
                 compute_dtype=jnp.bfloat16, out_dtype=None):
    """PartialConv2d (single-channel mask, 3x3, padding=1). Returns (y, new_mask)."""
    n, h, wd, cin = x.shape
    cout = w.shape[-1]
    if out_dtype is None:
        out_dtype = compute_dtype if use_pallas else jnp.float32

    if mask is None:
        mask = jnp.ones((h, wd), jnp.float32)
        xm = x
    else:
        xm = x * mask[None, :, :, None].astype(x.dtype)

    # Mask update path (1 channel, tiny, data independent) -- plain JAX.
    mcols, ho, wo = _im2col(mask[None, :, :, None].astype(jnp.float32), stride)
    count = jnp.sum(mcols, axis=-1)[0]                       # (Ho, Wo)
    um = jnp.clip(count, 0.0, 1.0)
    ratio = (9.0 / (count + EPS_MASK)) * um

    if not use_pallas:   # pure-JAX f32 reference
        cols, _, _ = _im2col(xm.astype(jnp.float32), stride)
        a2 = cols.reshape(n * ho * wo, 9 * cin)
        ratio_col = jnp.broadcast_to(ratio[None], (n, ho, wo)).reshape(-1, 1)
        um_col = jnp.broadcast_to(um[None], (n, ho, wo)).reshape(-1, 1)
        out = (jnp.dot(a2, w.reshape(9 * cin, cout)) * ratio_col
               + b.reshape(1, cout)) * um_col
        return out.reshape(n, ho, wo, cout), um

    assert h % stride == 0 and wd % stride == 0

    # Row-stripe tile: biggest power-of-two stripe keeping the implicit
    # matmul M-tile (th * wo) around <= 1024 rows.
    th = ho
    while th % 2 == 0 and th * wo > 1024:
        th //= 2
    n_stripes = ho // th
    ns = n * n_stripes

    xc = xm.astype(compute_dtype)
    xp = jnp.pad(xc, ((0, 0), (1, 1), (1, 1), (0, 0)))

    if stride == 1:
        rows_blk = th + 2
        cols_blk = wd + 2
        ca = cin
        src = xp
        taps = tuple((dy, dx, 0) for dy in range(3) for dx in range(3))
    else:  # stride == 2: space-to-depth fold -> all taps are unit-stride slices
        hp2, wp2 = (h + 2) // 2, (wd + 2) // 2
        src = xp.reshape(n, hp2, 2, wp2, 2, cin).transpose(0, 1, 3, 2, 4, 5)
        src = src.reshape(n, hp2, wp2, 4 * cin)
        rows_blk = th + 1
        cols_blk = wp2
        ca = 4 * cin
        taps = tuple((dy // 2, dx // 2, ((dy % 2) * 2 + (dx % 2)) * cin)
                     for dy in range(3) for dx in range(3))

    # Halo'd row stripes: duplicates only the 1-2 halo rows per stripe
    # (~1.1x copy) instead of the old 9x im2col materialization.
    parts = [lax.slice_in_dim(src, r * th, r * th + rows_blk, axis=1)
             for r in range(n_stripes)]
    stripes = jnp.stack(parts, axis=1).reshape(ns, rows_blk, cols_blk, ca)

    ratio_s = jnp.broadcast_to(ratio[None], (n, ho, wo)) \
        .reshape(ns, th, wo).astype(jnp.float32)
    um_s = jnp.broadcast_to(um[None], (n, ho, wo)) \
        .reshape(ns, th, wo).astype(jnp.float32)

    wk = w.astype(compute_dtype)                # (3,3,cin,cout) HWIO
    bk = b.reshape(1, cout).astype(jnp.float32)

    # Lane-dense Cout tile (multiple of 128/256 at production dim_z).
    tn = cout if cout <= 512 else 512
    if cout % tn:
        tn = cout
    nj = cout // tn

    it = jnp.dtype(compute_dtype).itemsize
    cost = pl.CostEstimate(
        flops=2 * ns * th * wo * 9 * cin * cout,
        bytes_accessed=(stripes.size * it + wk.size * it
                        + ns * th * wo * cout * jnp.dtype(out_dtype).itemsize),
        transcendentals=0)

    kern = functools.partial(_pconv_kernel, taps=taps, th=th, wo=wo, cin=cin)
    out = pl.pallas_call(
        kern,
        out_shape=jax.ShapeDtypeStruct((ns, th, wo, cout), out_dtype),
        # Cout tiles outermost so the weight tile is fetched once per j and the
        # A stripes stream underneath (A stripe resident across j: index map
        # ignores j, so its DMA is elided between consecutive steps).
        grid=(nj, ns),
        in_specs=[
            pl.BlockSpec((1, rows_blk, cols_blk, ca), lambda j, i: (i, 0, 0, 0)),
            pl.BlockSpec((3, 3, cin, tn), lambda j, i: (0, 0, 0, j)),
            pl.BlockSpec((1, tn), lambda j, i: (0, j)),
            pl.BlockSpec((1, th, wo), lambda j, i: (i, 0, 0)),
            pl.BlockSpec((1, th, wo), lambda j, i: (i, 0, 0)),
        ],
        out_specs=pl.BlockSpec((1, th, wo, tn), lambda j, i: (i, 0, 0, j)),
        compiler_params=pltpu.CompilerParams(
            dimension_semantics=("arbitrary", "parallel"),
            vmem_limit_bytes=64 * 1024 * 1024),
        cost_estimate=cost,
    )(stripes, wk, bk, ratio_s, um_s)

    return out.reshape(n, ho, wo, cout), um


def group_norm_lrelu(x, gamma, beta, groups=8, use_pallas=True,
                     act_dtype=jnp.bfloat16):
    n, h, w, c = x.shape
    hw = h * w
    cg = c // groups

    if use_pallas:
        xr = x.reshape(n, hw, c)
        thw = min(hw, 1024)
        hwp = _round_up(hw, thw)
        xr_p = xr if hwp == hw else jnp.pad(xr, ((0, 0), (0, hwp - hw), (0, 0)))
        nt = hwp // thw
        s1, s2 = pl.pallas_call(
            _gn_stats_kernel,
            out_shape=(jax.ShapeDtypeStruct((n, 1, c), jnp.float32),
                       jax.ShapeDtypeStruct((n, 1, c), jnp.float32)),
            grid=(n, nt),
            in_specs=[pl.BlockSpec((1, thw, c), lambda i, t: (i, t, 0))],
            out_specs=(pl.BlockSpec((1, 1, c), lambda i, t: (i, 0, 0)),
                       pl.BlockSpec((1, 1, c), lambda i, t: (i, 0, 0))),
            compiler_params=pltpu.CompilerParams(
                dimension_semantics=("parallel", "arbitrary")),
        )(xr_p)
        s1 = s1.reshape(n, c)
        s2 = s2.reshape(n, c)
    else:
        xr = x.astype(jnp.float32).reshape(n, hw, c)
        s1 = jnp.sum(xr, axis=1)
        s2 = jnp.sum(xr * xr, axis=1)

    # Tiny per-(sample, group) statistics -- plain JAX (f32).
    # TODO(synk): single-pass E[x^2]-mean^2 can cancel for huge activations;
    # switch to a two-pass / Welford variant if that regime ever appears.
    cnt = float(hw * cg)
    mean_g = s1.reshape(n, groups, cg).sum(-1) / cnt
    var_g = s2.reshape(n, groups, cg).sum(-1) / cnt - mean_g * mean_g
    inv_g = lax.rsqrt(var_g + GN_EPS)
    mean_c = jnp.repeat(mean_g, cg, axis=1)                   # (n, c)
    inv_c = jnp.repeat(inv_g, cg, axis=1)                     # (n, c)
    a_c = inv_c * gamma[None, :]
    b_c = beta[None, :] - mean_c * a_c

    if use_pallas:
        out = pl.pallas_call(
            _gn_scale_lrelu_kernel,
            out_shape=jax.ShapeDtypeStruct((n, hwp, c), act_dtype),
            grid=(n, nt),
            in_specs=[pl.BlockSpec((1, thw, c), lambda i, t: (i, t, 0)),
                      pl.BlockSpec((1, 1, c), lambda i, t: (i, 0, 0)),
                      pl.BlockSpec((1, 1, c), lambda i, t: (i, 0, 0))],
            out_specs=pl.BlockSpec((1, thw, c), lambda i, t: (i, t, 0)),
            compiler_params=pltpu.CompilerParams(
                dimension_semantics=("parallel", "parallel")),
        )(xr_p, a_c.reshape(n, 1, c), b_c.reshape(n, 1, c))
        if hwp != hw:
            out = out[:, :hw]
        return out.reshape(n, h, w, c)

    y = xr * a_c[:, None, :] + b_c[:, None, :]
    out = jnp.where(y >= 0, y, NEG_SLOPE * y)
    return out.reshape(n, h, w, c)


def layer_norm_lastdim(x, use_pallas=True):
    n, h, w, c = x.shape
    m = n * h * w
    xr = x.reshape(m, c)
    if not use_pallas:
        xr = xr.astype(jnp.float32)
        mean = jnp.mean(xr, axis=1, keepdims=True)
        xc = xr - mean
        var = jnp.mean(xc * xc, axis=1, keepdims=True)
        return (xc * lax.rsqrt(var + LN_EPS)).reshape(n, h, w, c)

    tm = min(m, 1024)
    mp = _round_up(m, tm)
    xp = xr if mp == m else jnp.pad(xr, ((0, mp - m), (0, 0)))
    out = pl.pallas_call(
        _layernorm_kernel,
        out_shape=jax.ShapeDtypeStruct((mp, c), jnp.float32),
        grid=(mp // tm,),
        in_specs=[pl.BlockSpec((tm, c), lambda i: (i, 0))],
        out_specs=pl.BlockSpec((tm, c), lambda i: (i, 0)),
        compiler_params=pltpu.CompilerParams(
            dimension_semantics=("parallel",)),
    )(xp)
    if mp != m:
        out = out[:m]
    return out.reshape(n, h, w, c)


# ------------------------------ Encoder -------------------------------------

def down_block(x, mask, bp, use_pallas=True, compute_dtype=jnp.bfloat16):
    y, mask = partial_conv(x, mask, bp["w1"], bp["b1"], stride=1,
                           use_pallas=use_pallas, compute_dtype=compute_dtype)
    y = group_norm_lrelu(y, bp["g1"], bp["be1"], use_pallas=use_pallas,
                         act_dtype=compute_dtype)
    y, mask = partial_conv(y, mask, bp["w2"], bp["b2"], stride=2,
                           use_pallas=use_pallas, compute_dtype=compute_dtype)
    y = group_norm_lrelu(y, bp["g2"], bp["be2"], use_pallas=use_pallas,
                         act_dtype=compute_dtype)
    return y, mask


def encoder_forward(x_nchw, params, layer_sizes, use_pallas=True,
                    compute_dtype=jnp.bfloat16, no_layernorm=False):
    # NCHW -> NHWC on entry; per-layer outputs are NHWC (matches the PyTorch
    # .permute(0, 2, 3, 1)).
    x = jnp.transpose(x_nchw, (0, 2, 3, 1)).astype(jnp.float32)
    out = [None] * len(layer_sizes)
    y, mask = x, None
    for bp in params["blocks"]:
        y, mask = down_block(y, mask, bp, use_pallas=use_pallas,
                             compute_dtype=compute_dtype)
        for i, l in enumerate(layer_sizes):
            if y.shape[1] == l:
                h, _ = partial_conv(y, mask, params["heads"][i]["w"],
                                    params["heads"][i]["b"], stride=1,
                                    use_pallas=use_pallas,
                                    compute_dtype=compute_dtype)
                if not no_layernorm:
                    h = layer_norm_lastdim(h, use_pallas=use_pallas)
                out[i] = h
    for o in out:
        if o is None:
            raise RuntimeError("Unexpected output count for Encoder.")
    return out


def _conv_params(key, cin, cout):
    k1, k2, key = jax.random.split(key, 3)
    w = jax.random.normal(k1, (3, 3, cin, cout), jnp.float32) / np.sqrt(9.0 * cin)
    b = jax.random.normal(k2, (cout,), jnp.float32) * 0.01
    return w, b, key


def init_encoder_params(key, num_channels, canvas_size, layer_sizes, dim_z):
    num_ds = int(np.log2(canvas_size / min(layer_sizes)))
    blocks, heads = [], []
    for i in range(num_ds):
        in_ch = num_channels if i == 0 else dim_z
        w1, b1, key = _conv_params(key, in_ch, dim_z)
        w2, b2, key = _conv_params(key, dim_z, dim_z)
        k1, k2, k3, k4, key = jax.random.split(key, 5)
        blocks.append({
            "w1": w1, "b1": b1, "w2": w2, "b2": b2,
            "g1": 1.0 + 0.05 * jax.random.normal(k1, (dim_z,), jnp.float32),
            "be1": 0.05 * jax.random.normal(k2, (dim_z,), jnp.float32),
            "g2": 1.0 + 0.05 * jax.random.normal(k3, (dim_z,), jnp.float32),
            "be2": 0.05 * jax.random.normal(k4, (dim_z,), jnp.float32),
        })
        for lsize in layer_sizes:
            if canvas_size // 2 ** (i + 1) == lsize:
                wh, bh, key = _conv_params(key, dim_z, dim_z)
                heads.append({"w": wh, "b": bh})
    return {"blocks": blocks, "heads": heads}, key


if __name__ == "__main__":
    num_channels = 4
    canvas_size = 16
    layer_sizes = [8, 4]   # descending so heads[i] lines up with layer_sizes[i]
    dim_z = 32             # small stand-in for the default 1024 (divisible by 8 groups)
    batch = 2

    key = jax.random.PRNGKey(0)
    params, key = init_encoder_params(key, num_channels, canvas_size, layer_sizes, dim_z)
    key, sub = jax.random.split(key)
    x = jax.random.normal(sub, (batch, num_channels, canvas_size, canvas_size),
                          jnp.float32)

    # Fast path: fused Pallas pipeline with bf16 operands / activations.
    outs_bf = encoder_forward(x, params, layer_sizes, use_pallas=True,
                              compute_dtype=jnp.bfloat16)
    outs_bf = [jax.block_until_ready(o) for o in outs_bf]

    # Same Pallas pipeline in f32 (tight structural check) and the pure JAX
    # reference (identical math, no Pallas).
    outs_f32 = encoder_forward(x, params, layer_sizes, use_pallas=True,
                               compute_dtype=jnp.float32)
    refs = encoder_forward(x, params, layer_sizes, use_pallas=False)

    for o_bf, o_f32, r, l in zip(outs_bf, outs_f32, refs, layer_sizes):
        assert o_bf.shape == (batch, l, l, dim_z), o_bf.shape
        # f32 Pallas path must match the JAX reference tightly.
        np.testing.assert_allclose(np.asarray(o_f32), np.asarray(r),
                                   rtol=1e-3, atol=1e-3)
        # bf16 operands + bf16 inter-kernel activations: looser tolerance.
        np.testing.assert_allclose(np.asarray(o_bf.astype(jnp.float32)),
                                   np.asarray(r), rtol=1e-1, atol=1e-1)

    print("KERNEL_OK")
</pallas_src>

<mosaic_0001>
module attributes {stable_mosaic.version = 11 : i64} {
  func.func @_pconv_kernel(%arg0: i32, %arg1: i32, %arg2: memref<1x18x18x4xbf16, #tpu.memory_space<vmem>>, %arg3: memref<3x3x4x32xbf16, #tpu.memory_space<vmem>>, %arg4: memref<1x32xf32, #tpu.memory_space<vmem>>, %arg5: memref<1x16x16xf32, #tpu.memory_space<vmem>>, %arg6: memref<1x16x16xf32, #tpu.memory_space<vmem>>, %arg7: memref<1x16x16x32xbf16, #tpu.memory_space<vmem>>) attributes {dimension_semantics = [#tpu.dimension_semantics<arbitrary>, #tpu.dimension_semantics<parallel>], iteration_bounds = array<i64: 1, 2>, scalar_prefetch = 0 : i64, scratch_operands = 0 : i64, tpu.core_type = #tpu.core_type<tc>, window_params = [{transform_indices = @transform_0, window_bounds = array<i64: 1, 18, 18, 4>}, {transform_indices = @transform_1, window_bounds = array<i64: 3, 3, 4, 32>}, {transform_indices = @transform_2, window_bounds = array<i64: 1, 32>}, {transform_indices = @transform_3, window_bounds = array<i64: 1, 16, 16>}, {transform_indices = @transform_4, window_bounds = array<i64: 1, 16, 16>}, {transform_indices = @transform_5, window_bounds = array<i64: 1, 16, 16, 32>}]} {
    %cst = arith.constant 0.000000e+00 : f32
    %0 = vector.broadcast %cst : f32 to vector<256x32xf32>
    %c0 = arith.constant 0 : index
    %c0_0 = arith.constant 0 : index
    %c0_1 = arith.constant 0 : index
    %c0_2 = arith.constant 0 : index
    %1 = vector.load %arg2[%c0, %c0_0, %c0_1, %c0_2] : memref<1x18x18x4xbf16, #tpu.memory_space<vmem>>, vector<1x16x16x4xbf16>
    %2 = vector.shape_cast %1 : vector<1x16x16x4xbf16> to vector<16x16x4xbf16>
    %3 = vector.shape_cast %2 : vector<16x16x4xbf16> to vector<256x4xbf16>
    %c0_3 = arith.constant 0 : index
    %c0_4 = arith.constant 0 : index
    %c0_5 = arith.constant 0 : index
    %c0_6 = arith.constant 0 : index
    %4 = vector.load %arg3[%c0_3, %c0_4, %c0_5, %c0_6] : memref<3x3x4x32xbf16, #tpu.memory_space<vmem>>, vector<1x1x4x32xbf16>
    %5 = vector.shape_cast %4 : vector<1x1x4x32xbf16> to vector<4x32xbf16>
    %cst_7 = arith.constant dense<0.000000e+00> : vector<256x32xf32>
    %6 = tpu.matmul %3, %5, %cst_7 {dimension_numbers = #tpu.dot_dimension_numbers<[1], [0], [0], [1], [0, 0, 1, 1], [], []>} : vector<256x4xbf16>, vector<4x32xbf16>, vector<256x32xf32> -> vector<256x32xf32>
    %7 = arith.addf %0, %6 : vector<256x32xf32>
    %c0_8 = arith.constant 0 : index
    %c0_9 = arith.constant 0 : index
    %c1 = arith.constant 1 : index
    %c0_10 = arith.constant 0 : index
    %8 = vector.load %arg2[%c0_8, %c0_9, %c1, %c0_10] : memref<1x18x18x4xbf16, #tpu.memory_space<vmem>>, vector<1x16x16x4xbf16>
    %9 = vector.shape_cast %8 : vector<1x16x16x4xbf16> to vector<16x16x4xbf16>
    %10 = vector.shape_cast %9 : vector<16x16x4xbf16> to vector<256x4xbf16>
    %c0_11 = arith.constant 0 : index
    %c1_12 = arith.constant 1 : index
    %c0_13 = arith.constant 0 : index
    %c0_14 = arith.constant 0 : index
    %11 = vector.load %arg3[%c0_11, %c1_12, %c0_13, %c0_14] : memref<3x3x4x32xbf16, #tpu.memory_space<vmem>>, vector<1x1x4x32xbf16>
    %12 = vector.shape_cast %11 : vector<1x1x4x32xbf16> to vector<4x32xbf16>
    %cst_15 = arith.constant dense<0.000000e+00> : vector<256x32xf32>
    %13 = tpu.matmul %10, %12, %cst_15 {dimension_numbers = #tpu.dot_dimension_numbers<[1], [0], [0], [1], [0, 0, 1, 1], [], []>} : vector<256x4xbf16>, vector<4x32xbf16>, vector<256x32xf32> -> vector<256x32xf32>
    %14 = arith.addf %7, %13 : vector<256x32xf32>
    %c0_16 = arith.constant 0 : index
    %c0_17 = arith.constant 0 : index
    %c2 = arith.constant 2 : index
    %c0_18 = arith.constant 0 : index
    %15 = vector.load %arg2[%c0_16, %c0_17, %c2, %c0_18] : memref<1x18x18x4xbf16, #tpu.memory_space<vmem>>, vector<1x16x16x4xbf16>
    %16 = vector.shape_cast %15 : vector<1x16x16x4xbf16> to vector<16x16x4xbf16>
    %17 = vector.shape_cast %16 : vector<16x16x4xbf16> to vector<256x4xbf16>
    %c0_19 = arith.constant 0 : index
    %c2_20 = arith.constant 2 : index
    %c0_21 = arith.constant 0 : index
    %c0_22 = arith.constant 0 : index
    %18 = vector.load %arg3[%c0_19, %c2_20, %c0_21, %c0_22] : memref<3x3x4x32xbf16, #tpu.memory_space<vmem>>, vector<1x1x4x32xbf16>
    %19 = vector.shape_cast %18 : vector<1x1x4x32xbf16> to vector<4x32xbf16>
    %cst_23 = arith.constant dense<0.000000e+00> : vector<256x32xf32>
    %20 = tpu.matmul %17, %19, %cst_23 {dimension_numbers = #tpu.dot_dimension_numbers<[1], [0], [0], [1], [0, 0, 1, 1], [], []>} : vector<256x4xbf16>, vector<4x32xbf16>, vector<256x32xf32> -> vector<256x32xf32>
    %21 = arith.addf %14, %20 : vector<256x32xf32>
    %c0_24 = arith.constant 0 : index
    %c1_25 = arith.constant 1 : index
    %c0_26 = arith.constant 0 : index
    %c0_27 = arith.constant 0 : index
    %22 = vector.load %arg2[%c0_24, %c1_25, %c0_26, %c0_27] : memref<1x18x18x4xbf16, #tpu.memory_space<vmem>>, vector<1x16x16x4xbf16>
    %23 = vector.shape_cast %22 : vector<1x16x16x4xbf16> to vector<16x16x4xbf16>
    %24 = vector.shape_cast %23 : vector<16x16x4xbf16> to vector<256x4xbf16>
    %c1_28 = arith.constant 1 : index
    %c0_29 = arith.constant 0 : index
    %c0_30 = arith.constant 0 : index
    %c0_31 = arith.constant 0 : index
    %25 = vector.load %arg3[%c1_28, %c0_29, %c0_30, %c0_31] : memref<3x3x4x32xbf16, #tpu.memory_space<vmem>>, vector<1x1x4x32xbf16>
    %26 = vector.shape_cast %25 : vector<1x1x4x32xbf16> to vector<4x32xbf16>
    %cst_32 = arith.constant dense<0.000000e+00> : vector<256x32xf32>
    %27 = tpu.matmul %24, %26, %cst_32 {dimension_numbers = #tpu.dot_dimension_numbers<[1], [0], [0], [1], [0, 0, 1, 1], [], []>} : vector<256x4xbf16>, vector<4x32xbf16>, vector<256x32xf32> -> vector<256x32xf32>
    %28 = arith.addf %21, %27 : vector<256x32xf32>
    %c0_33 = arith.constant 0 : index
    %c1_34 = arith.constant 1 : index
    %c1_35 = arith.constant 1 : index
    %c0_36 = arith.constant 0 : index
    %29 = vector.load %arg2[%c0_33, %c1_34, %c1_35, %c0_36] : memref<1x18x18x4xbf16, #tpu.memory_space<vmem>>, vector<1x16x16x4xbf16>
    %30 = vector.shape_cast %29 : vector<1x16x16x4xbf16> to vector<16x16x4xbf16>
    %31 = vector.shape_cast %30 : vector<16x16x4xbf16> to vector<256x4xbf16>
    %c1_37 = arith.constant 1 : index
    %c1_38 = arith.constant 1 : index
    %c0_39 = arith.constant 0 : index
    %c0_40 = arith.constant 0 : index
    %32 = vector.load %arg3[%c1_37, %c1_38, %c0_39, %c0_40] : memref<3x3x4x32xbf16, #tpu.memory_space<vmem>>, vector<1x1x4x32xbf16>
    %33 = vector.shape_cast %32 : vector<1x1x4x32xbf16> to vector<4x32xbf16>
    %cst_41 = arith.constant dense<0.000000e+00> : vector<256x32xf32>
    %34 = tpu.matmul %31, %33, %cst_41 {dimension_numbers = #tpu.dot_dimension_numbers<[1], [0], [0], [1], [0, 0, 1, 1], [], []>} : vector<256x4xbf16>, vector<4x32xbf16>, vector<256x32xf32> -> vector<256x32xf32>
    %35 = arith.addf %28, %34 : vector<256x32xf32>
    %c0_42 = arith.constant 0 : index
    %c1_43 = arith.constant 1 : index
    %c2_44 = arith.constant 2 : index
    %c0_45 = arith.constant 0 : index
    %36 = vector.load %arg2[%c0_42, %c1_43, %c2_44, %c0_45] : memref<1x18x18x4xbf16, #tpu.memory_space<vmem>>, vector<1x16x16x4xbf16>
    %37 = vector.shape_cast %36 : vector<1x16x16x4xbf16> to vector<16x16x4xbf16>
    %38 = vector.shape_cast %37 : vector<16x16x4xbf16> to vector<256x4xbf16>
    %c1_46 = arith.constant 1 : index
    %c2_47 = arith.constant 2 : index
    %c0_48 = arith.constant 0 : index
    %c0_49 = arith.constant 0 : index
    %39 = vector.load %arg3[%c1_46, %c2_47, %c0_48, %c0_49] : memref<3x3x4x32xbf16, #tpu.memory_space<vmem>>, vector<1x1x4x32xbf16>
    %40 = vector.shape_cast %39 : vector<1x1x4x32xbf16> to vector<4x32xbf16>
    %cst_50 = arith.constant dense<0.000000e+00> : vector<256x32xf32>
    %41 = tpu.matmul %38, %40, %cst_50 {dimension_numbers = #tpu.dot_dimension_numbers<[1], [0], [0], [1], [0, 0, 1, 1], [], []>} : vector<256x4xbf16>, vector<4x32xbf16>, vector<256x32xf32> -> vector<256x32xf32>
    %42 = arith.addf %35, %41 : vector<256x32xf32>
    %c0_51 = arith.constant 0 : index
    %c2_52 = arith.constant 2 : index
    %c0_53 = arith.constant 0 : index
    %c0_54 = arith.constant 0 : index
    %43 = vector.load %arg2[%c0_51, %c2_52, %c0_53, %c0_54] : memref<1x18x18x4xbf16, #tpu.memory_space<vmem>>, vector<1x16x16x4xbf16>
    %44 = vector.shape_cast %43 : vector<1x16x16x4xbf16> to vector<16x16x4xbf16>
    %45 = vector.shape_cast %44 : vector<16x16x4xbf16> to vector<256x4xbf16>
    %c2_55 = arith.constant 2 : index
    %c0_56 = arith.constant 0 : index
    %c0_57 = arith.constant 0 : index
    %c0_58 = arith.constant 0 : index
    %46 = vector.load %arg3[%c2_55, %c0_56, %c0_57, %c0_58] : memref<3x3x4x32xbf16, #tpu.memory_space<vmem>>, vector<1x1x4x32xbf16>
    %47 = vector.shape_cast %46 : vector<1x1x4x32xbf16> to vector<4x32xbf16>
    %cst_59 = arith.constant dense<0.000000e+00> : vector<256x32xf32>
    %48 = tpu.matmul %45, %47, %cst_59 {dimension_numbers = #tpu.dot_dimension_numbers<[1], [0], [0], [1], [0, 0, 1, 1], [], []>} : vector<256x4xbf16>, vector<4x32xbf16>, vector<256x32xf32> -> vector<256x32xf32>
    %49 = arith.addf %42, %48 : vector<256x32xf32>
    %c0_60 = arith.constant 0 : index
    %c2_61 = arith.constant 2 : index
    %c1_62 = arith.constant 1 : index
    %c0_63 = arith.constant 0 : index
    %50 = vector.load %arg2[%c0_60, %c2_61, %c1_62, %c0_63] : memref<1x18x18x4xbf16, #tpu.memory_space<vmem>>, vector<1x16x16x4xbf16>
    %51 = vector.shape_cast %50 : vector<1x16x16x4xbf16> to vector<16x16x4xbf16>
    %52 = vector.shape_cast %51 : vector<16x16x4xbf16> to vector<256x4xbf16>
    %c2_64 = arith.constant 2 : index
    %c1_65 = arith.constant 1 : index
    %c0_66 = arith.constant 0 : index
    %c0_67 = arith.constant 0 : index
    %53 = vector.load %arg3[%c2_64, %c1_65, %c0_66, %c0_67] : memref<3x3x4x32xbf16, #tpu.memory_space<vmem>>, vector<1x1x4x32xbf16>
    %54 = vector.shape_cast %53 : vector<1x1x4x32xbf16> to vector<4x32xbf16>
    %cst_68 = arith.constant dense<0.000000e+00> : vector<256x32xf32>
    %55 = tpu.matmul %52, %54, %cst_68 {dimension_numbers = #tpu.dot_dimension_numbers<[1], [0], [0], [1], [0, 0, 1, 1], [], []>} : vector<256x4xbf16>, vector<4x32xbf16>, vector<256x32xf32> -> vector<256x32xf32>
    %56 = arith.addf %49, %55 : vector<256x32xf32>
    %c0_69 = arith.constant 0 : index
    %c2_70 = arith.constant 2 : index
    %c2_71 = arith.constant 2 : index
    %c0_72 = arith.constant 0 : index
    %57 = vector.load %arg2[%c0_69, %c2_70, %c2_71, %c0_72] : memref<1x18x18x4xbf16, #tpu.memory_space<vmem>>, vector<1x16x16x4xbf16>
    %58 = vector.shape_cast %57 : vector<1x16x16x4xbf16> to vector<16x16x4xbf16>
    %59 = vector.shape_cast %58 : vector<16x16x4xbf16> to vector<256x4xbf16>
    %c2_73 = arith.constant 2 : index
    %c2_74 = arith.constant 2 : index
    %c0_75 = arith.constant 0 : index
    %c0_76 = arith.constant 0 : index
    %60 = vector.load %arg3[%c2_73, %c2_74, %c0_75, %c0_76] : memref<3x3x4x32xbf16, #tpu.memory_space<vmem>>, vector<1x1x4x32xbf16>
    %61 = vector.shape_cast %60 : vector<1x1x4x32xbf16> to vector<4x32xbf16>
    %cst_77 = arith.constant dense<0.000000e+00> : vector<256x32xf32>
    %62 = tpu.matmul %59, %61, %cst_77 {dimension_numbers = #tpu.dot_dimension_numbers<[1], [0], [0], [1], [0, 0, 1, 1], [], []>} : vector<256x4xbf16>, vector<4x32xbf16>, vector<256x32xf32> -> vector<256x32xf32>
    %63 = arith.addf %56, %62 : vector<256x32xf32>
    %64 = vector.shape_cast %63 : vector<256x32xf32> to vector<16x16x32xf32>
    %c0_78 = arith.constant 0 : index
    %c0_79 = arith.constant 0 : index
    %c0_80 = arith.constant 0 : index
    %65 = vector.load %arg5[%c0_78, %c0_79, %c0_80] : memref<1x16x16xf32, #tpu.memory_space<vmem>>, vector<1x16x16xf32>
    %66 = vector.shape_cast %65 : vector<1x16x16xf32> to vector<16x16xf32>
    %67 = vector.shape_cast %66 : vector<16x16xf32> to vector<16x16x1xf32>
    %c0_81 = arith.constant 0 : index
    %c0_82 = arith.constant 0 : index
    %c0_83 = arith.constant 0 : index
    %68 = vector.load %arg6[%c0_81, %c0_82, %c0_83] : memref<1x16x16xf32, #tpu.memory_space<vmem>>, vector<1x16x16xf32>
    %69 = vector.shape_cast %68 : vector<1x16x16xf32> to vector<16x16xf32>
    %70 = vector.shape_cast %69 : vector<16x16xf32> to vector<16x16x1xf32>
    %71 = vector.broadcast %67 : vector<16x16x1xf32> to vector<16x16x32xf32>
    %72 = arith.mulf %64, %71 : vector<16x16x32xf32>
    %c0_84 = arith.constant 0 : index
    %c0_85 = arith.constant 0 : index
    %73 = vector.load %arg4[%c0_84, %c0_85] : memref<1x32xf32, #tpu.memory_space<vmem>>, vector<1x32xf32>
    %74 = vector.shape_cast %73 : vector<1x32xf32> to vector<32xf32>
    %75 = vector.shape_cast %74 : vector<32xf32> to vector<1x1x32xf32>
    %76 = vector.broadcast %75 : vector<1x1x32xf32> to vector<16x16x32xf32>
    %77 = arith.addf %72, %76 : vector<16x16x32xf32>
    %78 = vector.broadcast %70 : vector<16x16x1xf32> to vector<16x16x32xf32>
    %79 = arith.mulf %77, %78 : vector<16x16x32xf32>
    %80 = vector.shape_cast %79 : vector<16x16x32xf32> to vector<1x16x16x32xf32>
    %81 = arith.truncf %80 : vector<1x16x16x32xf32> to vector<1x16x16x32xbf16>
    %c0_86 = arith.constant 0 : index
    %c0_87 = arith.constant 0 : index
    %c0_88 = arith.constant 0 : index
    %c0_89 = arith.constant 0 : index
    %82 = vector.load %arg7[%c0_86, %c0_87, %c0_88, %c0_89] : memref<1x16x16x32xbf16, #tpu.memory_space<vmem>>, vector<1x16x16x32xbf16>
    tpu.vector_store %arg7[%c0_86, %c0_87, %c0_88, %c0_89], %81 {strides = array<i32>} : memref<1x16x16x32xbf16, #tpu.memory_space<vmem>>, vector<1x16x16x32xbf16>,
    return
  }
  func.func @transform_0(%arg0: i32, %arg1: i32) -> (i32, i32, i32, i32) {
    %c0_i32 = arith.constant 0 : i32
    %c0_i32_0 = arith.constant 0 : i32
    %c0_i32_1 = arith.constant 0 : i32
    %c0_i32_2 = arith.constant 0 : i32
    return %arg1, %c0_i32, %c0_i32_0, %c0_i32_1 : i32, i32, i32, i32
  }
  func.func @transform_1(%arg0: i32, %arg1: i32) -> (i32, i32, i32, i32) {
    %c0_i32 = arith.constant 0 : i32
    %c0_i32_0 = arith.constant 0 : i32
    %c0_i32_1 = arith.constant 0 : i32
    %c0_i32_2 = arith.constant 0 : i32
    return %c0_i32, %c0_i32_0, %c0_i32_1, %arg0 : i32, i32, i32, i32
  }
  func.func @transform_2(%arg0: i32, %arg1: i32) -> (i32, i32) {
    %c0_i32 = arith.constant 0 : i32
    %c0_i32_0 = arith.constant 0 : i32
    return %c0_i32, %arg0 : i32, i32
  }
  func.func @transform_3(%arg0: i32, %arg1: i32) -> (i32, i32, i32) {
    %c0_i32 = arith.constant 0 : i32
    %c0_i32_0 = arith.constant 0 : i32
    %c0_i32_1 = arith.constant 0 : i32
    return %arg1, %c0_i32, %c0_i32_0 : i32, i32, i32
  }
  func.func @transform_4(%arg0: i32, %arg1: i32) -> (i32, i32, i32) {
    %c0_i32 = arith.constant 0 : i32
    %c0_i32_0 = arith.constant 0 : i32
    %c0_i32_1 = arith.constant 0 : i32
    return %arg1, %c0_i32, %c0_i32_0 : i32, i32, i32
  }
  func.func @transform_5(%arg0: i32, %arg1: i32) -> (i32, i32, i32, i32) {
    %c0_i32 = arith.constant 0 : i32
    %c0_i32_0 = arith.constant 0 : i32
    %c0_i32_1 = arith.constant 0 : i32
    return %arg1, %c0_i32, %c0_i32_0, %arg0 : i32, i32, i32, i32
  }
}

</mosaic_0001>

<bundles_post_ra>
// kernel: tpu_custom_call.1
= control target key start
LH: loop header
LB: loop body
LE: loop exit
PB: predicated region body
PF: predicated region fallthrough
CT: control target
= control target key end

     0   :  { %10 = vsyncpa [#allocation3], 0  ;;  %s10057_s0 = inlined_call_operand.vmem [shape: bf16[2,18,18,4], index: 0, kind: input, shape index: {}]   ;;  %s10058_s1 = inlined_call_operand.vmem [shape: bf16[3,3,4,32], index: 1, kind: input, shape index: {}]   ;;  %s10059_s2 = inlined_call_operand.vmem [shape: f32[1,32], index: 2, kind: input, shape index: {}]   ;;  %s10060_s3 = inlined_call_operand.vmem [shape: f32[2,16,16], index: 3, kind: input, shape index: {}]   ;;  %s10061_s4 = inlined_call_operand.vmem [shape: f32[2,16,16], index: 4, kind: input, shape index: {}]   ;;  %s10062_s5 = inlined_call_operand.hbm [shape: bf16[2,16,16,32], index: 5, kind: output, shape index: {}]  }
   0x1   :  { %12 = vsyncpa [#allocation3 + $0x1], 0  ;;  %s6938_s18 = smov 0   ;;  %s6940_s19 = smov 0  }
   0x2   :  { %s6942_s20 = smov 0   ;;  %s6944_s21 = smov 0  }
   0x3   :  { %s6946_s22 = smov 0   ;;  %s6948_s23 = smov 0  }
   0x4 LB: > { %s5626_s24 = sadd.s32 4294967295, %s6903_s23   ;;  %s5627_s25 = sadd.s32 4294967294, %s6903_s23   ;;  %s6903_s23 = sphi %s6948_s23, %s18_s23   ;;  %s6899_s22 = sphi %s6946_s22, %s10475_s22   ;;  %s6895_s21 = sphi %s6944_s21, %s10474_s21   ;;  %s6891_s20 = sphi %s6942_s20, %s10473_s20   ;;  %s6887_s19 = sphi %s6940_s19, %s10472_s19   ;;  %s6883_s18 = sphi %s6938_s18, %s10471_s18  }
   0x5   : > { %s27_s26 = sadd.s32 1, %s6899_s22  ;;  %s169_s27 = sadd.s32 1, %s6891_s20 }
   0x6   : > { %p28_p0 = scmp.ge.s32.totalorder %s27_s26, 2  ;;  %p179_p1 = scmp.ne.s32.totalorder %s6891_s20, %s6887_s19 }
   0x7   : > { %p180_p2 = scmp.eq.s32.totalorder %s5626_s24, 1  ;;  %p185_p3 = scmp.ne.s32.totalorder %s6887_s19, %s6883_s18 }
   0x8   : > { %s10477_s26 = smov (%p28_p0, %s27_s26), 0  ;;  %p186_p5 = scmp.eq.s32.totalorder %s5627_s25, 1 }
   0x9   : > { %p6978_p4 = por %p180_p2, %p179_p1  ;;  %s164_s29 = ssub.s32 %s6899_s22, %s10477_s26 }
   0xa   : > { %p5632_p6 = scmp.ge.s32.totalorder %s6903_s23, 1  ;;  %p167_p7 = scmp.eq.s32.totalorder %s164_s29, 0 }
   0xb   : > { %p6985_p8 = por %p186_p5, %p185_p3  ;;  %p241_p9 = scmp.lt.s32.totalorder %s6903_s23, 3 }
   0xc   : > { %s6991_s6 = scalar_select %p167_p7, %s6891_s20, %s169_s27  }
   0xd   : > { %p242_p10 = pnand %p5632_p6, %p241_p9 }
   0xf   : > { %245 = sbr.rel (%p242_p10) target bundleno = 583 (0x247), region = 40 }
  0x14   : > { %v5639_v0 = vld [vmem:[%s10058_s1 + $0x2] sm:$0x3]  ;;  %vm844_vm0 = vcmask 1041408   ;;  %p286_p11 = scmp.lt.s32.totalorder %s6895_s21, 1  ;;  %v341_v2 = vld [vmem:[%s10058_s1] sm:$0x3] }
  0x15   : > { %6710 = vmatprep.subr.msk.bf16.mxu1 %vm844_vm0, %v5639_v0  ;;  %6709 = vmatprep.subr.msk.bf16.mxu0 %vm844_vm0, %v5639_v0  ;;  %v846_v1 = vsel %vm844_vm0, %v5639_v0, 0  ;;  %v5720_v3 = vld [vmem:[%s10058_s1 + $0x4] sm:$0x3]  ;;  %vm358_vm1 = vsmask.f32 3328  ;;  %v7018_v4 = vsel %vm844_vm0, %v341_v2, 0 }
  0x16   : > { %6708 = vmatpush3.bf16.msra.mxu1 %v846_v1  ;;  %6402 = vmatpush3.bf16.msra.mxu0 %v846_v1  ;;  %s7004_s11 = scalar_select %p286_p11, %s6895_s21, 1  ;;  %vm359_vm2 = vsmask.f32 7440  ;;  %vm795_vm3 = vcmask 31744   ;;  %v7044_v16 = vsel %vm844_vm0, %v5720_v3, 0  ;;  %vm1349_vm5 = vcmask 1042432  }
  0x17   : > { %6711 = vmatprep.subr.msk.bf16.mxu1 %vm844_vm0, %v341_v2  ;;  %6712 = vmatprep.subr.msk.bf16.mxu0 %vm844_vm0, %v5720_v3  ;;  %vm7059_vm4 = vmor %vm358_vm1, %vm359_vm2  ;;  %vm1350_vm6 = vcmask 1046532   ;;  %s283_s9 = sand.u32 1, %s6887_s19   ;;  %vm5455_vm8 = vcmask 257024   ;;  %s6247_s13 = sshll.u32 %s6895_s21, 11 }
  0x18   : > { %s6719_s14 = smul.u32 216, %s7004_s11  ;;  %vm7345_vm7 = vmor %vm1349_vm5, %vm1350_vm6  ;;  %s6213_s16 = sshll.u32 %s7004_s11, 4 }
  0x19   : > { %s8555_s27 = scalar_lea.vmem %s10060_s3, %s6213_s16  ;;  %s9196_s8 = scalar_lea.vmem %s10061_s4, %s6213_s16 }
  0x1a   : > { %s7015_s17 = scalar_lea.vmem %s10057_s0, %s6719_s14  ;;  %s9741_s10 = sshll.u32 %s283_s9, 7 }
  0x1b   : > { %v7021_v5 = vld [vmem:[%s7015_s17] sm:$0xf]  ;;  %v7024_v6 = vld [vmem:[%s7015_s17 + $0x4] sm:$0xf]  ;;  %v7027_v7 = vld [vmem:[%s7015_s17 + $0x8] sm:$0x1]  ;;  %s10002_s24 = scalar_lea.hbm %s10062_s5, %s6247_s13 }
  0x1c   : > { %v362_v8 = vshrl.u32 %v7021_v5, 16  ;;  %v365_v9 = vshll.u32 %v7021_v5, 16  ;;  %v371_v10 = vshll.u32 %v7024_v6, 16  ;;  %v375_v11 = vshrl.u32 %v7024_v6, 16  ;;  %v7034_v12 = vld [vmem:[%s7015_s17 + $0x60] sm:$0xf] }
  0x1d   : > { %v381_v13 = vshll.u32 %v7027_v7, 16  ;;  %v7038_v14 = vld [vmem:[%s7015_s17 + $0x64] sm:$0xf]  ;;  %v7041_v15 = vld [vmem:[%s7015_s17 + $0x68] sm:$0x1]  ;;  %v554_v22 = vshrl.u32 %v7034_v12, 16 }
  0x1e   : > { %v364_v17 = vrot.slane %v362_v8, 4  ;;  %v367_v18 = vrot.slane %v365_v9, 5  ;;  %v373_v19 = vrot.slane %v371_v10, 5  ;;  %v377_v20 = vrot.slane %v375_v11, 4  ;;  %v7052_v29 = vld [vmem:[%s7015_s17 + $0xc] sm:$0xf] }
  0x1f   : > { %v383_v21 = vrot.slane %v381_v13, 5  ;;  %v557_v23 = vshll.u32 %v7034_v12, 16  ;;  %v563_v24 = vshll.u32 %v7038_v14, 16  ;;  %v567_v27 = vshrl.u32 %v7038_v14, 16  ;;  %v7055_v30 = vld [vmem:[%s7015_s17 + $0x10] sm:$0xf] }
  0x20   : > { %v368_v25 = vor.u32 %v367_v18, %v364_v17  ;;  %v378_v26 = vor.u32 %v377_v20, %v373_v19  ;;  %v573_v28 = vshll.u32 %v7041_v15, 16  ;;  %v556_v33 = vrot.slane %v554_v22, 4  ;;  %v7065_v41 = vld [vmem:[%s7015_s17 + $0x14] sm:$0x1]  ;;  %v7076_v53 = vld [vmem:[%s7015_s17 + $0x6c] sm:$0xf] }
  0x21   : > { %v559_v34 = vrot.slane %v557_v23, 5  ;;  %v565_v35 = vrot.slane %v563_v24, 5  ;;  %v569_v38 = vrot.slane %v567_v27, 4  ;;  %v386_v42 = vshrl.u32 %v7052_v29, 16  ;;  %v7080_v58 = vld [vmem:[%s7015_s17 + $0x70] sm:$0xf] }
  0x22   : > { %v369_v36 = vrot.slane %v368_v25, 4  ;;  %v379_v37 = vrot.slane %v378_v26, 4  ;;  %v575_v39 = vrot.slane %v573_v28, 5  ;;  %v389_v43 = vshll.u32 %v7052_v29, 16  ;;  %v7088_v63 = vld [vmem:[%s7015_s17 + $0x74] sm:$0x1] }
  0x23   : > { %v560_v40 = vor.u32 %v559_v34, %v556_v33  ;;  %v395_v44 = vshll.u32 %v7055_v30, 16  ;;  %v570_v47 = vor.u32 %v569_v38, %v565_v35  ;;  %v399_v48 = vshrl.u32 %v7055_v30, 16  ;;  %v7094_v8 = vld [vmem:[%s7015_s17 + $0x18] sm:$0xf]  ;;  %v7107_v25 = vld [vmem:[%s7015_s17 + $0x20] sm:$0x1] }
  0x24   : > { %v374_v45 = vsel %vm7059_vm4, %v369_v36, %v373_v19  ;;  %v384_v46 = vsel %vm7059_vm4, %v379_v37, %v383_v21  ;;  %v388_v51 = vrot.slane %v386_v42, 4  ;;  %v391_v52 = vrot.slane %v389_v43, 5  ;;  %v7101_v21 = vld [vmem:[%s7015_s17 + $0x1c] sm:$0xf]  ;;  %s9766_s12 = scalar_lea.vmem [#allocation2], %s9741_s10  ;;  %s10012_s21 = scalar_lea.sflag [#allocation3], %s283_s9 }
  0x25   : > { %v5640_v49 = vcombine.low %v374_v45, %v384_v46  ;;  %v561_v50 = vrot.slane %v560_v40, 4  ;;  %v571_v54 = vrot.slane %v570_v47, 4  ;;  %v397_v55 = vrot.slane %v395_v44, 5  ;;  %v7120_v40 = vld [vmem:[%s10058_s1 + $0x8] sm:$0x3]  ;;  %s5503_s14 = sshll.u32 %s9766_s12, 4  ;;  %s10004_s14 = int_to_ptr.vmem [resolvable:$true] %s5503_s14 }
  0x26   : > { %v401_v56 = vrot.slane %v399_v48, 4  ;;  %v405_v57 = vshll.u32 %v7065_v41, 16  ;;  %v392_v60 = vor.u32 %v391_v52, %v388_v51  ;;  %v578_v3 = vshrl.u32 %v7076_v53, 16  ;;  %v7125_v46 = vld [vmem:[%s7015_s17 + $0x7c] sm:$0xf]  ;;  %s6827_s25 = scalar_lea.vmem %s10004_s14, 2048 }
  0x27   : > { %6403 = vmatprep.mubr.msk.bf16.mxu0 %vm795_vm3, %v5640_v49  ;;  %v566_v59 = vsel %vm7059_vm4, %v561_v50, %v565_v35  ;;  %v576_v0 = vsel %vm7059_vm4, %v571_v54, %v575_v39  ;;  %v581_v11 = vshll.u32 %v7076_v53, 16  ;;  %v587_v13 = vshll.u32 %v7080_v58, 16  ;;  %v7114_v35 = vld [vmem:[%s7015_s17 + $0x78] sm:$0xf]  ;;  %p6828_p12 = scmp.ne.s32.totalorder %s10004_s14, %s6827_s25 }
  0x28   : > { %v402_v1 = vor.u32 %v401_v56, %v397_v55  ;;  %v407_v2 = vrot.slane %v405_v57, 5  ;;  %v5648_v9 = vcombine.low %v566_v59, %v576_v0  ;;  %v393_v10 = vrot.slane %v392_v60, 4  ;;  %v7132_v56 = vld [vmem:[%s7015_s17 + $0x80] sm:$0x1] }
  0x29   : > { %v580_v18 = vrot.slane %v578_v3, 4  ;;  %v591_v19 = vshrl.u32 %v7080_v58, 16  ;;  %v597_v20 = vshll.u32 %v7088_v63, 16  ;;  %v583_v23 = vrot.slane %v581_v11, 5  ;;  %10114 = vst [vmem:[#allocation5_spill] sm:$0xff] %v7132_v56  ;;  %p6829_p13 = pnand %p6828_p12, %p6978_p4 }
  0x2a   : > { %v403_v17 = vrot.slane %v402_v1, 4  ;;  %6419 = vmatprep.mubr.msk.bf16.mxu1 %vm795_vm3, %v5648_v9  ;;  %v398_v22 = vsel %vm7059_vm4, %v393_v10, %v397_v55  ;;  %v589_v24 = vrot.slane %v587_v13, 5  ;;  %v410_v26 = vshrl.u32 %v7094_v8, 16  ;;  %v7138_v1 = vld [vmem:[%s7015_s17 + $0x24] sm:$0xf] }
  0x2b   : > { %v593_v28 = vrot.slane %v591_v19, 4  ;;  %v599_v33 = vrot.slane %v597_v20, 5  ;;  %v413_v34 = vshll.u32 %v7094_v8, 16  ;;  %v584_v37 = vor.u32 %v583_v23, %v580_v18  ;;  %v7146_v10 = vld [vmem:[%s7015_s17 + $0x28] sm:$0xf]  ;;  %p6830_p0 = pneg %p6829_p13 }
  0x2c   : > { %v408_v27 = vsel %vm7059_vm4, %v403_v17, %v407_v2  ;;  %v412_v38 = vrot.slane %v410_v26, 4  ;;  %v419_v39 = vshll.u32 %v7101_v21, 16  ;;  %v423_v44 = vshrl.u32 %v7101_v21, 16  ;;  %v7152_v19 = vld [vmem:[%s10058_s1 + $0x6] sm:$0x3] }
  0x2d   : > { %v5641_v36 = vcombine.low %v398_v22, %v408_v27  ;;  %v594_v42 = vor.u32 %v593_v28, %v589_v24  ;;  %v415_v43 = vrot.slane %v413_v34, 5  ;;  %v429_v45 = vshll.u32 %v7107_v25, 16 }
  0x2e   : > { %v585_v47 = vrot.slane %v584_v37, 4  ;;  %v421_v48 = vrot.slane %v419_v39, 5  ;;  %v602_v49 = vshrl.u32 %v7114_v35, 16  ;;  %v605_v50 = vshll.u32 %v7114_v35, 16 }
  0x2f   : > { %6404 = vmatmul.mubr.msk.bf16.vlgmr.msra.gmra.mxu0 %vm795_vm3, %v5641_v36  ;;  %v595_v51 = vrot.slane %v594_v42, 4  ;;  %v416_v52 = vor.u32 %v415_v43, %v412_v38  ;;  %v425_v54 = vrot.slane %v423_v44, 4  ;;  %v431_v55 = vrot.slane %v429_v45, 5  ;;  %v7164_v36 = vld [vmem:[%s7015_s17 + $0x84] sm:$0xf] }
  0x30   : > { %6470 = vmatpush3.bf16.msra.mxu0 %v7044_v16  ;;  %v590_v57 = vsel %vm7059_vm4, %v585_v47, %v589_v24  ;;  %v604_v59 = vrot.slane %v602_v49, 4  ;;  %v607_v60 = vrot.slane %v605_v50, 5  ;;  %v611_v0 = vshll.u32 %v7125_v46, 16  ;;  %v7157_v24 = vld [vmem:[%s7015_s17 + $0x2c] sm:$0x1] }
  0x31   : > { %6714 = vmatprep.subr.msk.bf16.mxu0 %vm844_vm0, %v7120_v40  ;;  %v600_v16 = vsel %vm7059_vm4, %v595_v51, %v599_v33  ;;  %v417_v2 = vrot.slane %v416_v52, 4  ;;  %v426_v3 = vor.u32 %v425_v54, %v421_v48  ;;  %v615_v9 = vshrl.u32 %v7125_v46, 16  ;;  %v7171_v43 = vld [vmem:[%s7015_s17 + $0x88] sm:$0xf]  ;;  %v7179_v51 = vld [vmem:[%s7015_s17 + $0x8c] sm:$0x1] }
  0x32   : > { %v5649_v11 = vcombine.low %v590_v57, %v600_v16  ;;  %v608_v13 = vor.u32 %v607_v60, %v604_v59  ;;  %v613_v17 = vrot.slane %v611_v0, 5  ;;  %v621_v18 = vshll.u32 %v7132_v56, 16  ;;  %10115 = vst [vmem:[#allocation6_spill] sm:$0xff] %v7179_v51  ;;  %v7187_v60 = vld [vmem:[%s7015_s17 + $0x30] sm:$0xf] }
  0x33   : > { %v422_v20 = vsel %vm7059_vm4, %v417_v2, %v421_v48  ;;  %v427_v22 = vrot.slane %v426_v3, 4  ;;  %v617_v23 = vrot.slane %v615_v9, 4  ;;  %v434_v26 = vshrl.u32 %v7138_v1, 16  ;;  %v7192_v9 = vld [vmem:[%s7015_s17 + $0x34] sm:$0xf] }
  0x34   : > { %6420 = vmatmul.mubr.msk.bf16.vlgmr.msra.gmra.mxu1 %vm795_vm3, %v5649_v11  ;;  %v609_v27 = vrot.slane %v608_v13, 4  ;;  %v623_v28 = vrot.slane %v621_v18, 5  ;;  %v437_v33 = vshll.u32 %v7138_v1, 16  ;;  %v443_v34 = vshll.u32 %v7146_v10, 16 }
  0x35   : > { %6436 = vmatpush3.bf16.msra.mxu1 %v7018_v4  ;;  %v432_v37 = vsel %vm7059_vm4, %v427_v22, %v431_v55  ;;  %v618_v38 = vor.u32 %v617_v23, %v613_v17  ;;  %v436_v39 = vrot.slane %v434_v26, 4  ;;  %v447_v42 = vshrl.u32 %v7146_v10, 16 }
  0x36   : > { %v5642_v44 = vcombine.low %v422_v20, %v432_v37  ;;  %v614_v45 = vsel %vm7059_vm4, %v609_v27, %v613_v17  ;;  %v439_v47 = vrot.slane %v437_v33, 5  ;;  %v445_v48 = vrot.slane %v443_v34, 5  ;;  %6713 = vmatprep.subr.msk.bf16.mxu1 %vm844_vm0, %v7152_v19  ;;  %v7200_v33 = vld [vmem:[%s7015_s17 + $0x38] sm:$0x1] }
  0x37   : > { %v619_v4 = vrot.slane %v618_v38, 4  ;;  %v449_v49 = vrot.slane %v447_v42, 4  ;;  %v453_v50 = vshll.u32 %v7157_v24, 16  ;;  %v626_v52 = vshrl.u32 %v7164_v36, 16  ;;  %v7205_v38 = vld [vmem:[%s7015_s17 + $0x90] sm:$0xf] }
  0x38   : > { %6407 = vmatprep.mubr.msk.bf16.mxu0 %vm795_vm3, %v5642_v44  ;;  %v440_v54 = vor.u32 %v439_v47, %v436_v39  ;;  %v629_v55 = vshll.u32 %v7164_v36, 16  ;;  %v635_v57 = vshll.u32 %v7171_v43, 16  ;;  %v639_v59 = vshrl.u32 %v7171_v43, 16  ;;  %10116 = vst [vmem:[#allocation7_spill] sm:$0xff] %v7205_v38  ;;  %v7210_v47 = vld [vmem:[%s7015_s17 + $0x94] sm:$0xf] }
  0x39   : > { %v624_v0 = vsel %vm7059_vm4, %v619_v4, %v623_v28  ;;  %v450_v16 = vor.u32 %v449_v49, %v445_v48  ;;  %v455_v2 = vrot.slane %v453_v50, 5  ;;  %v628_v3 = vrot.slane %v626_v52, 4  ;;  %10117 = vst [vmem:[#allocation8_spill] sm:$0xff] %v7210_v47 }
  0x3a   : > { %v5650_v11 = vcombine.low %v614_v45, %v624_v0  ;;  %v441_v13 = vrot.slane %v440_v54, 4  ;;  %v631_v17 = vrot.slane %v629_v55, 5  ;;  %v637_v18 = vrot.slane %v635_v57, 5 }
  0x3b   : > { %v451_v20 = vrot.slane %v450_v16, 4  ;;  %v641_v22 = vrot.slane %v639_v59, 4  ;;  %v645_v23 = vshll.u32 %v7179_v51, 16  ;;  %v458_v26 = vshrl.u32 %v7187_v60, 16  ;;  %v7219_v16 = vld [vmem:[%s7015_s17 + $0x98] sm:$0x1] }
  0x3c   : > { %6423 = vmatprep.mubr.msk.bf16.mxu1 %vm795_vm3, %v5650_v11  ;;  %v446_v27 = vsel %vm7059_vm4, %v441_v13, %v445_v48  ;;  %v632_v28 = vor.u32 %v631_v17, %v628_v3  ;;  %v461_v34 = vshll.u32 %v7187_v60, 16  ;;  %v467_v37 = vshll.u32 %v7192_v9, 16  ;;  %10118 = vst [vmem:[#allocation9_spill] sm:$0xff] %v7219_v16  ;;  %v7224_v11 = vld [vmem:[%s7015_s17 + $0x3c] sm:$0xf] }
  0x3d   : > { %v456_v39 = vsel %vm7059_vm4, %v451_v20, %v455_v2  ;;  %v642_v42 = vor.u32 %v641_v22, %v637_v18  ;;  %v647_v44 = vrot.slane %v645_v23, 5  ;;  %v460_v45 = vrot.slane %v458_v26, 4  ;;  %v7229_v23 = vld [vmem:[%s7015_s17 + $0x40] sm:$0xf]  ;;  %v1302_v51 = vld [vmem:[%s7015_s17 + $0xc] sm:$0xe] }
  0x3e   : > { %v5643_v48 = vcombine.low %v446_v27, %v456_v39  ;;  %v633_v4 = vrot.slane %v632_v28, 4  ;;  %v463_v49 = vrot.slane %v461_v34, 5  ;;  %v469_v50 = vrot.slane %v467_v37, 5 }
  0x3f   : > { %v643_v52 = vrot.slane %v642_v42, 4  ;;  %v471_v54 = vshrl.u32 %v7192_v9, 16  ;;  %v477_v55 = vshll.u32 %v7200_v33, 16  ;;  %v650_v57 = vshrl.u32 %v7205_v38, 16 }
  0x40   : > { %6408 = vmatmul.mubr.msk.bf16.gmra.mxu0 %vm795_vm3, %v5643_v48  ;;  %v638_v59 = vsel %vm7059_vm4, %v633_v4, %v637_v18  ;;  %v464_v0 = vor.u32 %v463_v49, %v460_v45  ;;  %v653_v2 = vshll.u32 %v7205_v38, 16  ;;  %v659_v3 = vshll.u32 %v7210_v47, 16  ;;  %v7238_v48 = vld [vmem:[%s7015_s17 + $0x44] sm:$0x1] }
  0x41   : > { %v648_v13 = vsel %vm7059_vm4, %v643_v52, %v647_v44  ;;  %v473_v17 = vrot.slane %v471_v54, 4  ;;  %v479_v20 = vrot.slane %v477_v55, 5  ;;  %v652_v22 = vrot.slane %v650_v57, 4  ;;  %v7243_v52 = vld [vmem:[%s7015_s17 + $0x9c] sm:$0xf] }
  0x42   : > { %v5651_v18 = vcombine.low %v638_v59, %v648_v13  ;;  %v465_v26 = vrot.slane %v464_v0, 4  ;;  %v655_v27 = vrot.slane %v653_v2, 5  ;;  %v661_v28 = vrot.slane %v659_v3, 5  ;;  %10119 = vst [vmem:[#allocation10_spill] sm:$0xff] %v7243_v52  ;;  %v7247_v13 = vld [vmem:[%s7015_s17 + $0xa0] sm:$0xf] }
  0x43   : > { %v474_v34 = vor.u32 %v473_v17, %v469_v50  ;;  %v663_v37 = vshrl.u32 %v7210_v47, 16  ;;  %v669_v39 = vshll.u32 %v7219_v16, 16  ;;  %v482_v42 = vshrl.u32 %v7224_v11, 16  ;;  %10120 = vst [vmem:[#allocation11_spill] sm:$0xff] %v7247_v13 }
  0x44   : > { %6424 = vmatmul.mubr.msk.bf16.gmra.mxu1 %vm795_vm3, %v5651_v18  ;;  %v470_v44 = vsel %vm7059_vm4, %v465_v26, %v469_v50  ;;  %v656_v45 = vor.u32 %v655_v27, %v652_v22  ;;  %v485_v4 = vshll.u32 %v7224_v11, 16  ;;  %v491_v49 = vshll.u32 %v7229_v23, 16  ;;  %v7253_v26 = vld [vmem:[%s7015_s17 + $0xa4] sm:$0x1] }
  0x45   : > { %v475_v54 = vrot.slane %v474_v34, 4  ;;  %v665_v55 = vrot.slane %v663_v37, 4  ;;  %v671_v57 = vrot.slane %v669_v39, 5  ;;  %v484_v59 = vrot.slane %v482_v42, 4  ;;  %10121 = vst [vmem:[#allocation12_spill] sm:$0xff] %v7253_v26 }
  0x46   : > { %v657_v0 = vrot.slane %v656_v45, 4  ;;  %v487_v2 = vrot.slane %v485_v4, 5  ;;  %v493_v3 = vrot.slane %v491_v49, 5  ;;  %v495_v50 = vshrl.u32 %v7229_v23, 16  ;;  %v7257_v34 = vld [vmem:[%s7015_s17 + $0x48] sm:$0xf] }
  0x47   : > { %v480_v17 = vsel %vm7059_vm4, %v475_v54, %v479_v20  ;;  %v666_v22 = vor.u32 %v665_v55, %v661_v28  ;;  %v501_v18 = vshll.u32 %v7238_v48, 16  ;;  %v674_v27 = vshrl.u32 %v7243_v52, 16 }
  0x48   : > { %v5644_v37 = vcombine.low %v470_v44, %v480_v17  ;;  %v662_v39 = vsel %vm7059_vm4, %v657_v0, %v661_v28  ;;  %v488_v42 = vor.u32 %v487_v2, %v484_v59  ;;  %v497_v45 = vrot.slane %v495_v50, 4  ;;  %v7266_v17 = vld [vmem:[%s7015_s17 + $0x4c] sm:$0xf]  ;;  %v7272_v2 = vld [vmem:[%s7015_s17 + $0x50] sm:$0x1] }
  0x49   : > { %v667_v4 = vrot.slane %v666_v22, 4  ;;  %v503_v49 = vrot.slane %v501_v18, 5  ;;  %v676_v20 = vrot.slane %v674_v27, 4  ;;  %v677_v54 = vshll.u32 %v7243_v52, 16 }
  0x4a   : > { %6411 = vmatprep.mubr.msk.bf16.mxu0 %vm795_vm3, %v5644_v37  ;;  %v489_v55 = vrot.slane %v488_v42, 4  ;;  %v498_v62 = vor.u32 %v497_v45, %v493_v3  ;;  %v683_v32 = vshll.u32 %v7247_v13, 16  ;;  %v687_v44 = vshrl.u32 %v7247_v13, 16  ;;  %v7278_v42 = vld [vmem:[%s7015_s17 + $0xa8] sm:$0xf] }
  0x4b   : > { %v672_v28 = vsel %vm7059_vm4, %v667_v4, %v671_v57  ;;  %v679_v59 = vrot.slane %v677_v54, 5  ;;  %v693_v0 = vshll.u32 %v7253_v26, 16  ;;  %v506_v50 = vshrl.u32 %v7257_v34, 16  ;;  %10122 = vst [vmem:[#allocation13_spill] sm:$0xff] %v7278_v42 }
  0x4c   : > { %v5652_v22 = vcombine.low %v662_v39, %v672_v28  ;;  %v494_v18 = vsel %vm7059_vm4, %v489_v55, %v493_v3  ;;  %v499_v27 = vrot.slane %v498_v62, 4  ;;  %v685_v37 = vrot.slane %v683_v32, 5 }
  0x4d   : > { %v680_v45 = vor.u32 %v679_v59, %v676_v20  ;;  %v689_v61 = vrot.slane %v687_v44, 4  ;;  %v695_v57 = vrot.slane %v693_v0, 5  ;;  %v508_v4 = vrot.slane %v506_v50, 4  ;;  %v7288_v44 = vld [vmem:[%s7015_s17 + $0xac] sm:$0xf] }
  0x4e   : > { %6427 = vmatprep.mubr.msk.bf16.mxu1 %vm795_vm3, %v5652_v22  ;;  %v504_v54 = vsel %vm7059_vm4, %v499_v27, %v503_v49  ;;  %v509_v39 = vshll.u32 %v7257_v34, 16  ;;  %v515_v28 = vshll.u32 %v7266_v17, 16  ;;  %v519_v62 = vshrl.u32 %v7266_v17, 16  ;;  %10123 = vst [vmem:[#allocation14_spill] sm:$0xff] %v7288_v44  ;;  %v7291_v22 = vld [vmem:[%s7015_s17 + $0xb0] sm:$0x1] }
  0x4f   : > { %v5645_v3 = vcombine.low %v494_v18, %v504_v54  ;;  %v681_v32 = vrot.slane %v680_v45, 4  ;;  %v690_v55 = vor.u32 %v689_v61, %v685_v37  ;;  %v525_v20 = vshll.u32 %v7272_v2, 16  ;;  %10124 = vst [vmem:[#allocation15_spill] sm:$0xff] %v7291_v22 }
  0x50   : > { %v511_v59 = vrot.slane %v509_v39, 5  ;;  %v517_v0 = vrot.slane %v515_v28, 5  ;;  %v521_v50 = vrot.slane %v519_v62, 4  ;;  %v698_v49 = vshrl.u32 %v7278_v42, 16  ;;  %v7300_v62 = vld [vmem:[%s7015_s17 + $0x54] sm:$0xf] }
  0x51   : > { %6412 = vmatmul.mubr.msk.bf16.gmra.mxu0 %vm795_vm3, %v5645_v3  ;;  %v686_v18 = vsel %vm7059_vm4, %v681_v32, %v685_v37  ;;  %v691_v27 = vrot.slane %v690_v55, 4  ;;  %v527_v61 = vrot.slane %v525_v20, 5  ;;  %v701_v45 = vshll.u32 %v7278_v42, 16  ;;  %v7307_v55 = vld [vmem:[%s7015_s17 + $0x58] sm:$0xf] }
  0x52   : > { %v512_v54 = vor.u32 %v511_v59, %v508_v4  ;;  %v522_v56 = vor.u32 %v521_v50, %v517_v0  ;;  %v700_v39 = vrot.slane %v698_v49, 4  ;;  %v707_v28 = vshll.u32 %v7288_v44, 16  ;;  %v7310_v49 = vld [vmem:[%s7015_s17 + $0x5c] sm:$0x1] }
  0x53   : > { %v696_v3 = vsel %vm7059_vm4, %v691_v27, %v695_v57  ;;  %v703_v26 = vrot.slane %v701_v45, 5  ;;  %v711_v37 = vshrl.u32 %v7288_v44, 16  ;;  %v717_v32 = vshll.u32 %v7291_v22, 16  ;;  %v1301_v22 = vld [vmem:[%s7015_s17] sm:$0xe] }
  0x54   : > { %v5653_v4 = vcombine.low %v686_v18, %v696_v3  ;;  %v513_v20 = vrot.slane %v512_v54, 4  ;;  %v523_v59 = vrot.slane %v522_v56, 4  ;;  %v709_v50 = vrot.slane %v707_v28, 5  ;;  %v7321_v54 = vld [vmem:[%s7015_s17 + $0xb4] sm:$0xf] }
  0x55   : > { %v704_v42 = vor.u32 %v703_v26, %v700_v39  ;;  %v713_v52 = vrot.slane %v711_v37, 4  ;;  %v719_v13 = vrot.slane %v717_v32, 5  ;;  %v530_v57 = vshrl.u32 %v7300_v62, 16  ;;  %10125 = vst [vmem:[#allocation16_spill] sm:$0xff] %v7321_v54  ;;  %v7324_v37 = vld [vmem:[%s7015_s17 + $0xb8] sm:$0xf] }
  0x56   : > { %6428 = vmatmul.mubr.msk.bf16.gmra.mxu1 %vm795_vm3, %v5653_v4  ;;  %v518_v27 = vsel %vm7059_vm4, %v513_v20, %v517_v0  ;;  %v528_v18 = vsel %vm7059_vm4, %v523_v59, %v527_v61  ;;  %v533_v56 = vshll.u32 %v7300_v62, 16  ;;  %v539_v45 = vshll.u32 %v7307_v55, 16  ;;  %v7329_v61 = vld [vmem:[%s7015_s17 + $0xbc] sm:$0x1] }
  0x57   : > { %v5646_v26 = vcombine.low %v518_v27, %v528_v18  ;;  %v705_v39 = vrot.slane %v704_v42, 4  ;;  %v714_v28 = vor.u32 %v713_v52, %v709_v50  ;;  %v532_v3 = vrot.slane %v530_v57, 4 }
  0x58   : > { %v535_v32 = vrot.slane %v533_v56, 5  ;;  %v541_v4 = vrot.slane %v539_v45, 5  ;;  %v543_v0 = vshrl.u32 %v7307_v55, 16  ;;  %v549_v20 = vshll.u32 %v7310_v49, 16 }
  0x59   : > { %6415 = vmatprep.mubr.msk.bf16.mxu0 %vm795_vm3, %v5646_v26  ;;  %v710_v59 = vsel %vm7059_vm4, %v705_v39, %v709_v50  ;;  %v715_v27 = vrot.slane %v714_v28, 4  ;;  %v722_v52 = vshrl.u32 %v7321_v54, 16  ;;  %v725_v42 = vshll.u32 %v7321_v54, 16 }
  0x5a   : > { %v536_v57 = vor.u32 %v535_v32, %v532_v3  ;;  %v545_v18 = vrot.slane %v543_v0, 4  ;;  %v551_v56 = vrot.slane %v549_v20, 5  ;;  %v731_v45 = vshll.u32 %v7324_v37, 16 }
  0x5b   : > { %v720_v44 = vsel %vm7059_vm4, %v715_v27, %v719_v13  ;;  %v724_v16 = vrot.slane %v722_v52, 4  ;;  %v727_v26 = vrot.slane %v725_v42, 5  ;;  %v735_v38 = vshrl.u32 %v7324_v37, 16 }
  0x5c   : > { %v5654_v50 = vcombine.low %v710_v59, %v720_v44  ;;  %v537_v39 = vrot.slane %v536_v57, 4  ;;  %v546_v28 = vor.u32 %v545_v18, %v541_v4  ;;  %v733_v47 = vrot.slane %v731_v45, 5  ;;  %v1303_v57 = vld [vmem:[%s7015_s17 + $0x18] sm:$0xe] }
  0x5d   : > { %v728_v54 = vor.u32 %v727_v26, %v724_v16  ;;  %v737_v3 = vrot.slane %v735_v38, 4  ;;  %v741_v32 = vshll.u32 %v7329_v61, 16  ;;  %v5704_v13 = vrot.slane %v1301_v22, 9 }
  0x5e   : > { %6431 = vmatprep.mubr.msk.bf16.mxu1 %vm795_vm3, %v5654_v50  ;;  %v542_v44 = vsel %vm7059_vm4, %v537_v39, %v541_v4  ;;  %v547_v20 = vrot.slane %v546_v28, 4  ;;  %v1354_v59 = vrot.slane %v7024_v6, 5  ;;  %v5673_v38 = vcombine.low %v7052_v29, %v7055_v30 }
  0x5f   : > { %v729_v16 = vrot.slane %v728_v54, 4  ;;  %v738_v27 = vor.u32 %v737_v3, %v733_v47  ;;  %v743_v52 = vrot.slane %v741_v32, 5  ;;  %v5705_v42 = vrot.slane %v1302_v51, 9 }
  0x60   : > { %v552_v18 = vsel %vm7059_vm4, %v547_v20, %v551_v56  ;;  %v1355_v22 = vsel %vm7345_vm7, %v5704_v13, %v1354_v59  ;;  %v1356_v45 = vrot.slane %v1354_v59, 4  ;;  %v10128_v4 = vrot.slane %v7055_v30, 5 }
  0x61   : > { %v5647_v50 = vcombine.low %v542_v44, %v552_v18  ;;  %v734_v54 = vsel %vm7059_vm4, %v729_v16, %v733_v47  ;;  %v739_v39 = vrot.slane %v738_v27, 4  ;;  %v5672_v51 = vcombine.low %v7021_v5, %v7024_v6  ;;  %v1304_v27 = vld [vmem:[%s7015_s17 + $0x24] sm:$0xe] }
  0x62   : > { %v1363_v26 = vrot.slane %v10128_v4, 4  ;;  %v10129_v28 = vrot.slane %v7027_v7, 5  ;;  %v10130_v3 = vmov %v10128_v4  ;;  %v5674_v13 = vcombine.low %v7094_v8, %v7101_v21  ;;  %v1306_v4 = vld [vmem:[%s7015_s17 + $0x3c] sm:$0xe] }
  0x63   : > { %v1362_v32 = vsel %vm7345_vm7, %v5705_v42, %v10130_v3  ;;  %v5706_v44 = vrot.slane %v1303_v57, 9  ;;  %6416 = vmatmul.mubr.msk.bf16.gmra.mxu0 %vm795_vm3, %v5647_v50  ;;  %v744_v47 = vsel %vm7059_vm4, %v739_v39, %v743_v52  ;;  %v10131_v6 = vrot.slane %v7065_v41, 5  ;;  %v1305_v42 = vld [vmem:[%s7015_s17 + $0x30] sm:$0xe]  ;;  %v1307_v39 = vld [vmem:[%s7015_s17 + $0x48] sm:$0xe] }
  0x64   : > { %v1358_v56 = vsel %vm7345_vm7, %v1356_v45, %v10129_v28  ;;  %v1368_v20 = vrot.slane %v7101_v21, 5  ;;  %v5655_v59 = vcombine.low %v734_v54, %v744_v47  ;;  %v1371_v16 = vrot.slane %v7107_v25, 5  ;;  %v1308_v47 = vld [vmem:[%s7015_s17 + $0x54] sm:$0xe]  ;;  %v7640_v21 = vld [vmem:[%s7015_s17 + $0x2c] sm:$0x1] }
  0x65   : > { %v5721_v5 = vcombine.low %v1355_v22, %v1358_v56  ;;  %v1365_v7 = vsel %vm7345_vm7, %v1363_v26, %v10131_v6  ;;  %v1922_v52 = vsel %vm844_vm0, %v7152_v19, 0  ;;  %v1375_v18 = vrot.slane %v7146_v10, 5 }
  0x66   : > { %v1369_v41 = vsel %vm7345_vm7, %v5706_v44, %v1368_v20  ;;  %v1370_v57 = vrot.slane %v1368_v20, 4  ;;  %6432 = vmatmul.mubr.msk.bf16.gmra.mxu1 %vm795_vm3, %v5655_v59  ;;  %v5722_v22 = vcombine.low %v1362_v32, %v1365_v7  ;;  %v2648_v25 = vsel %vm844_vm0, %v7120_v40, 0 }
  0x67   : > { %6471 = vmatprep.mubr.msk.bf16.mxu0 %vm795_vm3, %v5721_v5  ;;  %v1382_v45 = vrot.slane %v7192_v9, 5  ;;  %6437 = vmatprep.mubr.msk.bf16.mxu1 %vm795_vm3, %v5672_v51  ;;  %v5707_v26 = vrot.slane %v1304_v27, 9  ;;  %v1378_v50 = vrot.slane %v7157_v24, 5  ;;  %v5708_v54 = vrot.slane %v1305_v42, 9  ;;  %v7412_v24 = vld [vmem:[%s10058_s1 + $0xc] sm:$0x3] }
  0x68   : > { %v1372_v19 = vsel %vm7345_vm7, %v1370_v57, %v1371_v16  ;;  %v1377_v56 = vrot.slane %v1375_v18, 4  ;;  %v1385_v32 = vrot.slane %v7200_v33, 5  ;;  %v5709_v44 = vrot.slane %v1306_v4, 9 }
  0x69   : > { %v5723_v28 = vcombine.low %v1369_v41, %v1372_v19  ;;  %v1384_v3 = vrot.slane %v1382_v45, 4  ;;  %v1389_v40 = vrot.slane %v7229_v23, 5  ;;  %v1413_v5 = vrot.slane %v7041_v15, 5 }
  0x6a   : > { %v1392_v51 = vrot.slane %v7238_v48, 5  ;;  %v5710_v6 = vrot.slane %v1307_v39, 9  ;;  %v1396_v7 = vrot.slane %v7266_v17, 5  ;;  %v5675_v33 = vcombine.low %v7138_v1, %v7146_v10  ;;  %v1309_v1 = vld [vmem:[%s7015_s17 + $0x60] sm:$0xe] }
  0x6b   : > { %6472 = vmatmul.mubr.msk.bf16.vlgmr.msra.gmra.mxu0 %vm795_vm3, %v5722_v22  ;;  %v1376_v20 = vsel %vm7345_vm7, %v5707_v26, %v1375_v18  ;;  %v1391_v59 = vrot.slane %v1389_v40, 4  ;;  %v1399_v16 = vrot.slane %v7272_v2, 5  ;;  %v1379_v48 = vsel %vm7345_vm7, %v1377_v56, %v1378_v50  ;;  %v7440_v22 = vld [vmem:[%s10058_s1 + $0xa] sm:$0x3]  ;;  %v7465_v50 = vld [vmem:[%s7015_s17 + $0x6c] sm:$0xe] }
  0x6c   : > { %6538 = vmatpush3.bf16.msra.mxu0 %v2648_v25  ;;  %6475 = vmatprep.mubr.msk.bf16.mxu0 %vm795_vm3, %v5723_v28  ;;  %v1383_v27 = vsel %vm7345_vm7, %v5708_v54, %v1382_v45  ;;  %v1386_v42 = vsel %vm7345_vm7, %v1384_v3, %v1385_v32  ;;  %v1398_v41 = vrot.slane %v1396_v7, 4  ;;  %v7430_v10 = vsel %vm7345_vm7, %v5709_v44, %v1389_v40  ;;  %v1312_v39 = vld [vmem:[%s7015_s17 + $0x84] sm:$0xe]  ;;  %v7494_v44 = vld [vmem:[%s7015_s17 + $0x78] sm:$0xe] }
  0x6d   : > { %v7434_v2 = vsel %vm7345_vm7, %v5710_v6, %v1396_v7  ;;  %v5711_v57 = vrot.slane %v1308_v47, 9  ;;  %v1403_v18 = vrot.slane %v7307_v55, 5  ;;  %6716 = vmatprep.subr.msk.bf16.mxu0 %vm844_vm0, %v7412_v24  ;;  %v7450_v25 = vsel %vm7345_vm7, %v1391_v59, %v1392_v51  ;;  %v1313_v40 = vld [vmem:[%s7015_s17 + $0x90] sm:$0xe] }
  0x6e   : > { %6438 = vmatmul.mubr.msk.bf16.vlgmr.msra.gmra.mxu1 %vm795_vm3, %v5673_v38  ;;  %v7454_v45 = vsel %vm7345_vm7, %v1398_v41, %v1399_v16  ;;  %v1406_v4 = vrot.slane %v7310_v49, 5  ;;  %v1410_v19 = vrot.slane %v7038_v14, 5  ;;  %v5724_v29 = vcombine.low %v1376_v20, %v1379_v48  ;;  %v10132_v48 = vld [vmem:[#allocation6_spill] sm:$0xff] }
  0x6f   : > { %6504 = vmatpush3.bf16.msra.mxu1 %v1922_v52  ;;  %6441 = vmatprep.mubr.msk.bf16.mxu1 %vm795_vm3, %v5674_v13  ;;  %v5676_v30 = vcombine.low %v7187_v60, %v7192_v9  ;;  %v1405_v38 = vrot.slane %v1403_v18, 4  ;;  %v5712_v26 = vrot.slane %v1309_v1, 9  ;;  %v5725_v49 = vcombine.low %v1383_v27, %v1386_v42  ;;  %v1314_v42 = vld [vmem:[%s7015_s17 + $0x9c] sm:$0xe] }
  0x70   : > { %v5677_v52 = vcombine.low %v7224_v11, %v7229_v23  ;;  %v5678_v8 = vcombine.low %v7257_v34, %v7266_v17  ;;  %6715 = vmatprep.subr.msk.bf16.mxu1 %vm844_vm0, %v7440_v22  ;;  %v5726_v60 = vcombine.low %v7430_v10, %v7450_v25  ;;  %v5727_v9 = vcombine.low %v7434_v2, %v7454_v45  ;;  %v10133_v10 = vld [vmem:[#allocation8_spill] sm:$0xff]  ;;  %v10134_v2 = vld [vmem:[#allocation7_spill] sm:$0xff] }
  0x71   : > { %v1412_v54 = vrot.slane %v1410_v19, 4  ;;  %v7484_v28 = vsel %vm7345_vm7, %v5711_v57, %v1403_v18  ;;  %v7488_v56 = vsel %vm7345_vm7, %v1405_v38, %v1406_v4  ;;  %v5713_v32 = vrot.slane %v7465_v50, 9  ;;  %v1315_v18 = vld [vmem:[%s7015_s17 + $0xa8] sm:$0xe]  ;;  %v10136_v38 = vld [vmem:[#allocation11_spill] sm:$0xff] }
  0x72   : > { %v7500_v47 = vsel %vm7345_vm7, %v5712_v26, %v1410_v19  ;;  %v1417_v51 = vrot.slane %v7080_v58, 5  ;;  %v1420_v6 = vrot.slane %v7088_v63, 5  ;;  %v5715_v59 = vrot.slane %v1312_v39, 9  ;;  %v10135_v19 = vld [vmem:[#allocation9_spill] sm:$0xff]  ;;  %v10137_v26 = vld [vmem:[#allocation10_spill] sm:$0xff] }
  0x73   : > { %6476 = vmatmul.mubr.msk.bf16.gmra.mxu0 %vm795_vm3, %v5724_v29  ;;  %v1431_v16 = vrot.slane %v7171_v43, 5  ;;  %v1434_v27 = vrot.slane %v10132_v48, 5  ;;  %v5728_v41 = vcombine.low %v7484_v28, %v7488_v56  ;;  %v7518_v63 = vsel %vm7345_vm7, %v1412_v54, %v1413_v5  ;;  %v10139_v48 = vld [vmem:[#allocation14_spill] sm:$0xff] }
  0x74   : > { %6479 = vmatprep.mubr.msk.bf16.mxu0 %vm795_vm3, %v5725_v49  ;;  %v5714_v1 = vrot.slane %v7494_v44, 9  ;;  %v5716_v4 = vrot.slane %v1313_v40, 9  ;;  %v1438_v15 = vrot.slane %v10133_v10, 5  ;;  %v1419_v5 = vrot.slane %v1417_v51, 4  ;;  %v5818_v57 = vld [vmem:[%s7015_s17 + $0xc] sm:$0xf] }
  0x75   : > { %v7527_v25 = vsel %vm7345_vm7, %v5715_v59, %v1431_v16  ;;  %v1433_v45 = vrot.slane %v1431_v16, 4  ;;  %v1441_v29 = vrot.slane %v10135_v19, 5  ;;  %v5717_v49 = vrot.slane %v1314_v42, 9  ;;  %v10138_v59 = vld [vmem:[#allocation12_spill] sm:$0xff]  ;;  %v10140_v42 = vld [vmem:[#allocation13_spill] sm:$0xff] }
  0x76   : > { %6442 = vmatmul.mubr.msk.bf16.gmra.mxu1 %vm795_vm3, %v5675_v33  ;;  %v1424_v33 = vrot.slane %v7125_v46, 5  ;;  %v7541_v39 = vsel %vm7345_vm7, %v5716_v4, %v1438_v15  ;;  %v1440_v44 = vrot.slane %v1438_v15, 4  ;;  %v1445_v40 = vrot.slane %v10136_v38, 5  ;;  %v10141_v15 = vld [vmem:[#allocation15_spill] sm:$0xff] }
  0x77   : > { %6445 = vmatprep.mubr.msk.bf16.mxu1 %vm795_vm3, %v5676_v30  ;;  %v7537_v54 = vsel %vm7345_vm7, %v1433_v45, %v1434_v27  ;;  %v1448_v16 = vrot.slane %v10138_v59, 5  ;;  %v5718_v45 = vrot.slane %v1315_v18, 9  ;;  %v1452_v4 = vrot.slane %v10139_v48, 5 }
  0x78   : > { %v7551_v27 = vsel %vm7345_vm7, %v1440_v44, %v1441_v29  ;;  %v1455_v50 = vrot.slane %v10141_v15, 5  ;;  %v7561_v19 = vsel %vm7345_vm7, %v5717_v49, %v1445_v40  ;;  %v1447_v7 = vrot.slane %v1445_v40, 4  ;;  %v10142_v29 = vld [vmem:[#allocation16_spill] sm:$0xff]  ;;  %v10143_v15 = vld [vmem:[#allocation5_spill] sm:$0xff]  ;;  %v7576_v49 = vld [vmem:[%s7015_s17 + $0x10] sm:$0xf] }
  0x79   : > { %v7568_v18 = vsel %vm7345_vm7, %v5713_v32, %v1417_v51  ;;  %v7573_v59 = vsel %vm7345_vm7, %v5718_v45, %v1452_v4  ;;  %v1454_v30 = vrot.slane %v1452_v4, 4  ;;  %v5821_v40 = vld [vmem:[%s7015_s17 + $0x18] sm:$0xf]  ;;  %v1426_v20 = vrot.slane %v1424_v33, 4 }
  0x7a   : > { %v2166_v44 = vshrl.u32 %v5818_v57, 16  ;;  %v2169_v32 = vshll.u32 %v5818_v57, 16  ;;  %v5729_v51 = vcombine.low %v7500_v47, %v7518_v63  ;;  %v7591_v45 = vsel %vm7345_vm7, %v1419_v5, %v1420_v6  ;;  %v1316_v57 = vld [vmem:[%s7015_s17 + $0xb4] sm:$0xe]  ;;  %v7612_v47 = vld [vmem:[%s7015_s17 + $0x14] sm:$0x1] }
  0x7b   : > { %6480 = vmatmul.mubr.msk.bf16.gmra.mxu0 %vm795_vm3, %v5726_v60  ;;  %v1427_v60 = vrot.slane %v10143_v15, 5  ;;  %v7606_v11 = vsel %vm7345_vm7, %v5714_v1, %v1424_v33  ;;  %v2175_v6 = vshll.u32 %v7576_v49, 16  ;;  %v5822_v63 = vld [vmem:[%s7015_s17 + $0x1c] sm:$0xf]  ;;  %v2179_v17 = vshrl.u32 %v7576_v49, 16 }
  0x7c   : > { %6483 = vmatprep.mubr.msk.bf16.mxu0 %vm795_vm3, %v5727_v9  ;;  %v7581_v9 = vsel %vm7345_vm7, %v1447_v7, %v1448_v16  ;;  %v7597_v7 = vsel %vm7345_vm7, %v1454_v30, %v1455_v50  ;;  %v2168_v5 = vrot.slane %v2166_v44, 4  ;;  %v2171_v34 = vrot.slane %v2169_v32, 5  ;;  %v5824_v15 = vld [vmem:[%s7015_s17 + $0x24] sm:$0xf]  ;;  %v7625_v44 = vld [vmem:[%s7015_s17 + $0x28] sm:$0xf] }
  0x7d   : > { %v2190_v50 = vshrl.u32 %v5821_v40, 16  ;;  %v1428_v1 = vsel %vm7345_vm7, %v1426_v20, %v1427_v60  ;;  %v5719_v33 = vrot.slane %v1316_v57, 9  ;;  %v7620_v30 = vrot.slane %v2175_v6, 5 }
  0x7e   : > { %6446 = vmatmul.mubr.msk.bf16.gmra.mxu1 %vm795_vm3, %v5677_v52  ;;  %v1459_v52 = vrot.slane %v7324_v37, 5  ;;  %v2193_v16 = vshll.u32 %v5821_v40, 16  ;;  %v1462_v23 = vrot.slane %v7329_v61, 5  ;;  %v2181_v4 = vrot.slane %v2179_v17, 4 }
  0x7f   : > { %6449 = vmatprep.mubr.msk.bf16.mxu1 %vm795_vm3, %v5678_v8  ;;  %v5823_v8 = vld [vmem:[%s7015_s17 + $0x20] sm:$0x1]  ;;  %v2192_v3 = vrot.slane %v2190_v50, 4  ;;  %v2199_v13 = vshll.u32 %v5822_v63, 16  ;;  %v2185_v20 = vshll.u32 %v7612_v47, 16  ;;  %v2203_v57 = vshrl.u32 %v5822_v63, 16 }
  0x80   : > { %v1461_v32 = vrot.slane %v1459_v52, 4  ;;  %v2195_v60 = vrot.slane %v2193_v16, 5  ;;  %v5730_v61 = vcombine.low %v7568_v18, %v7591_v45  ;;  %v5731_v40 = vcombine.low %v7606_v11, %v1428_v1 }
  0x81   : > { %v2172_v6 = vor.u32 %v2171_v34, %v2168_v5  ;;  %v7636_v17 = vrot.slane %v2199_v13, 5  ;;  %v2182_v28 = vor.u32 %v2181_v4, %v7620_v30  ;;  %v2209_v50 = vshll.u32 %v5823_v8, 16  ;;  %v7663_v5 = vld [vmem:[%s7015_s17 + $0x34] sm:$0xf] }
  0x82   : > { %v2196_v56 = vor.u32 %v2195_v60, %v2192_v3  ;;  %v7648_v18 = vsel %vm7345_vm7, %v5719_v33, %v1459_v52  ;;  %v2214_v13 = vshrl.u32 %v5824_v15, 16  ;;  %v2217_v45 = vshll.u32 %v5824_v15, 16  ;;  %v5827_v52 = vld [vmem:[%s7015_s17 + $0x30] sm:$0xf] }
  0x83   : > { %6484 = vmatmul.mubr.msk.bf16.gmra.mxu0 %vm795_vm3, %v5728_v41  ;;  %v2205_v41 = vrot.slane %v2203_v57, 4  ;;  %v2223_v11 = vshll.u32 %v7625_v44, 16  ;;  %v10145_v3 = vcombine.low %v7034_v12, %v7038_v14  ;;  %v7657_v4 = vsel %vm7345_vm7, %v1461_v32, %v1462_v23 }
  0x84   : > { %6487 = vmatprep.mubr.msk.bf16.mxu0 %vm795_vm3, %v5729_v51  ;;  %v10144_v51 = vcombine.low %v7300_v62, %v7307_v55  ;;  %v2187_v62 = vrot.slane %v2185_v20, 5  ;;  %v2227_v63 = vshrl.u32 %v7625_v44, 16  ;;  %v2173_v34 = vrot.slane %v2172_v6, 4 }
  0x85   : > { %v2206_v55 = vor.u32 %v2205_v41, %v7636_v17  ;;  %v2216_v8 = vrot.slane %v2214_v13, 4  ;;  %v2219_v1 = vrot.slane %v2217_v45, 5  ;;  %v7665_v33 = vrot.slane %v2223_v11, 5  ;;  %v7671_v41 = vld [vmem:[%s7015_s17 + $0x38] sm:$0x1] }
  0x86   : > { %6450 = vmatmul.mubr.msk.bf16.gmra.mxu1 %vm795_vm3, %v10144_v51  ;;  %v2183_v12 = vrot.slane %v2182_v28, 4  ;;  %v2197_v14 = vrot.slane %v2196_v56, 4  ;;  %v2211_v16 = vrot.slane %v2209_v50, 5  ;;  %v2229_v23 = vrot.slane %v2227_v63, 4  ;;  %v5830_v13 = vld [vmem:[%s7015_s17 + $0x3c] sm:$0xf] }
  0x87   : > { %6453 = vmatprep.mubr.msk.bf16.mxu1 %vm795_vm3, %v10145_v3  ;;  %v2207_v15 = vrot.slane %v2206_v55, 4  ;;  %v2233_v32 = vshll.u32 %v7640_v21, 16  ;;  %v2238_v20 = vshrl.u32 %v5827_v52, 16  ;;  %v2241_v60 = vshll.u32 %v5827_v52, 16 }
  0x88   : > { %v2220_v57 = vor.u32 %v2219_v1, %v2216_v8  ;;  %v2230_v6 = vor.u32 %v2229_v23, %v7665_v33  ;;  %v2247_v28 = vshll.u32 %v7663_v5, 16  ;;  %v2251_v56 = vshrl.u32 %v7663_v5, 16  ;;  %v5833_v8 = vld [vmem:[%s7015_s17 + $0x48] sm:$0xf]  ;;  %v7698_v1 = vld [vmem:[%s7015_s17 + $0x4c] sm:$0xf] }
  0x89   : > { %v2240_v50 = vrot.slane %v2238_v20, 4  ;;  %v2243_v51 = vrot.slane %v2241_v60, 5  ;;  %v10146_v3 = vcombine.low %v7076_v53, %v7080_v58  ;;  %v5736_v55 = vcombine.low %v7648_v18, %v7657_v4 }
  0x8a   : > { %v7677_v45 = vrot.slane %v2247_v28, 5  ;;  %v2253_v11 = vrot.slane %v2251_v56, 4  ;;  %v2188_v63 = vsel %vm7059_vm4, %v2183_v12, %v2187_v62  ;;  %v2202_v52 = vsel %vm7059_vm4, %v2197_v14, %v7636_v17 }
  0x8b   : > { %6488 = vmatmul.mubr.msk.bf16.gmra.mxu0 %vm795_vm3, %v5730_v61  ;;  %v7680_v61 = vld [vmem:[%s7015_s17 + $0x40] sm:$0xf]  ;;  %v10147_v53 = vcombine.low %v7114_v35, %v7125_v46  ;;  %v2212_v58 = vsel %vm7059_vm4, %v2207_v15, %v2211_v16  ;;  %v2221_v23 = vrot.slane %v2220_v57, 4  ;;  %v2244_v20 = vor.u32 %v2243_v51, %v2240_v50  ;;  %v7732_v50 = vld [vmem:[%s7015_s17 + $0x44] sm:$0x1] }
  0x8c   : > { %6491 = vmatprep.mubr.msk.bf16.mxu0 %vm795_vm3, %v5731_v40  ;;  %v2178_v40 = vsel %vm7059_vm4, %v2173_v34, %v7620_v30  ;;  %v2231_v30 = vrot.slane %v2230_v6, 4  ;;  %v2235_v34 = vrot.slane %v2233_v32, 5  ;;  %v2257_v62 = vshll.u32 %v7671_v41, 16  ;;  %v5836_v51 = vld [vmem:[%s7015_s17 + $0x54] sm:$0xf] }
  0x8d   : > { %v2262_v12 = vshrl.u32 %v5830_v13, 16  ;;  %v2265_v17 = vshll.u32 %v5830_v13, 16  ;;  %v7709_v14 = vsel %vm844_vm0, %v7440_v22, 0  ;;  %v2254_v35 = vor.u32 %v2253_v11, %v7677_v45 }
  0x8e   : > { %6454 = vmatmul.mubr.msk.bf16.gmra.mxu1 %vm795_vm3, %v10146_v3  ;;  %v2271_v46 = vshll.u32 %v7680_v61, 16  ;;  %v2275_v16 = vshrl.u32 %v7680_v61, 16  ;;  %v7714_v15 = vcombine.low %v2178_v40, %v2188_v63  ;;  %v7718_v32 = vsel %vm844_vm0, %v7412_v24, 0  ;;  %v7741_v40 = vld [vmem:[%s7015_s17 + $0x58] sm:$0xf] }
  0x8f   : > { %6457 = vmatprep.mubr.msk.bf16.mxu1 %vm795_vm3, %v10147_v53  ;;  %v2286_v60 = vshrl.u32 %v5833_v8, 16  ;;  %v2289_v57 = vshll.u32 %v5833_v8, 16  ;;  %v10148_v6 = vcombine.low %v7527_v25, %v7537_v54  ;;  %v7724_v22 = vcombine.low %v2202_v52, %v2212_v58  ;;  %v7746_v8 = vld [vmem:[%s7015_s17 + $0x50] sm:$0x1] }
  0x90   : > { %v2226_v28 = vsel %vm7059_vm4, %v2221_v23, %v7665_v33  ;;  %v2236_v56 = vsel %vm7059_vm4, %v2231_v30, %v2235_v34  ;;  %v2295_v24 = vshll.u32 %v7698_v1, 16  ;;  %v10149_v25 = vcombine.low %v7541_v39, %v7551_v27  ;;  %v5839_v34 = vld [vmem:[%s7015_s17 + $0x60] sm:$0xf] }
  0x91   : > { %v2245_v54 = vrot.slane %v2244_v20, 4  ;;  %v2259_v13 = vrot.slane %v2257_v62, 5  ;;  %v2264_v11 = vrot.slane %v2262_v12, 4  ;;  %v2267_v3 = vrot.slane %v2265_v17, 5 }
  0x92   : > { %v2255_v33 = vrot.slane %v2254_v35, 4  ;;  %v7743_v63 = vrot.slane %v2271_v46, 5  ;;  %v2277_v52 = vrot.slane %v2275_v16, 4  ;;  %v2299_v53 = vshrl.u32 %v7698_v1, 16  ;;  %v7763_v35 = vld [vmem:[%s7015_s17 + $0x5c] sm:$0x1] }
  0x93   : > { %6492 = vmatmul.mubr.msk.bf16.gmra.mxu0 %vm795_vm3, %v10148_v6  ;;  %v10150_v39 = vcombine.low %v7164_v36, %v7171_v43  ;;  %v2288_v27 = vrot.slane %v2286_v60, 4  ;;  %v2291_v58 = vrot.slane %v2289_v57, 5  ;;  %v2310_v23 = vshrl.u32 %v5836_v51, 16 }
  0x94   : > { %6495 = vmatprep.mubr.msk.bf16.mxu0 %vm795_vm3, %v10149_v25  ;;  %v2313_v30 = vshll.u32 %v5836_v51, 16  ;;  %v10151_v20 = vcombine.low %v10134_v2, %v10133_v10  ;;  %v7758_v62 = vcombine.low %v2226_v28, %v2236_v56  ;;  %v7760_v12 = vrot.slane %v2295_v24, 5  ;;  %v7776_v28 = vld [vmem:[%s7015_s17 + $0x64] sm:$0xf] }
  0x95   : > { %v2301_v17 = vrot.slane %v2299_v53, 4  ;;  %v2319_v36 = vshll.u32 %v7741_v40, 16  ;;  %v2281_v43 = vshll.u32 %v7732_v50, 16  ;;  %v2312_v46 = vrot.slane %v2310_v23, 4 }
  0x96   : > { %6458 = vmatmul.mubr.msk.bf16.gmra.mxu1 %vm795_vm3, %v10150_v39  ;;  %v2315_v16 = vrot.slane %v2313_v30, 5  ;;  %v2323_v60 = vshrl.u32 %v7741_v40, 16  ;;  %v2250_v10 = vsel %vm7059_vm4, %v2245_v54, %v7677_v45  ;;  %v2260_v2 = vsel %vm7059_vm4, %v2255_v33, %v2259_v13  ;;  %v7798_v30 = vld [vmem:[%s7015_s17 + $0x68] sm:$0x1] }
  0x97   : > { %6461 = vmatprep.mubr.msk.bf16.mxu1 %vm795_vm3, %v10151_v20  ;;  %v2268_v57 = vor.u32 %v2267_v3, %v2264_v11  ;;  %v7773_v6 = vrot.slane %v2319_v36, 5  ;;  %v2278_v56 = vor.u32 %v2277_v52, %v7743_v63  ;;  %v2292_v24 = vor.u32 %v2291_v58, %v2288_v27  ;;  %v5842_v3 = vld [vmem:[%s7015_s17 + $0x6c] sm:$0xf]  ;;  %v7795_v27 = vld [vmem:[%s7015_s17 + $0x70] sm:$0xf] }
  0x98   : > { %v2305_v51 = vshll.u32 %v7746_v8, 16  ;;  %v2325_v25 = vrot.slane %v2323_v60, 4  ;;  %v10152_v53 = vcombine.low %v7561_v19, %v7581_v9  ;;  %v2302_v45 = vor.u32 %v2301_v17, %v7760_v12 }
  0x99   : > { %v2316_v54 = vor.u32 %v2315_v16, %v2312_v46  ;;  %v2334_v13 = vshrl.u32 %v5839_v34, 16  ;;  %v2337_v11 = vshll.u32 %v5839_v34, 16  ;;  %v10153_v33 = vcombine.low %v7573_v59, %v7597_v7  ;;  %v5845_v16 = vld [vmem:[%s7015_s17 + $0x78] sm:$0xf] }
  0x9a   : > { %v2326_v52 = vor.u32 %v2325_v25, %v7773_v6  ;;  %v2329_v39 = vshll.u32 %v7763_v35, 16  ;;  %v2343_v19 = vshll.u32 %v7776_v28, 16  ;;  %v2347_v9 = vshrl.u32 %v7776_v28, 16 }
  0x9b   : > { %6496 = vmatmul.mubr.msk.bf16.gmra.mxu0 %vm795_vm3, %v10152_v53  ;;  %v2269_v58 = vrot.slane %v2268_v57, 4  ;;  %v2283_v23 = vrot.slane %v2281_v43, 5  ;;  %v2336_v34 = vrot.slane %v2334_v13, 4  ;;  %v2339_v20 = vrot.slane %v2337_v11, 5 }
  0x9c   : > { %6499 = vmatprep.mubr.msk.bf16.mxu0 %vm795_vm3, %v10153_v33  ;;  %v10154_v59 = vcombine.low %v10137_v26, %v10136_v38  ;;  %v7804_v7 = vcombine.low %v2250_v10, %v2260_v2  ;;  %v2279_v17 = vrot.slane %v2278_v56, 4  ;;  %v2293_v36 = vrot.slane %v2292_v24, 4  ;;  %v7814_v2 = vld [vmem:[%s7015_s17 + $0x7c] sm:$0xf] }
  0x9d   : > { %v7806_v46 = vrot.slane %v2343_v19, 5  ;;  %v10155_v43 = vcombine.low %v10140_v42, %v10139_v48  ;;  %v2303_v60 = vrot.slane %v2302_v45, 4  ;;  %v2307_v57 = vrot.slane %v2305_v51, 5  ;;  %10156 = vst [vmem:[#allocation6_spill] sm:$0xff] %v7814_v2  ;;  %v5848_v19 = vld [vmem:[%s7015_s17 + $0x84] sm:$0xf] }
  0x9e   : > { %6462 = vmatmul.mubr.msk.bf16.gmra.mxu1 %vm795_vm3, %v10154_v59  ;;  %v2317_v25 = vrot.slane %v2316_v54, 4  ;;  %v2349_v38 = vrot.slane %v2347_v9, 4  ;;  %v2327_v26 = vrot.slane %v2326_v52, 4  ;;  %v2331_v53 = vrot.slane %v2329_v39, 5 }
  0x9f   : > { %6465 = vmatprep.mubr.msk.bf16.mxu1 %vm795_vm3, %v10155_v43  ;;  %v2340_v13 = vor.u32 %v2339_v20, %v2336_v34  ;;  %v2358_v10 = vshrl.u32 %v5842_v3, 16  ;;  %v2274_v56 = vsel %vm7059_vm4, %v2269_v58, %v7743_v63  ;;  %v2361_v24 = vshll.u32 %v5842_v3, 16  ;;  %v6793_v63 = vld [vmem:[%s7015_s17 + $0xc] sm:$0xff]   ;;  %v7848_v34 = vld [vmem:[%s7015_s17 + $0x88] sm:$0xf] }
  0xa0   : > { %v2367_v48 = vshll.u32 %v7795_v27, 16  ;;  %v2371_v42 = vshrl.u32 %v7795_v27, 16  ;;  %v2284_v51 = vsel %vm7059_vm4, %v2279_v17, %v2283_v23  ;;  %v2298_v45 = vsel %vm7059_vm4, %v2293_v36, %v7760_v12  ;;  %10157 = vst [vmem:[#allocation8_spill] sm:$0xff] %v7848_v34  ;;  %v7857_v36 = vld [vmem:[%s7015_s17 + $0x74] sm:$0x1] }
  0xa1   : > { %v2350_v54 = vor.u32 %v2349_v38, %v7806_v46  ;;  %v2353_v11 = vshll.u32 %v7798_v30, 16  ;;  %v2308_v3 = vsel %vm7059_vm4, %v2303_v60, %v2307_v57  ;;  %v2322_v33 = vsel %vm7059_vm4, %v2317_v25, %v7773_v6  ;;  %10159 = vst [vmem:[#allocation7_spill] sm:$0xff] %v7857_v36  ;;  %v7867_v38 = vld [vmem:[%s7015_s17 + $0x80] sm:$0x1] }
  0xa2   : > { %v2382_v52 = vshrl.u32 %v5845_v16, 16  ;;  %v2385_v12 = vshll.u32 %v5845_v16, 16  ;;  %v2332_v18 = vsel %vm7059_vm4, %v2327_v26, %v2331_v53  ;;  %v2341_v4 = vrot.slane %v2340_v13, 4  ;;  %10160 = vst [vmem:[#allocation9_spill] sm:$0xff] %v7867_v38  ;;  %v7870_v26 = vld [vmem:[%s7015_s17 + $0x8c] sm:$0x1] }
  0xa3   : > { %6500 = vmatmul.mubr.msk.bf16.gmra.mxu0 %vm795_vm3, %v5736_v55  ;;  %v2360_v55 = vrot.slane %v2358_v10, 4  ;;  %v2391_v39 = vshll.u32 %v7814_v2, 16  ;;  %v2363_v9 = vrot.slane %v2361_v24, 5  ;;  %v7844_v58 = vrot.slane %v2367_v48, 5  ;;  %10161 = vst [vmem:[#allocation11_spill] sm:$0xff] %v7870_v26  ;;  %v6794_v10 = vld [vmem:[%s7015_s17 + $0x18] sm:$0xff]  }
  0xa4   : > { %6539 = vmatprep.mubr.msk.bf16.mxu0 %vm795_vm3, %v7714_v15  ;;  %v2373_v23 = vrot.slane %v2371_v42, 4  ;;  %v2395_v6 = vshrl.u32 %v7814_v2, 16  ;;  %v10158_v15 = vcombine.low %v10142_v29, %v7324_v37  ;;  %v7854_v20 = vcombine.low %v2274_v56, %v2284_v51  ;;  %v5851_v51 = vld [vmem:[%s7015_s17 + $0x90] sm:$0xf] }
  0xa5   : > { %v2351_v59 = vrot.slane %v2350_v54, 4  ;;  %v2355_v17 = vrot.slane %v2353_v11, 5  ;;  %v2384_v16 = vrot.slane %v2382_v52, 4  ;;  %v2387_v43 = vrot.slane %v2385_v12, 5 }
  0xa6   : > { %6466 = vmatmul.mubr.msk.bf16.gmra.mxu1 %vm795_vm3, %v10158_v15  ;;  %v7860_v60 = vrot.slane %v2391_v39, 5  ;;  %v2397_v57 = vrot.slane %v2395_v6, 4  ;;  %v2406_v25 = vshrl.u32 %v5848_v19, 16  ;;  %v7862_v37 = vcombine.low %v2298_v45, %v2308_v3  ;;  %v7881_v45 = vld [vmem:[%s7015_s17 + $0x94] sm:$0xf] }
  0xa7   : > { %6505 = vmatprep.mubr.msk.bf16.mxu1 %vm795_vm3, %v6793_v63  ;;  %v7864_v29 = vcombine.low %v2322_v33, %v2332_v18  ;;  %v2409_v53 = vshll.u32 %v5848_v19, 16  ;;  %v2415_v13 = vshll.u32 %v7848_v34, 16  ;;  %v2346_v56 = vsel %vm7059_vm4, %v2341_v4, %v7806_v46  ;;  %10162 = vst [vmem:[#allocation10_spill] sm:$0xff] %v7881_v45  ;;  %v7889_v33 = vld [vmem:[%s10058_s1 + $0x10] sm:$0x3]  ;;  %v6795_v46 = vld [vmem:[%s7015_s17 + $0x24] sm:$0xff]  }
  0xa8   : > { %v2364_v24 = vor.u32 %v2363_v9, %v2360_v55  ;;  %v2374_v48 = vor.u32 %v2373_v23, %v7844_v58  ;;  %v2377_v42 = vshll.u32 %v7857_v36, 16  ;;  %v2408_v54 = vrot.slane %v2406_v25, 4  ;;  %10163 = vst [vmem:[#allocation12_spill] sm:$0xff] %v7889_v33 }
  0xa9   : > { %v2411_v11 = vrot.slane %v2409_v53, 5  ;;  %v7883_v63 = vrot.slane %v2415_v13, 5  ;;  %v2419_v3 = vshrl.u32 %v7848_v34, 16  ;;  %v2356_v52 = vsel %vm7059_vm4, %v2351_v59, %v2355_v17 }
  0xaa   : > { %v2388_v12 = vor.u32 %v2387_v43, %v2384_v16  ;;  %v2398_v18 = vor.u32 %v2397_v57, %v7860_v60  ;;  %v2401_v4 = vshll.u32 %v7867_v38, 16  ;;  %v2430_v19 = vshrl.u32 %v5851_v51, 16  ;;  %v7923_v57 = vld [vmem:[%s7015_s17 + $0xa0] sm:$0xf] }
  0xab   : > { %6540 = vmatmul.mubr.msk.bf16.vlgmr.msra.gmra.mxu0 %vm795_vm3, %v7724_v22  ;;  %v2412_v55 = vor.u32 %v2411_v11, %v2408_v54  ;;  %v2421_v39 = vrot.slane %v2419_v3, 4  ;;  %v2433_v9 = vshll.u32 %v5851_v51, 16  ;;  %v5854_v22 = vld [vmem:[%s7015_s17 + $0x9c] sm:$0xf]  ;;  %v7902_v23 = vrot.slane %v2364_v24, 4  ;;  %10165 = vst [vmem:[#allocation13_spill] sm:$0xff] %v7923_v57 }
  0xac   : > { %6606 = vmatpush3.bf16.msra.mxu0 %v7718_v32  ;;  %6543 = vmatprep.mubr.msk.bf16.mxu0 %vm795_vm3, %v7758_v62  ;;  %v7904_v6 = vrot.slane %v2377_v42, 5  ;;  %v2425_v15 = vshll.u32 %v7870_v26, 16  ;;  %v2439_v59 = vshll.u32 %v7881_v45, 16  ;;  %v7911_v32 = vld [vmem:[%s10058_s1 + $0xe] sm:$0x3]  ;;  %v7916_v62 = vcombine.low %v2346_v56, %v2356_v52 }
  0xad   : > { %10164 = vst [vmem:[#allocation14_spill] sm:$0xff] %v7911_v32  ;;  %6718 = vmatprep.subr.msk.bf16.mxu0 %vm844_vm0, %v7889_v33  ;;  %v7918_v17 = vrot.slane %v2374_v48, 4  ;;  %v2422_v16 = vor.u32 %v2421_v39, %v7883_v63  ;;  %v2443_v43 = vshrl.u32 %v7881_v45, 16  ;;  %v7927_v25 = vrot.slane %v2388_v12, 4  ;;  %v7936_v56 = vld [vmem:[%s7015_s17 + $0x98] sm:$0x1] }
  0xae   : > { %6506 = vmatmul.mubr.msk.bf16.vlgmr.msra.gmra.mxu1 %vm795_vm3, %v6794_v10  ;;  %v7929_v53 = vrot.slane %v2398_v18, 4  ;;  %v7931_v13 = vrot.slane %v2401_v4, 5  ;;  %v7933_v10 = vrot.slane %v2412_v55, 4  ;;  %10166 = vst [vmem:[#allocation15_spill] sm:$0xff] %v7936_v56  ;;  %v2432_v24 = vrot.slane %v2430_v19, 4  ;;  %v6797_v19 = vld [vmem:[%s7015_s17 + $0x3c] sm:$0xff]  }
  0xaf   : > { %6572 = vmatpush3.bf16.msra.mxu1 %v7709_v14  ;;  %6509 = vmatprep.mubr.msk.bf16.mxu1 %vm795_vm3, %v6795_v46  ;;  %v2435_v48 = vrot.slane %v2433_v9, 5  ;;  %v2454_v42 = vshrl.u32 %v5854_v22, 16  ;;  %v2457_v51 = vshll.u32 %v5854_v22, 16  ;;  %v6796_v14 = vld [vmem:[%s7015_s17 + $0x30] sm:$0xff]   ;;  %v7945_v11 = vrot.slane %v2425_v15, 5 }
  0xb0   : > { %6717 = vmatprep.subr.msk.bf16.mxu1 %vm844_vm0, %v7911_v32  ;;  %v7947_v3 = vrot.slane %v2439_v59, 5  ;;  %v2463_v46 = vshll.u32 %v7923_v57, 16  ;;  %v5857_v52 = vld [vmem:[%s7015_s17 + $0xa8] sm:$0xf]  ;;  %v7951_v12 = vrot.slane %v2422_v16, 4  ;;  %v2445_v18 = vrot.slane %v2443_v43, 4 }
  0xb1   : > { %v2449_v4 = vshll.u32 %v7936_v56, 16  ;;  %v2467_v55 = vshrl.u32 %v7923_v57, 16  ;;  %v7956_v39 = vld [vmem:[%s7015_s17 + $0xac] sm:$0xf]  ;;  %v2436_v59 = vor.u32 %v2435_v48, %v2432_v24  ;;  %v7980_v16 = vld [vmem:[%s7015_s17 + $0xa4] sm:$0x1] }
  0xb2   : > { %10167 = vst [vmem:[#allocation16_spill] sm:$0xff] %v7956_v39  ;;  %10168 = vst [vmem:[#allocation5_spill] sm:$0xff] %v7980_v16  ;;  %v2456_v43 = vrot.slane %v2454_v42, 4  ;;  %v2459_v22 = vrot.slane %v2457_v51, 5  ;;  %v2478_v54 = vshrl.u32 %v5857_v52, 16  ;;  %v7982_v9 = vrot.slane %v2463_v46, 5 }
  0xb3   : > { %6544 = vmatmul.mubr.msk.bf16.gmra.mxu0 %vm795_vm3, %v7804_v7  ;;  %v2469_v32 = vrot.slane %v2467_v55, 4  ;;  %v2481_v15 = vshll.u32 %v5857_v52, 16  ;;  %v2487_v33 = vshll.u32 %v7956_v39, 16  ;;  %v5860_v57 = vld [vmem:[%s7015_s17 + $0xb4] sm:$0xf]  ;;  %v2446_v24 = vor.u32 %v2445_v18, %v7947_v3 }
  0xb4   : > { %6547 = vmatprep.mubr.msk.bf16.mxu0 %vm795_vm3, %v7854_v20  ;;  %v2428_v20 = vsel %vm7059_vm4, %v7951_v12, %v7945_v11  ;;  %v7992_v48 = vrot.slane %v2449_v4, 5  ;;  %v7995_v42 = vld [vmem:[%s7015_s17 + $0xb0] sm:$0x1]  ;;  %v2480_v51 = vrot.slane %v2478_v54, 4  ;;  %v7998_v46 = vld [vmem:[%s7015_s17 + $0xb8] sm:$0xf]  ;;  %v2460_v18 = vor.u32 %v2459_v22, %v2456_v43 }
  0xb5   : > { %10169 = vst [vmem:[#allocation17_spill] sm:$0xff] %v7995_v42  ;;  %10170 = vst [vmem:[#allocation18_spill] sm:$0xff] %v7998_v46  ;;  %v2483_v52 = vrot.slane %v2481_v15, 5  ;;  %v8002_v55 = vrot.slane %v2487_v33, 5  ;;  %v2491_v11 = vshrl.u32 %v7956_v39, 16  ;;  %v8005_v12 = vrot.slane %v2436_v59, 4 }
  0xb6   : > { %6510 = vmatmul.mubr.msk.bf16.gmra.mxu1 %vm795_vm3, %v6796_v14  ;;  %v2473_v14 = vshll.u32 %v7980_v16, 16  ;;  %v8008_v4 = vld [vmem:[%s7015_s17 + $0xbc] sm:$0x1]  ;;  %v2502_v54 = vshrl.u32 %v5860_v57, 16  ;;  %v2505_v7 = vshll.u32 %v5860_v57, 16  ;;  %v2470_v56 = vor.u32 %v2469_v32, %v7982_v9  ;;  %v6798_v16 = vld [vmem:[%s7015_s17 + $0x48] sm:$0xff]  }
  0xb7   : > { %6513 = vmatprep.mubr.msk.bf16.mxu1 %vm795_vm3, %v6797_v19  ;;  %v2493_v45 = vrot.slane %v2491_v11, 4  ;;  %v2497_v19 = vshll.u32 %v7995_v42, 16  ;;  %v2511_v15 = vshll.u32 %v7998_v46, 16  ;;  %v5863_v33 = vld [vmem:[%s7015_s17 + $0xc0] sm:$0xf]  ;;  %v2484_v26 = vor.u32 %v2483_v52, %v2480_v51  ;;  %v6799_v57 = vld [vmem:[%s7015_s17 + $0x54] sm:$0xff]  }
  0xb8   : > { %v2504_v39 = vrot.slane %v2502_v54, 4  ;;  %v2507_v34 = vrot.slane %v2505_v7, 5  ;;  %v2515_v59 = vshrl.u32 %v7998_v46, 16  ;;  %v8017_v22 = vld [vmem:[%s7015_s17 + $0xc4] sm:$0xf]  ;;  %v2447_v43 = vrot.slane %v2446_v24, 4 }
  0xb9   : > { %v2475_v32 = vrot.slane %v2473_v14, 5  ;;  %v2494_v11 = vor.u32 %v2493_v45, %v8002_v55  ;;  %v2513_v42 = vrot.slane %v2511_v15, 5  ;;  %v2521_v7 = vshll.u32 %v8008_v4, 16  ;;  %v8029_v45 = vld [vmem:[%s7015_s17 + $0xc8] sm:$0x1] }
  0xba   : > { %v2508_v51 = vor.u32 %v2507_v34, %v2504_v39  ;;  %v2517_v52 = vrot.slane %v2515_v59, 4  ;;  %v2526_v54 = vshrl.u32 %v5863_v33, 16  ;;  %v2461_v46 = vrot.slane %v2460_v18, 4 }
  0xbb   : > { %6548 = vmatmul.mubr.msk.bf16.gmra.mxu0 %vm795_vm3, %v7862_v37  ;;  %v2471_v38 = vrot.slane %v2470_v56, 4  ;;  %v2529_v2 = vshll.u32 %v5863_v33, 16  ;;  %v2535_v37 = vshll.u32 %v8017_v22, 16  ;;  %v2485_v24 = vrot.slane %v2484_v26, 4 }
  0xbc   : > { %6551 = vmatprep.mubr.msk.bf16.mxu0 %vm795_vm3, %v7864_v29  ;;  %v2499_v14 = vrot.slane %v2497_v19, 5  ;;  %v2518_v36 = vor.u32 %v2517_v52, %v2513_v42  ;;  %v2528_v15 = vrot.slane %v2526_v54, 4  ;;  %v2495_v34 = vrot.slane %v2494_v11, 4 }
  0xbd   : > { %v2531_v29 = vrot.slane %v2529_v2, 5  ;;  %v8032_v39 = vrot.slane %v2535_v37, 5  ;;  %v2539_v56 = vshrl.u32 %v8017_v22, 16  ;;  %v10171_v26 = vsel %vm7059_vm4, %v7918_v17, %v7904_v6 }
  0xbe   : > { %6514 = vmatmul.mubr.msk.bf16.gmra.mxu1 %vm795_vm3, %v6798_v16  ;;  %v10172_v16 = vsel %vm7059_vm4, %v7902_v23, %v7844_v58  ;;  %v2509_v19 = vrot.slane %v2508_v51, 4  ;;  %v2519_v33 = vrot.slane %v2518_v36, 4  ;;  %v2523_v2 = vrot.slane %v2521_v7, 5  ;;  %v6800_v23 = vld [vmem:[%s7015_s17 + $0x60] sm:$0xff]  }
  0xbf   : > { %6517 = vmatprep.mubr.msk.bf16.mxu1 %vm795_vm3, %v6799_v57  ;;  %v5875_v18 = vcombine.low %v10172_v16, %v10171_v26  ;;  %v10173_v59 = vsel %vm7059_vm4, %v7929_v53, %v7931_v13  ;;  %v10174_v6 = vsel %vm7059_vm4, %v7927_v25, %v7860_v60  ;;  %v2532_v57 = vor.u32 %v2531_v29, %v2528_v15  ;;  %v5901_v13 = vld [vmem:[%s7015_s17 + $0x24] sm:$0xe]  ;;  %v5904_v26 = vld [vmem:[%s7015_s17 + $0x48] sm:$0xe] }
  0xc0   : > { %v5876_v17 = vcombine.low %v10174_v6, %v10173_v59  ;;  %v2541_v11 = vrot.slane %v2539_v56, 4  ;;  %v2545_v58 = vshll.u32 %v8029_v45, 16  ;;  %v10175_v36 = vsel %vm7059_vm4, %v7933_v10, %v7883_v63  ;;  %v6801_v63 = vld [vmem:[%s7015_s17 + $0x6c] sm:$0xff]   ;;  %v5905_v6 = vld [vmem:[%s7015_s17 + $0x54] sm:$0xe] }
  0xc1   : > { %v5877_v51 = vcombine.low %v10175_v36, %v2428_v20  ;;  %v2442_v53 = vsel %vm7059_vm4, %v8005_v12, %v7947_v3  ;;  %v2452_v60 = vsel %vm7059_vm4, %v2447_v43, %v7992_v48  ;;  %v2466_v25 = vsel %vm7059_vm4, %v2461_v46, %v7982_v9  ;;  %v8085_v12 = vld [vmem:[%s7015_s17 + $0xc] sm:$0xe] }
  0xc2   : > { %v2476_v10 = vsel %vm7059_vm4, %v2471_v38, %v2475_v32  ;;  %v2490_v3 = vsel %vm7059_vm4, %v2485_v24, %v8002_v55  ;;  %v2500_v20 = vsel %vm7059_vm4, %v2495_v34, %v2499_v14  ;;  %v2542_v48 = vor.u32 %v2541_v11, %v8032_v39  ;;  %v5902_v55 = vld [vmem:[%s7015_s17 + $0x30] sm:$0xe]  ;;  %v5903_v14 = vld [vmem:[%s7015_s17 + $0x3c] sm:$0xe] }
  0xc3   : > { %6552 = vmatmul.mubr.msk.bf16.gmra.mxu0 %vm795_vm3, %v7916_v62  ;;  %v2514_v62 = vsel %vm7059_vm4, %v2509_v19, %v2513_v42  ;;  %v2524_v38 = vsel %vm7059_vm4, %v2519_v33, %v2523_v2  ;;  %v8092_v9 = vrot.slane %v2532_v57, 4  ;;  %v2909_v46 = vrot.slane %v7576_v49, 5  ;;  %v6802_v57 = vld [vmem:[%s7015_s17 + $0x78] sm:$0xff]  }
  0xc4   : > { %6555 = vmatprep.mubr.msk.bf16.mxu0 %vm795_vm3, %v5875_v18  ;;  %v8096_v43 = vcombine.low %v2442_v53, %v2452_v60  ;;  %v8098_v32 = vrot.slane %v2542_v48, 4  ;;  %v8100_v52 = vrot.slane %v2545_v58, 5  ;;  %v5917_v7 = vrot.slane %v5901_v13, 9  ;;  %v6803_v53 = vld [vmem:[%s7015_s17 + $0x84] sm:$0xff]   ;;  %v5906_v13 = vld [vmem:[%s7015_s17 + $0x60] sm:$0xe] }
  0xc5   : > { %v8103_v54 = vcombine.low %v2466_v25, %v2476_v10  ;;  %v8105_v42 = vcombine.low %v2490_v3, %v2500_v20  ;;  %v5915_v37 = vrot.slane %v8085_v12, 9  ;;  %v2923_v24 = vrot.slane %v7625_v44, 5 }
  0xc6   : > { %6518 = vmatmul.mubr.msk.bf16.gmra.mxu1 %vm795_vm3, %v6800_v23  ;;  %v8111_v15 = vcombine.low %v2514_v62, %v2524_v38  ;;  %v2912_v34 = vrot.slane %v7612_v47, 5  ;;  %v2926_v29 = vrot.slane %v7640_v21, 5  ;;  %v5918_v56 = vrot.slane %v5902_v55, 9  ;;  %v5908_v55 = vld [vmem:[%s7015_s17 + $0x78] sm:$0xe] }
  0xc7   : > { %6521 = vmatprep.mubr.msk.bf16.mxu1 %vm795_vm3, %v6801_v63  ;;  %v2538_v16 = vsel %vm7059_vm4, %v8092_v9, %v8032_v39  ;;  %v8122_v44 = vrot.slane %v2909_v46, 4  ;;  %v8126_v18 = vsel %vm7345_vm7, %v5917_v7, %v2923_v24  ;;  %v2925_v19 = vrot.slane %v2923_v24, 4  ;;  %v6809_v9 = vld [vmem:[%s7015_s17 + $0x18] sm:$0xff]  }
  0xc8   : > { %v2548_v21 = vsel %vm7059_vm4, %v8098_v32, %v8100_v52  ;;  %v2930_v33 = vrot.slane %v7663_v5, 5  ;;  %v2933_v2 = vrot.slane %v7671_v41, 5  ;;  %v5919_v59 = vrot.slane %v5903_v14, 9  ;;  %v6029_v32 = vld [vmem:[%s7015_s17 + $0x18] sm:$0xf]  ;;  %v6808_v52 = vld [vmem:[%s7015_s17 + $0xc0] sm:$0xff]  }
  0xc9   : > { %v8138_v11 = vsel %vm7345_vm7, %v2925_v19, %v2926_v29  ;;  %v2937_v58 = vrot.slane %v7680_v61, 5  ;;  %v2940_v23 = vrot.slane %v7732_v50, 5  ;;  %v5920_v36 = vrot.slane %v5904_v26, 9  ;;  %v5909_v19 = vld [vmem:[%s7015_s17 + $0x84] sm:$0xe] }
  0xca   : > { %v5934_v5 = vcombine.low %v8126_v18, %v8138_v11  ;;  %v8148_v41 = vsel %vm7345_vm7, %v5918_v56, %v2930_v33  ;;  %v2932_v60 = vrot.slane %v2930_v33, 4  ;;  %v2944_v25 = vrot.slane %v7698_v1, 5 }
  0xcb   : > { %6556 = vmatmul.mubr.msk.bf16.gmra.mxu0 %vm795_vm3, %v5876_v17  ;;  %v8155_v61 = vsel %vm7345_vm7, %v5919_v59, %v2937_v58  ;;  %v2939_v50 = vrot.slane %v2937_v58, 4  ;;  %v2947_v17 = vrot.slane %v7746_v8, 5  ;;  %v5921_v63 = vrot.slane %v5905_v6, 9  ;;  %v10176_v59 = vld [vmem:[#allocation7_spill] sm:$0xff] }
  0xcc   : > { %6559 = vmatprep.mubr.msk.bf16.mxu0 %vm795_vm3, %v5877_v51  ;;  %v8160_v10 = vsel %vm7345_vm7, %v2932_v60, %v2933_v2  ;;  %v8164_v3 = vsel %vm7345_vm7, %v5920_v36, %v2944_v25  ;;  %v2946_v1 = vrot.slane %v2944_v25, 4  ;;  %v2951_v20 = vrot.slane %v7741_v40, 5  ;;  %v5907_v51 = vld [vmem:[%s7015_s17 + $0x6c] sm:$0xe]  ;;  %v6804_v58 = vld [vmem:[%s7015_s17 + $0x90] sm:$0xff]  }
  0xcd   : > { %v8173_v8 = vsel %vm7345_vm7, %v2939_v50, %v2940_v23  ;;  %v2954_v62 = vrot.slane %v7763_v35, 5  ;;  %v5922_v38 = vrot.slane %v5906_v13, 9  ;;  %v2958_v29 = vrot.slane %v7776_v28, 5  ;;  %v10177_v36 = vld [vmem:[#allocation6_spill] sm:$0xff]  ;;  %v5910_v60 = vld [vmem:[%s7015_s17 + $0x90] sm:$0xe] }
  0xce   : > { %6522 = vmatmul.mubr.msk.bf16.gmra.mxu1 %vm795_vm3, %v6802_v57  ;;  %v8182_v7 = vsel %vm7345_vm7, %v2946_v1, %v2947_v17  ;;  %v8186_v24 = vsel %vm7345_vm7, %v5921_v63, %v2951_v20  ;;  %v2953_v14 = vrot.slane %v2951_v20, 4  ;;  %v2961_v56 = vrot.slane %v7798_v30, 5  ;;  %v10178_v50 = vld [vmem:[#allocation9_spill] sm:$0xff] }
  0xcf   : > { %6525 = vmatprep.mubr.msk.bf16.mxu1 %vm795_vm3, %v6803_v53  ;;  %v5923_v26 = vrot.slane %v5907_v51, 9  ;;  %v2965_v2 = vrot.slane %v7795_v27, 5  ;;  %v2968_v6 = vrot.slane %v10176_v59, 5  ;;  %v5924_v57 = vrot.slane %v5908_v55, 9  ;;  %v6805_v27 = vld [vmem:[%s7015_s17 + $0x9c] sm:$0xff]  }
  0xd0   : > { %v8195_v33 = vsel %vm7345_vm7, %v2953_v14, %v2954_v62  ;;  %v8204_v28 = vsel %vm7345_vm7, %v5922_v38, %v2958_v29  ;;  %v2960_v30 = vrot.slane %v2958_v29, 4  ;;  %v2972_v53 = vrot.slane %v10177_v36, 5  ;;  %v10179_v51 = vld [vmem:[#allocation8_spill] sm:$0xff]  ;;  %v10182_v36 = vld [vmem:[#allocation15_spill] sm:$0xff] }
  0xd1   : > { %v8213_v25 = vsel %vm7345_vm7, %v5923_v26, %v2965_v2  ;;  %v2967_v13 = vrot.slane %v2965_v2, 4  ;;  %v2975_v17 = vrot.slane %v10178_v50, 5  ;;  %v5925_v63 = vrot.slane %v5909_v19, 9  ;;  %v5911_v38 = vld [vmem:[%s7015_s17 + $0x9c] sm:$0xe]  ;;  %v6806_v19 = vld [vmem:[%s7015_s17 + $0xa8] sm:$0xff]  }
  0xd2   : > { %v8220_v1 = vsel %vm7345_vm7, %v2960_v30, %v2961_v56  ;;  %v2974_v20 = vrot.slane %v2972_v53, 4  ;;  %v2979_v62 = vrot.slane %v10179_v51, 5  ;;  %v5926_v56 = vrot.slane %v5910_v60, 9  ;;  %v5912_v26 = vld [vmem:[%s7015_s17 + $0xa8] sm:$0xe] }
  0xd3   : > { %6560 = vmatmul.mubr.msk.bf16.gmra.mxu0 %vm795_vm3, %v8096_v43  ;;  %v8224_v43 = vsel %vm7345_vm7, %v5924_v57, %v2972_v53  ;;  %v8232_v14 = vsel %vm7345_vm7, %v2967_v13, %v2968_v6  ;;  %v2989_v53 = vrot.slane %v10182_v36, 5  ;;  %v5927_v60 = vrot.slane %v5911_v38, 9  ;;  %v5913_v13 = vld [vmem:[%s7015_s17 + $0xb4] sm:$0xe]  ;;  %v10185_v38 = vld [vmem:[#allocation16_spill] sm:$0xff] }
  0xd4   : > { %6563 = vmatprep.mubr.msk.bf16.mxu0 %vm795_vm3, %v8103_v54  ;;  %v10180_v54 = vld [vmem:[#allocation11_spill] sm:$0xff]  ;;  %v8241_v2 = vsel %vm7345_vm7, %v2974_v20, %v2975_v17  ;;  %v8245_v59 = vsel %vm7345_vm7, %v5925_v63, %v2979_v62  ;;  %v2981_v6 = vrot.slane %v2979_v62, 4  ;;  %v10183_v17 = vld [vmem:[#allocation13_spill] sm:$0xff]  ;;  %v5928_v62 = vrot.slane %v5912_v26, 9 }
  0xd5   : > { %v2982_v29 = vrot.slane %v10180_v54, 5  ;;  %v2993_v63 = vrot.slane %v10183_v17, 5  ;;  %v10184_v20 = vld [vmem:[#allocation5_spill] sm:$0xff]  ;;  %v3000_v36 = vrot.slane %v10185_v38, 5  ;;  %v5929_v26 = vrot.slane %v5913_v13, 9 }
  0xd6   : > { %6526 = vmatmul.mubr.msk.bf16.gmra.mxu1 %vm795_vm3, %v6804_v58  ;;  %v10181_v58 = vld [vmem:[#allocation10_spill] sm:$0xff]  ;;  %v2996_v51 = vrot.slane %v10184_v20, 5  ;;  %v5914_v57 = vld [vmem:[%s7015_s17 + $0xc0] sm:$0xe]  ;;  %v2913_v39 = vsel %vm7345_vm7, %v8122_v44, %v2912_v34  ;;  %v8352_v44 = vld [vmem:[%s7015_s17 + $0x1c] sm:$0xf] }
  0xd7   : > { %6529 = vmatprep.mubr.msk.bf16.mxu1 %vm795_vm3, %v6805_v27  ;;  %v2986_v30 = vrot.slane %v10181_v58, 5  ;;  %v8255_v50 = vsel %vm7345_vm7, %v2981_v6, %v2982_v29  ;;  %v8270_v29 = vsel %vm7345_vm7, %v5927_v60, %v2993_v63  ;;  %v2995_v6 = vrot.slane %v2993_v63, 4  ;;  %v10186_v17 = vld [vmem:[#allocation17_spill] sm:$0xff]  ;;  %v6807_v27 = vld [vmem:[%s7015_s17 + $0xb4] sm:$0xff]   ;;  %v10187_v60 = vld [vmem:[#allocation18_spill] sm:$0xff] }
  0xd8   : > { %v3003_v20 = vrot.slane %v10186_v17, 5  ;;  %v3002_v38 = vrot.slane %v3000_v36, 4  ;;  %v3007_v55 = vrot.slane %v10187_v60, 5  ;;  %v5930_v63 = vrot.slane %v5914_v57, 9 }
  0xd9   : > { %v8263_v54 = vsel %vm7345_vm7, %v5926_v56, %v2986_v30  ;;  %v2988_v58 = vrot.slane %v2986_v30, 4  ;;  %v8282_v30 = vsel %vm7345_vm7, %v5928_v62, %v3000_v36  ;;  %v3017_v17 = vrot.slane %v8029_v45, 5  ;;  %v5900_v45 = vld [vmem:[%s7015_s17 + $0x18] sm:$0xe] }
  0xda   : > { %v3009_v36 = vrot.slane %v3007_v55, 4  ;;  %v3730_v60 = vshll.u32 %v8352_v44, 16 }
  0xdb   : > { %6564 = vmatmul.mubr.msk.bf16.gmra.mxu0 %vm795_vm3, %v8105_v42  ;;  %v8278_v56 = vsel %vm7345_vm7, %v2988_v58, %v2989_v53  ;;  %v8291_v42 = vsel %vm7345_vm7, %v2995_v6, %v2996_v51  ;;  %v3010_v53 = vrot.slane %v8008_v4, 5  ;;  %v8298_v58 = vsel %vm7345_vm7, %v3002_v38, %v3003_v20  ;;  %v6825_v51 = vld [vmem:[%s7015_s17 + $0x1c] sm:$0xf] }
  0xdc   : > { %6567 = vmatprep.mubr.msk.bf16.mxu0 %vm795_vm3, %v8111_v15  ;;  %v8302_v15 = vsel %vm7345_vm7, %v5929_v26, %v3007_v55  ;;  %v2916_v4 = vrot.slane %v6825_v51, 5  ;;  %v3014_v6 = vrot.slane %v8017_v22, 5  ;;  %v5882_v55 = vcombine.low %v2538_v16, %v2548_v21  ;;  %v6826_v21 = vld [vmem:[%s7015_s17 + $0x20] sm:$0x1]  ;;  %v6032_v51 = vld [vmem:[%s7015_s17 + $0x24] sm:$0xf] }
  0xdd   : > { %v2910_v22 = vsel %vm7345_vm7, %v5915_v37, %v2909_v46  ;;  %v5916_v37 = vrot.slane %v5900_v45, 9  ;;  %v2919_v47 = vrot.slane %v6826_v21, 5  ;;  %v3721_v26 = vshrl.u32 %v6029_v32, 16  ;;  %v10188_v45 = vld [vmem:[#allocation12_spill] sm:$0xff]  ;;  %v8379_v21 = vld [vmem:[%s7015_s17 + $0x34] sm:$0xf] }
  0xde   : > { %6530 = vmatmul.mubr.msk.bf16.gmra.mxu1 %vm795_vm3, %v6806_v19  ;;  %v8330_v19 = vsel %vm7345_vm7, %v3009_v36, %v3010_v53  ;;  %v8342_v12 = vsel %vm7345_vm7, %v5930_v63, %v3014_v6  ;;  %v3016_v46 = vrot.slane %v3014_v6, 4  ;;  %v2918_v16 = vrot.slane %v2916_v4, 4  ;;  %v6810_v6 = vld [vmem:[%s7015_s17 + $0x24] sm:$0xff]  }
  0xdf   : > { %6533 = vmatprep.mubr.msk.bf16.mxu1 %vm795_vm3, %v6807_v27  ;;  %v5932_v27 = vcombine.low %v2910_v22, %v2913_v39  ;;  %v3724_v38 = vshll.u32 %v6029_v32, 16  ;;  %v2917_v53 = vsel %vm7345_vm7, %v5916_v37, %v2916_v4  ;;  %v3734_v36 = vshrl.u32 %v8352_v44, 16  ;;  %v8369_v22 = vld [vmem:[%s7015_s17 + $0x28] sm:$0xf]  ;;  %v6031_v4 = vld [vmem:[%s7015_s17 + $0x20] sm:$0x1] }
  0xe0   : > { %v8349_v34 = vsel %vm7345_vm7, %v3016_v46, %v3017_v17  ;;  %v2920_v63 = vsel %vm7345_vm7, %v2918_v16, %v2919_v47  ;;  %v3723_v17 = vrot.slane %v3721_v26, 4  ;;  %v4673_v39 = vsel %vm844_vm0, %v10188_v45, 0  ;;  %v6035_v46 = vld [vmem:[%s7015_s17 + $0x30] sm:$0xf]  ;;  %v10189_v45 = vld [vmem:[#allocation14_spill] sm:$0xff] }
  0xe1   : > { %v5933_v32 = vcombine.low %v2917_v53, %v2920_v63  ;;  %v3745_v37 = vshrl.u32 %v6032_v51, 16  ;;  %v3748_v16 = vshll.u32 %v6032_v51, 16  ;;  %v3736_v47 = vrot.slane %v3734_v36, 4  ;;  %v8390_v51 = vld [vmem:[%s7015_s17 + $0x2c] sm:$0x1] }
  0xe2   : > { %v4464_v26 = vrot.slane %v8352_v44, 5  ;;  %v3758_v20 = vshrl.u32 %v8369_v22, 16  ;;  %v4203_v53 = vsel %vm844_vm0, %v10189_v45, 0  ;;  %v3769_v36 = vshrl.u32 %v6035_v46, 16 }
  0xe3   : > { %6568 = vmatmul.mubr.msk.bf16.gmra.mxu0 %vm795_vm3, %v5882_v55  ;;  %v3726_v55 = vrot.slane %v3724_v38, 5  ;;  %v3754_v38 = vshll.u32 %v8369_v22, 16  ;;  %v3772_v44 = vshll.u32 %v6035_v46, 16  ;;  %v3778_v49 = vshll.u32 %v8379_v21, 16  ;;  %v6812_v46 = vld [vmem:[%s7015_s17 + $0x3c] sm:$0xff]  }
  0xe4   : > { %6607 = vmatprep.mubr.msk.bf16.mxu0 %vm795_vm3, %v6809_v9  ;;  %v6811_v9 = vld [vmem:[%s7015_s17 + $0x30] sm:$0xff]   ;;  %v3782_v57 = vshrl.u32 %v8379_v21, 16  ;;  %v3747_v13 = vrot.slane %v3745_v37, 4  ;;  %v3750_v23 = vrot.slane %v3748_v16, 5  ;;  %v3771_v16 = vrot.slane %v3769_v36, 4 }
  0xe5   : > { %v3727_v63 = vor.u32 %v3726_v55, %v3723_v17  ;;  %v4466_v55 = vrot.slane %v4464_v26, 4  ;;  %v4471_v11 = vrot.slane %v8369_v22, 5  ;;  %v4478_v22 = vrot.slane %v8379_v21, 5 }
  0xe6   : > { %6534 = vmatmul.mubr.msk.bf16.gmra.mxu1 %vm795_vm3, %v6808_v52  ;;  %v8376_v52 = vrot.slane %v3730_v60, 5  ;;  %v3740_v60 = vshll.u32 %v6031_v4, 16  ;;  %v3751_v18 = vor.u32 %v3750_v23, %v3747_v13  ;;  %v4474_v48 = vrot.slane %v8390_v51, 5 }
  0xe7   : > { %6573 = vmatprep.mubr.msk.bf16.mxu1 %vm795_vm3, %v5932_v27  ;;  %v6110_v27 = vld [vmem:[%s7015_s17 + $0x18] sm:$0xe]  ;;  %v8404_v37 = vrot.slane %v3727_v63, 4  ;;  %v4473_v40 = vrot.slane %v4471_v11, 4 }
  0xe8   : > { %v6126_v62 = vrot.slane %v6110_v27, 9  ;;  %v3737_v17 = vor.u32 %v3736_v47, %v8376_v52  ;;  %v3774_v47 = vrot.slane %v3772_v44, 5  ;;  %v8407_v27 = vrot.slane %v3778_v49, 5  ;;  %v8427_v44 = vld [vmem:[%s7015_s17 + $0x40] sm:$0xf] }
  0xe9   : > { %v8410_v45 = vrot.slane %v3740_v60, 5  ;;  %v3733_v13 = vsel %vm7059_vm4, %v8404_v37, %v8376_v52  ;;  %v10190_v52 = vcombine.low %v8148_v41, %v8160_v10  ;;  %v4480_v41 = vrot.slane %v4478_v22, 4 }
  0xea   : > { %v8418_v63 = vsel %vm7345_vm7, %v6126_v62, %v4464_v26  ;;  %v6112_v62 = vld [vmem:[%s7015_s17 + $0x30] sm:$0xe] }
  0xeb   : > { %6608 = vmatmul.mubr.msk.bf16.vlgmr.msra.gmra.mxu0 %vm795_vm3, %v6810_v6  ;;  %v4467_v6 = vrot.slane %v6031_v4, 5  ;;  %v6813_v4 = vld [vmem:[%s7015_s17 + $0x48] sm:$0xff]   ;;  %v6128_v37 = vrot.slane %v6112_v62, 9 }
  0xec   : > { %6674 = vmatpush3.bf16.msra.mxu0 %v4673_v39  ;;  %6611 = vmatprep.mubr.msk.bf16.mxu0 %vm795_vm3, %v6811_v9  ;;  %v8396_v39 = vrot.slane %v3754_v38, 5  ;;  %v3760_v9 = vrot.slane %v3758_v20, 4  ;;  %v3784_v20 = vrot.slane %v3782_v57, 4  ;;  %v6038_v38 = vld [vmem:[%s7015_s17 + $0x3c] sm:$0xf] }
  0xed   : > { %v8422_v36 = vsel %vm7345_vm7, %v4466_v55, %v4467_v6  ;;  %v6111_v57 = vld [vmem:[%s7015_s17 + $0x24] sm:$0xe]  ;;  %v3793_v26 = vshrl.u32 %v6038_v38, 16  ;;  %v3796_v60 = vshll.u32 %v6038_v38, 16 }
  0xee   : > { %6574 = vmatmul.mubr.msk.bf16.vlgmr.msra.gmra.mxu1 %vm795_vm3, %v5933_v32  ;;  %v3764_v32 = vshll.u32 %v8390_v51, 16  ;;  %v3761_v49 = vor.u32 %v3760_v9, %v8396_v39  ;;  %v3785_v55 = vor.u32 %v3784_v20, %v8407_v27  ;;  %v6127_v35 = vrot.slane %v6111_v57, 9  ;;  %v6814_v51 = vld [vmem:[%s7015_s17 + $0x54] sm:$0xff]  }
  0xef   : > { %6640 = vmatpush3.bf16.msra.mxu1 %v4203_v53  ;;  %6577 = vmatprep.mubr.msk.bf16.mxu1 %vm795_vm3, %v5934_v5  ;;  %v6037_v5 = vld [vmem:[%s7015_s17 + $0x38] sm:$0x1]  ;;  %v8414_v53 = vrot.slane %v3737_v17, 4  ;;  %v8430_v23 = vpop.f32.mrf.mxu0  ;;  %v3775_v17 = vor.u32 %v3774_v47, %v3771_v16  ;;  %v3806_v16 = vshrl.u32 %v8427_v44, 16  ;;  %v10192_v47 = vcombine.low %v8155_v61, %v8173_v8  ;;  %v6041_v8 = vld [vmem:[%s7015_s17 + $0x48] sm:$0xf] }
  0xf0   : > { %v3766_v6 = vrot.slane %v3764_v32, 5  ;;  %v3788_v9 = vshll.u32 %v6037_v5, 16  ;;  %v3802_v32 = vshll.u32 %v8427_v44, 16  ;;  %v4481_v10 = vrot.slane %v6037_v5, 5 }
  0xf1   : > { %v8454_v20 = vpop.f32.mrf.mxu0  ;;  %v3795_v38 = vrot.slane %v3793_v26, 4  ;;  %v3743_v57 = vsel %vm7059_vm4, %v8414_v53, %v8410_v45  ;;  %v3776_v62 = vrot.slane %v3775_v17, 4  ;;  %v8469_v26 = vsel %vm7345_vm7, %v6127_v35, %v4471_v11  ;;  %v8476_v45 = vld [vmem:[%s7015_s17 + $0x4c] sm:$0xf] }
  0xf2   : > { %v3790_v61 = vrot.slane %v3788_v9, 5  ;;  %v8489_v9 = vrot.slane %v3802_v32, 5  ;;  %v3808_v35 = vrot.slane %v3806_v16, 4  ;;  %v3826_v32 = vshll.u32 %v8476_v45, 16 }
  0xf3   : > { %6612 = vmatmul.mubr.msk.bf16.gmra.mxu0 %vm795_vm3, %v6812_v46  ;;  %v3752_v46 = vrot.slane %v3751_v18, 4  ;;  %v3798_v18 = vrot.slane %v3796_v60, 5  ;;  %v8473_v60 = vsel %vm7345_vm7, %v4473_v40, %v4474_v48  ;;  %v8492_v48 = vpop.f32.mrf.mxu0  ;;  %v8496_v40 = vsel %vm7345_vm7, %v4480_v41, %v4481_v10 }
  0xf4   : > { %6615 = vmatprep.mubr.msk.bf16.mxu0 %vm795_vm3, %v6813_v4  ;;  %v8445_v21 = vpop.f32.mrf.mxu1  ;;  %v3762_v4 = vrot.slane %v3761_v49, 4  ;;  %v6815_v49 = vld [vmem:[%s7015_s17 + $0x60] sm:$0xff]   ;;  %10194 = vst [vmem:[#allocation9_spill] sm:$0xff] %v8492_v48  ;;  %v3830_v16 = vshrl.u32 %v8476_v45, 16 }
  0xf5   : > { %10191 = vst [vmem:[#allocation7_spill] sm:$0xff] %v8445_v21  ;;  %v3757_v5 = vsel %vm7059_vm4, %v3752_v46, %v8396_v39  ;;  %v8487_v39 = vld [vmem:[%s7015_s17 + $0x44] sm:$0x1]  ;;  %v3799_v11 = vor.u32 %v3798_v18, %v3795_v38  ;;  %v3817_v46 = vshrl.u32 %v6041_v8, 16  ;;  %v10195_v18 = vcombine.low %v8164_v3, %v8182_v7  ;;  %v6816_v3 = vld [vmem:[%s7015_s17 + $0x6c] sm:$0xff]   ;;  %v6817_v7 = vld [vmem:[%s7015_s17 + $0x78] sm:$0xff]  }
  0xf6   : > { %6578 = vmatmul.mubr.msk.bf16.gmra.mxu1 %vm795_vm3, %v10190_v52  ;;  %v3786_v52 = vrot.slane %v3785_v55, 4  ;;  %v8478_v53 = vpop.f32.mrf.mxu1  ;;  %v3767_v17 = vsel %vm7059_vm4, %v3762_v4, %v3766_v6  ;;  %v8484_v55 = vsel %vm7345_vm7, %v6128_v37, %v4478_v22  ;;  %v6113_v6 = vld [vmem:[%s7015_s17 + $0x3c] sm:$0xe]  ;;  %v3820_v4 = vshll.u32 %v6041_v8, 16 }
  0xf7   : > { %6581 = vmatprep.mubr.msk.bf16.mxu1 %vm795_vm3, %v10192_v47  ;;  %10193 = vst [vmem:[#allocation6_spill] sm:$0xff] %v8478_v53  ;;  %v3781_v22 = vsel %vm7059_vm4, %v3776_v62, %v8407_v27  ;;  %v8509_v41 = vcombine.low %v3757_v5, %v3767_v17  ;;  %v3812_v38 = vshll.u32 %v8487_v39, 16  ;;  %v6044_v27 = vld [vmem:[%s7015_s17 + $0x54] sm:$0xf]  ;;  %v6129_v62 = vrot.slane %v6113_v6, 9  ;;  %v8535_v5 = vpop.f32.mrf.mxu0 }
  0xf8   : > { %v3791_v37 = vsel %vm7059_vm4, %v3786_v52, %v3790_v61  ;;  %v4485_v52 = vrot.slane %v8427_v44, 5  ;;  %v8526_v61 = vld [vmem:[%s7015_s17 + $0x58] sm:$0xf]  ;;  %v10197_v8 = vcombine.low %v8186_v24, %v8195_v33  ;;  %10198 = vst [vmem:[#allocation11_spill] sm:$0xff] %v8535_v5  ;;  %v3822_v6 = vrot.slane %v3820_v4, 5 }
  0xf9   : > { %v8537_v17 = vcombine.low %v3781_v22, %v3791_v37  ;;  %v8542_v44 = vld [vmem:[%s7015_s17 + $0x50] sm:$0x1]  ;;  %v3832_v10 = vrot.slane %v3830_v16, 4  ;;  %v3841_v47 = vshrl.u32 %v6044_v27, 16  ;;  %v3844_v24 = vshll.u32 %v6044_v27, 16 }
  0xfa   : > { %v8546_v33 = vrot.slane %v3812_v38, 5  ;;  %v3854_v22 = vshrl.u32 %v8526_v61, 16  ;;  %v8561_v37 = vsel %vm7345_vm7, %v6129_v62, %v4485_v52  ;;  %v4488_v16 = vrot.slane %v8487_v39, 5  ;;  %v6047_v62 = vld [vmem:[%s7015_s17 + $0x60] sm:$0xf] }
  0xfb   : > { %6616 = vmatmul.mubr.msk.bf16.gmra.mxu0 %vm795_vm3, %v6814_v51  ;;  %v8507_v51 = vcombine.low %v3733_v13, %v3743_v57  ;;  %v3809_v57 = vor.u32 %v3808_v35, %v8489_v9  ;;  %v3819_v35 = vrot.slane %v3817_v46, 4  ;;  %v8544_v13 = vrot.slane %v3826_v32, 5 }
  0xfc   : > { %6619 = vmatprep.mubr.msk.bf16.mxu0 %vm795_vm3, %v6815_v49  ;;  %v8519_v49 = vpop.f32.mrf.mxu1  ;;  %v4487_v32 = vrot.slane %v4485_v52, 4  ;;  %v4492_v52 = vrot.slane %v8476_v45, 5  ;;  %v3846_v21 = vrot.slane %v3844_v24, 5  ;;  %v8601_v24 = vld [vmem:[%s7015_s17 + $0x5c] sm:$0x1]  ;;  %v4495_v5 = vrot.slane %v8542_v44, 5 }
  0xfd   : > { %10196 = vst [vmem:[#allocation8_spill] sm:$0xff] %v8519_v49  ;;  %v3810_v4 = vrot.slane %v3809_v57, 4  ;;  %v3823_v49 = vor.u32 %v3822_v6, %v3819_v35  ;;  %v3836_v57 = vshll.u32 %v8542_v44, 16  ;;  %v3833_v39 = vor.u32 %v3832_v10, %v8544_v13 }
  0xfe   : > { %6582 = vmatmul.mubr.msk.bf16.gmra.mxu1 %vm795_vm3, %v10195_v18  ;;  %v8539_v18 = vrot.slane %v3799_v11, 4  ;;  %v4870_v11 = vlaneseq  ;;  %v8557_v46 = vpop.f32.mrf.mxu1  ;;  %v10203_v10 = vcombine.low %v8204_v28, %v8220_v1  ;;  %v8598_v45 = vsel %vm7345_vm7, %v4487_v32, %v4488_v16  ;;  %v6818_v28 = vld [vmem:[%s7015_s17 + $0x84] sm:$0xff]  }
  0xff   : > { %6585 = vmatprep.mubr.msk.bf16.mxu1 %vm795_vm3, %v10197_v8  ;;  %v3850_v8 = vshll.u32 %v8526_v61, 16  ;;  %10199 = vst [vmem:[#allocation10_spill] sm:$0xff] %v8557_v46  ;;  %v6114_v46 = vld [vmem:[%s7015_s17 + $0x48] sm:$0xe]  ;;  %v3824_v32 = vrot.slane %v3823_v49, 4 }
 0x100   : > { %v8565_v38 = vpop.f32.mrf.mxu0  ;;  %v3805_v27 = vsel %vm7059_vm4, %v8539_v18, %v8489_v9  ;;  %v8573_v53 = vshrl.u32 %v4870_v11, 7  ;;  %v3856_v18 = vrot.slane %v3854_v22, 4  ;;  %v3868_v22 = vshll.u32 %v6047_v62, 16 }
 0x101   : > { %10200 = vst [vmem:[#allocation15_spill] sm:$0xff] %v8565_v38  ;;  %v8580_v38 = vld [vmem:[%s8555_s27] sm:$0xff]  ;;  %v8582_v9 = vrot.slane %v3850_v8, 5  ;;  %v3865_v8 = vshrl.u32 %v6047_v62, 16  ;;  %v10205_v11 = vcombine.low %v8213_v25, %v8232_v14  ;;  %v6819_v25 = vld [vmem:[%s7015_s17 + $0x90] sm:$0xff]   ;;  %v3834_v14 = vrot.slane %v3833_v39, 4 }
 0x102   : > { %v8585_v35 = vsub.s32 0, %v8573_v53  ;;  %v8588_v6 = vsub.s32 1, %v8573_v53  ;;  %v8608_v1 = vpop.f32.mrf.mxu0  ;;  %v8618_v62 = vld [vmem:[%s7015_s17 + $0x64] sm:$0xf]  ;;  %v3870_v44 = vrot.slane %v3868_v22, 5 }
 0x103   : > { %6620 = vmatmul.mubr.msk.bf16.gmra.mxu0 %vm795_vm3, %v6816_v3  ;;  %v3843_v3 = vrot.slane %v3841_v47, 4  ;;  %10206 = vst [vmem:[#allocation17_spill] sm:$0xff] %v8608_v1  ;;  %v3857_v49 = vor.u32 %v3856_v18, %v8582_v9  ;;  %v3867_v39 = vrot.slane %v3865_v8, 4  ;;  %v3829_v18 = vsel %vm7059_vm4, %v3824_v32, %v8544_v13  ;;  %v6050_v8 = vld [vmem:[%s7015_s17 + $0x6c] sm:$0xf] }
 0x104   : > { %6623 = vmatprep.mubr.msk.bf16.mxu0 %vm795_vm3, %v6817_v7  ;;  %10201 = vst [vmem:[#allocation13_spill] sm:$0xff] %v8585_v35  ;;  %10202 = vst [vmem:[#allocation5_spill] sm:$0xff] %v8588_v6  ;;  %v8594_v47 = vpop.f32.mrf.mxu1  ;;  %v6130_v7 = vrot.slane %v6114_v46, 9  ;;  %v4873_v46 = vrot.slane %v8580_v38, %v8585_v35  ;;  %v4884_v16 = vrot.slane %v8580_v38, %v8588_v6  ;;  %v3874_v35 = vshll.u32 %v8618_v62, 16 }
 0x105   : > { %10204 = vst [vmem:[#allocation16_spill] sm:$0xff] %v8594_v47  ;;  %v4494_v47 = vrot.slane %v4492_v52, 4  ;;  %v3847_v48 = vor.u32 %v3846_v21, %v3843_v3  ;;  %v8632_v21 = vpop.f32.mrf.mxu0  ;;  %v4506_v13 = vrot.slane %v8618_v62, 5  ;;  %v3858_v32 = vrot.slane %v3857_v49, 4 }
 0x106   : > { %6586 = vmatmul.mubr.msk.bf16.gmra.mxu1 %vm795_vm3, %v10203_v10  ;;  %v3815_v10 = vsel %vm7059_vm4, %v3810_v4, %v8546_v33  ;;  %v3860_v33 = vshll.u32 %v8601_v24, 16  ;;  %v6115_v4 = vld [vmem:[%s7015_s17 + $0x54] sm:$0xe]  ;;  %4875 = vbcast.lane.b32.xlu0 %v4873_v46, 256  ;;  %v8627_v6 = vpop.f32.mrf.mxu1  ;;  %v8641_v1 = vsel %vm7345_vm7, %v6130_v7, %v4492_v52  ;;  %v8655_v52 = vld [vmem:[%s7015_s17 + $0x70] sm:$0xf] }
 0x107   : > { %6589 = vmatprep.mubr.msk.bf16.mxu1 %vm795_vm3, %v10205_v11  ;;  %v3838_v11 = vrot.slane %v3836_v57, 5  ;;  %4886 = vbcast.lane.b32.xlu1 %v4884_v16, 256  ;;  %10207 = vst [vmem:[#allocation18_spill] sm:$0xff] %v8627_v6  ;;  %v4499_v57 = vrot.slane %v8526_v61, 5  ;;  %v8634_v3 = vcombine.low %v3805_v27, %v3815_v10  ;;  %v3878_v61 = vshrl.u32 %v8618_v62, 16 }
 0x108   : > { %v8650_v27 = vsel %vm7345_vm7, %v4494_v47, %v4495_v5  ;;  %v6116_v10 = vld [vmem:[%s7015_s17 + $0x60] sm:$0xe]  ;;  %v3848_v7 = vrot.slane %v3847_v48, 4  ;;  %v3862_v6 = vrot.slane %v3860_v33, 5  ;;  %v8662_v5 = vpop.f32.mrf.mxu1  ;;  %v6049_v62 = vld [vmem:[%s7015_s17 + $0x68] sm:$0x1] }
 0x109   : > { %v3839_v22 = vsel %vm7059_vm4, %v3834_v14, %v3838_v11  ;;  %v10208_v14 = vcombine.low %v8224_v43, %v8241_v2  ;;  %10209 = vst [vmem:[#allocation12_spill] sm:$0xff] %v8662_v5  ;;  %v4501_v47 = vrot.slane %v4499_v57, 4  ;;  %v3871_v11 = vor.u32 %v3870_v44, %v3867_v39  ;;  %v6821_v39 = vld [vmem:[%s7015_s17 + $0xa8] sm:$0xff]  }
 0x10a   : > { %4879 = vbcast.lane.b32.xlu0 %v4873_v46, 264  ;;  %v8668_v48 = vsub.s32 2, %v8573_v53  ;;  %v6820_v46 = vld [vmem:[%s7015_s17 + $0x9c] sm:$0xff]   ;;  %v3880_v43 = vrot.slane %v3878_v61, 4  ;;  %v6132_v2 = vrot.slane %v6116_v10, 9  ;;  %v4509_v49 = vrot.slane %v6049_v62, 5 }
 0x10b   : > { %6624 = vmatmul.mubr.msk.bf16.gmra.mxu0 %vm795_vm3, %v6818_v28  ;;  %v6131_v28 = vrot.slane %v6115_v4, 9  ;;  %4890 = vbcast.lane.b32.xlu1 %v4884_v16, 264  ;;  %v8665_v4 = vrot.slane %v3874_v35, 5  ;;  %v8675_v16 = vpop.f32.mrf.mxu0  ;;  %v8678_v33 = vsub.s32 3, %v8573_v53  ;;  %v4508_v35 = vrot.slane %v4506_v13, 4 }
 0x10c   : > { %6627 = vmatprep.mubr.msk.bf16.mxu0 %vm795_vm3, %v6819_v25  ;;  %v4502_v25 = vrot.slane %v8601_v24, 5  ;;  %10210 = vst [vmem:[#allocation14_spill] sm:$0xff] %v8668_v48  ;;  %v10211_v24 = vcombine.low %v8245_v59, %v8255_v50  ;;  %10212 = vst [vmem:[#allocation19_spill] sm:$0xff] %v8675_v16  ;;  %v3889_v44 = vshrl.u32 %v6050_v8, 16  ;;  %v4895_v5 = vrot.slane %v8580_v38, %v8668_v48  ;;  %v6053_v50 = vld [vmem:[%s7015_s17 + $0x78] sm:$0xf] }
 0x10d   : > { %10213 = vst [vmem:[#allocation20_spill] sm:$0xff] %v8678_v33  ;;  %v8683_v59 = vcombine.low %v3829_v18, %v3839_v22  ;;  %v3898_v61 = vshll.u32 %v8655_v52, 16  ;;  %v3902_v10 = vshrl.u32 %v8655_v52, 16  ;;  %v3853_v16 = vsel %vm7059_vm4, %v3848_v7, %v8582_v9 }
 0x10e   : > { %6590 = vmatmul.mubr.msk.bf16.gmra.mxu1 %vm795_vm3, %v10208_v14  ;;  %v3892_v14 = vshll.u32 %v6050_v8, 16  ;;  %v8696_v8 = vsel %vm7345_vm7, %v6131_v28, %v4499_v57  ;;  %v3884_v18 = vshll.u32 %v6049_v62, 16  ;;  %4897 = vbcast.lane.b32.xlu0 %v4895_v5, 256  ;;  %v4906_v22 = vrot.slane %v8580_v38, %v8678_v33 }
 0x10f   : > { %6593 = vmatprep.mubr.msk.bf16.mxu1 %vm795_vm3, %v10211_v24  ;;  %v8689_v24 = vpop.f32.mrf.mxu1  ;;  %4901 = vbcast.lane.b32.xlu1 %v4895_v5, 264  ;;  %v3863_v9 = vsel %vm7059_vm4, %v3858_v32, %v3862_v6  ;;  %v8708_v57 = vsel %vm7345_vm7, %v4501_v47, %v4502_v25  ;;  %v8710_v28 = vrot.slane %v3871_v11, 4  ;;  %v3881_v7 = vor.u32 %v3880_v43, %v8665_v4  ;;  %v8714_v5 = vld [vmem:[%s7015_s17 + $0x74] sm:$0x1]  ;;  %v8726_v47 = vld [vmem:[%s7015_s17 + $0x7c] sm:$0xf] }
 0x110   : > { %10214 = vst [vmem:[#allocation21_spill] sm:$0xff] %v8689_v24  ;;  %10216 = vst [vmem:[#allocation23_spill] sm:$0xff] %v8708_v57  ;;  %v8719_v62 = vsel %vm7345_vm7, %v6132_v2, %v4506_v13  ;;  %v8723_v6 = vsel %vm7345_vm7, %v4508_v35, %v4509_v49  ;;  %v3891_v32 = vrot.slane %v3889_v44, 4  ;;  %v3894_v25 = vrot.slane %v3892_v14, 5  ;;  %v8731_v43 = vld [vmem:[%s7015_s17 + $0x6c] sm:$0xe] }
 0x111   : > { %v8702_v24 = vpop.f32.mrf.mxu0  ;;  %10217 = vst [vmem:[#allocation24_spill] sm:$0xff] %v8719_v62  ;;  %10218 = vst [vmem:[#allocation25_spill] sm:$0xff] %v8723_v6  ;;  %v8728_v11 = vrot.slane %v3898_v61, 5  ;;  %v3913_v33 = vshrl.u32 %v6053_v50, 16  ;;  %v10219_v13 = vcombine.low %v8263_v54, %v8278_v56  ;;  %v6822_v49 = vld [vmem:[%s7015_s17 + $0xb4] sm:$0xff]   ;;  %v8740_v35 = vcombine.low %v3853_v16, %v3863_v9  ;;  %v6823_v44 = vld [vmem:[%s7015_s17 + $0xc0] sm:$0xff]  }
 0x112   : > { %10215 = vst [vmem:[#allocation22_spill] sm:$0xff] %v8702_v24  ;;  %v8744_v14 = vrot.slane %v3884_v18, 5  ;;  %v3908_v61 = vshll.u32 %v8714_v5, 16  ;;  %4908 = vbcast.lane.b32.xlu0 %v4906_v22, 256  ;;  %v10222_v54 = vcombine.low %v8270_v29, %v8291_v42  ;;  %v3922_v18 = vshll.u32 %v8726_v47, 16 }
 0x113   : > { %6628 = vmatmul.mubr.msk.bf16.gmra.mxu0 %vm795_vm3, %v6820_v46  ;;  %v3904_v46 = vrot.slane %v3902_v10, 4  ;;  %10221 = vst [vmem:[#allocation27_spill] sm:$0xff] %v8740_v35  ;;  %v8752_v56 = vpop.f32.mrf.mxu0  ;;  %v8758_v10 = vrot.slane %v3881_v7, 4  ;;  %v3926_v9 = vshrl.u32 %v8726_v47, 16  ;;  %4912 = vbcast.lane.b32.xlu1 %v4906_v22, 264  ;;  %v3895_v42 = vor.u32 %v3894_v25, %v3891_v32 }
 0x114   : > { %6631 = vmatprep.mubr.msk.bf16.mxu0 %vm795_vm3, %v6821_v39  ;;  %v3916_v39 = vshll.u32 %v6053_v50, 16  ;;  %v6056_v50 = vld [vmem:[%s7015_s17 + $0x84] sm:$0xf]  ;;  %10223 = vst [vmem:[#allocation28_spill] sm:$0xff] %v8752_v56  ;;  %v3915_v16 = vrot.slane %v3913_v33, 4  ;;  %v8773_v35 = vrot.slane %v3908_v61, 5 }
 0x115   : > { %v3905_v7 = vor.u32 %v3904_v46, %v8728_v11  ;;  %v3937_v56 = vshrl.u32 %v6056_v50, 16  ;;  %v3940_v22 = vshll.u32 %v6056_v50, 16  ;;  %v8778_v25 = vpop.f32.mrf.mxu0  ;;  %v4516_v33 = vrot.slane %v8714_v5, 5  ;;  %v6055_v46 = vld [vmem:[%s7015_s17 + $0x80] sm:$0x1] }
 0x116   : > { %6594 = vmatmul.mubr.msk.bf16.gmra.mxu1 %vm795_vm3, %v10219_v13  ;;  %v8737_v2 = vpop.f32.mrf.mxu1  ;;  %v8763_v13 = vld [vmem:[%s7015_s17 + $0x88] sm:$0xf]  ;;  %v3918_v48 = vrot.slane %v3916_v39, 5  ;;  %10225 = vst [vmem:[#allocation30_spill] sm:$0xff] %v8778_v25  ;;  %v3928_v39 = vrot.slane %v3926_v9, 4  ;;  %v3896_v61 = vrot.slane %v3895_v42, 4 }
 0x117   : > { %10220 = vst [vmem:[#allocation26_spill] sm:$0xff] %v8737_v2  ;;  %6597 = vmatprep.mubr.msk.bf16.mxu1 %vm795_vm3, %v10222_v54  ;;  %v6133_v54 = vrot.slane %v8731_v43, 9  ;;  %v4513_v2 = vrot.slane %v8655_v52, 5  ;;  %v3946_v57 = vshll.u32 %v8763_v13, 16  ;;  %v3950_v32 = vshrl.u32 %v8763_v13, 16 }
 0x118   : > { %v8771_v24 = vpop.f32.mrf.mxu1  ;;  %v3887_v52 = vsel %vm7059_vm4, %v8758_v10, %v8744_v14  ;;  %v8786_v43 = vrot.slane %v3922_v18, 5  ;;  %v4520_v29 = vrot.slane %v8726_v47, 5  ;;  %v3906_v25 = vrot.slane %v3905_v7, 4  ;;  %v6118_v10 = vld [vmem:[%s7015_s17 + $0x78] sm:$0xe] }
 0x119   : > { %10224 = vst [vmem:[#allocation29_spill] sm:$0xff] %v8771_v24  ;;  %v4515_v50 = vrot.slane %v4513_v2, 4  ;;  %v6059_v24 = vld [vmem:[%s7015_s17 + $0x90] sm:$0xf]  ;;  %v3919_v14 = vor.u32 %v3918_v48, %v3915_v16  ;;  %v3939_v5 = vrot.slane %v3937_v56, 4  ;;  %v8796_v18 = vsub.s32 5, %v8573_v53  ;;  %v8808_v48 = vpop.f32.mrf.mxu0 }
 0x11a   : > { %v8802_v9 = vpop.f32.mrf.mxu1  ;;  %v3942_v47 = vrot.slane %v3940_v22, 5  ;;  %v8804_v42 = vrot.slane %v3946_v57, 5  ;;  %v3952_v6 = vrot.slane %v3950_v32, 4  ;;  %v10229_v56 = vcombine.low %v8302_v15, %v8330_v19  ;;  %v6824_v16 = vld [vmem:[%s7015_s17 + $0xcc] sm:$0xff]  }
 0x11b   : > { %6632 = vmatmul.mubr.msk.bf16.gmra.mxu0 %vm795_vm3, %v6822_v49  ;;  %v8791_v49 = vsub.s32 4, %v8573_v53  ;;  %10228 = vst [vmem:[#allocation32_spill] sm:$0xff] %v8802_v9  ;;  %v3961_v57 = vshrl.u32 %v6059_v24, 16  ;;  %v3964_v22 = vshll.u32 %v6059_v24, 16  ;;  %v6134_v32 = vrot.slane %v6118_v10, 9 }
 0x11c   : > { %6635 = vmatprep.mubr.msk.bf16.mxu0 %vm795_vm3, %v6823_v44  ;;  %v10227_v44 = vcombine.low %v8282_v30, %v8298_v58  ;;  %v3929_v30 = vor.u32 %v3928_v39, %v8786_v43  ;;  %v3932_v58 = vshll.u32 %v6055_v46, 16  ;;  %v4522_v9 = vrot.slane %v4520_v29, 4  ;;  %v8837_v10 = vpop.f32.mrf.mxu1 }
 0x11d   : > { %10226 = vst [vmem:[#allocation31_spill] sm:$0xff] %v8791_v49  ;;  %v4917_v7 = vrot.slane %v8580_v38, %v8791_v49  ;;  %v4523_v62 = vrot.slane %v6055_v46, 5  ;;  %v4928_v49 = vrot.slane %v8580_v38, %v8796_v18  ;;  %v3901_v15 = vsel %vm7059_vm4, %v3896_v61, %v8728_v11  ;;  %v8835_v46 = vld [vmem:[%s7015_s17 + $0x94] sm:$0xf]  ;;  %10230 = vst [vmem:[#allocation33_spill] sm:$0xff] %v8837_v10 }
 0x11e   : > { %6598 = vmatmul.mubr.msk.bf16.gmra.mxu1 %vm795_vm3, %v10227_v44  ;;  %v8817_v44 = vld [vmem:[%s7015_s17 + $0x8c] sm:$0x1]  ;;  %v8826_v19 = vsel %vm7345_vm7, %v6133_v54, %v4513_v2  ;;  %v8830_v39 = vsel %vm7345_vm7, %v4515_v50, %v4516_v33  ;;  %v8832_v24 = vrot.slane %v3919_v14, 4  ;;  %v3943_v11 = vor.u32 %v3942_v47, %v3939_v5 }
 0x11f   : > { %6601 = vmatprep.mubr.msk.bf16.mxu1 %vm795_vm3, %v10229_v56  ;;  %4919 = vbcast.lane.b32.xlu0 %v4917_v7, 256  ;;  %v3953_v61 = vor.u32 %v3952_v6, %v8804_v42  ;;  %v3956_v2 = vshll.u32 %v8817_v44, 16  ;;  %v3930_v33 = vrot.slane %v3929_v30, 4  ;;  %v3934_v50 = vrot.slane %v3932_v58, 5  ;;  %v6062_v30 = vld [vmem:[%s7015_s17 + $0x9c] sm:$0xf] }
 0x120   : > { %4923 = vbcast.lane.b32.xlu1 %v4917_v7, 264  ;;  %v3911_v7 = vsel %vm7059_vm4, %v3906_v25, %v8773_v35  ;;  %v3963_v14 = vrot.slane %v3961_v57, 4  ;;  %v3966_v56 = vrot.slane %v3964_v22, 5  ;;  %v10231_v10 = vcombine.low %v8418_v63, %v8422_v36  ;;  %v8860_v25 = vld [vmem:[%s7015_s17 + $0x84] sm:$0xe]  ;;  %v10285_v0 = vld [vmem:[#allocation26_spill] sm:$0xff] }
 0x121   : > { %v8853_v35 = vsel %vm7345_vm7, %v6134_v32, %v4520_v29  ;;  %v8857_v6 = vsel %vm7345_vm7, %v4522_v9, %v4523_v62  ;;  %v3970_v5 = vshll.u32 %v8835_v46, 16  ;;  %v3974_v47 = vshrl.u32 %v8835_v46, 16  ;;  %v8890_v32 = vld [vmem:[%s7015_s17 + $0xa0] sm:$0xf] }
 0x122   : > { %v10232_v63 = vsel %vm7059_vm4, %v8710_v28, %v8665_v4  ;;  %v8873_v29 = vcombine.low %v3901_v15, %v3911_v7  ;;  %v3925_v9 = vsel %vm7059_vm4, %v8832_v24, %v8786_v43  ;;  %v10233_v4 = vcombine.low %v8342_v12, %v8349_v34 }
 0x123   : > { %v8844_v54 = vpop.f32.mrf.mxu0  ;;  %6636 = vmatmul.mubr.msk.bf16.gmra.mxu0 %vm795_vm3, %v6824_v16  ;;  %4930 = vbcast.lane.b32.xlu0 %v4928_v49, 256  ;;  %v8871_v36 = vcombine.low %v10232_v63, %v3887_v52  ;;  %v3944_v28 = vrot.slane %v3943_v11, 4  ;;  %v3954_v52 = vrot.slane %v3953_v61, 4  ;;  %v3958_v57 = vrot.slane %v3956_v2, 5  ;;  %v6120_v11 = vld [vmem:[%s7015_s17 + $0x90] sm:$0xe] }
 0x124   : > { %6675 = vmatprep.mubr.msk.bf16.mxu0 %vm795_vm3, %v10231_v10  ;;  %4934 = vbcast.lane.b32.xlu1 %v4928_v49, 264  ;;  %v4527_v22 = vrot.slane %v8763_v13, 5  ;;  %v3935_v43 = vsel %vm7059_vm4, %v3930_v33, %v3934_v50  ;;  %v6135_v34 = vrot.slane %v8860_v25, 9  ;;  %v8902_v49 = vld [vmem:[%s7015_s17 + $0x98] sm:$0x1]  ;;  %v3967_v24 = vor.u32 %v3966_v56, %v3963_v14 }
 0x125   : > { %v8864_v16 = vpop.f32.mrf.mxu0  ;;  %v8906_v13 = vrot.slane %v3970_v5, 5  ;;  %v3976_v7 = vrot.slane %v3974_v47, 4  ;;  %v3985_v61 = vshrl.u32 %v6062_v30, 16  ;;  %v3988_v2 = vshll.u32 %v6062_v30, 16 }
 0x126   : > { %v8882_v58 = vpop.f32.mrf.mxu1  ;;  %6602 = vmatmul.mubr.msk.bf16.gmra.mxu1 %vm795_vm3, %v10233_v4  ;;  %v4530_v33 = vrot.slane %v8817_v44, 5  ;;  %v3994_v50 = vshll.u32 %v8890_v32, 16  ;;  %v3998_v63 = vshrl.u32 %v8890_v32, 16  ;;  %v8915_v25 = vsub.s32 6, %v8573_v53 }
 0x127   : > { %v8892_v15 = vpop.f32.mrf.mxu0  ;;  %6641 = vmatprep.mubr.msk.bf16.mxu1 %vm795_vm3, %v8507_v51  ;;  %v3949_v56 = vsel %vm7059_vm4, %v3944_v28, %v8804_v42  ;;  %v3959_v5 = vsel %vm7059_vm4, %v3954_v52, %v3958_v57  ;;  %v4529_v47 = vrot.slane %v4527_v22, 4  ;;  %v8925_v30 = vsub.s32 7, %v8573_v53 }
 0x128   : > { %v8904_v10 = vpop.f32.mrf.mxu1  ;;  %v10236_v4 = vcombine.low %v8469_v26, %v8473_v60  ;;  %v3980_v12 = vshll.u32 %v8902_v49, 16  ;;  %v6136_v62 = vrot.slane %v6120_v11, 9  ;;  %v4939_v42 = vrot.slane %v8580_v38, %v8915_v25 }
 0x129   : > { %10234 = vst [vmem:[#allocation34_spill] sm:$0xff] %v8904_v10  ;;  %v8909_v51 = vpop.f32.mrf.mxu0  ;;  %v10238_v53 = vcombine.low %v8484_v55, %v8496_v40  ;;  %v8941_v52 = vrot.slane %v3967_v24, 4  ;;  %v3977_v26 = vor.u32 %v3976_v7, %v8906_v13  ;;  %v3987_v60 = vrot.slane %v3985_v61, 4  ;;  %v8964_v61 = vld [vmem:[%s7015_s17 + $0xa4] sm:$0x1] }
 0x12a   : > { %v8917_v14 = vpop.f32.mrf.mxu1  ;;  %v3990_v57 = vrot.slane %v3988_v2, 5  ;;  %v4000_v10 = vrot.slane %v3998_v63, 4  ;;  %4941 = vbcast.lane.b32.xlu0 %v4939_v42, 256  ;;  %4945 = vbcast.lane.b32.xlu1 %v4939_v42, 264  ;;  %v4950_v55 = vrot.slane %v8580_v38, %v8925_v30  ;;  %v8952_v24 = vcombine.low %v3949_v56, %v3959_v5  ;;  %v8975_v63 = vld [vmem:[%s7015_s17 + $0xac] sm:$0xf] }
 0x12b   : > { %10235 = vst [vmem:[#allocation35_spill] sm:$0xff] %v8917_v14  ;;  %v6473_v44 = vpop.f32.mrf.mxu0  ;;  %6676 = vmatmul.mubr.msk.bf16.vlgmr.msra.gmra.mxu0 %vm795_vm3, %v10236_v4  ;;  %v4534_v14 = vrot.slane %v8835_v46, 5  ;;  %v8944_v4 = vcombine.low %v3925_v9, %v3935_v43  ;;  %v8946_v46 = vrot.slane %v3994_v50, 5  ;;  %v8956_v9 = vsel %vm7345_vm7, %v6135_v34, %v4527_v22  ;;  %v6065_v50 = vld [vmem:[%s7015_s17 + $0xa8] sm:$0xf] }
 0x12c   : > { %v8935_v28 = vpop.f32.mrf.mxu1  ;;  %6679 = vmatprep.mubr.msk.bf16.mxu0 %vm795_vm3, %v10238_v53  ;;  %v8960_v43 = vsel %vm7345_vm7, %v4529_v47, %v4530_v33  ;;  %v4537_v7 = vrot.slane %v8902_v49, 5  ;;  %v3973_v49 = vsel %vm7059_vm4, %v8941_v52, %v8906_v13  ;;  %v3991_v56 = vor.u32 %v3990_v57, %v3987_v60  ;;  %v6121_v5 = vld [vmem:[%s7015_s17 + $0x9c] sm:$0xe] }
 0x12d   : > { %10237 = vst [vmem:[#allocation36_spill] sm:$0xff] %v8935_v28  ;;  %v1599_v11 = vpop.f32.mrf.mxu0  ;;  %v8971_v22 = vsel %vm7345_vm7, %v6136_v62, %v4534_v14  ;;  %v4536_v34 = vrot.slane %v4534_v14, 4  ;;  %v4001_v14 = vor.u32 %v4000_v10, %v8946_v46  ;;  %v4004_v42 = vshll.u32 %v8964_v61, 16 }
 0x12e   : > { %v6439_v40 = vpop.f32.mrf.mxu1  ;;  %6642 = vmatmul.mubr.msk.bf16.vlgmr.msra.gmra.mxu1 %vm795_vm3, %v8509_v41  ;;  %v3982_v41 = vrot.slane %v3980_v12, 5  ;;  %4952 = vbcast.lane.b32.xlu0 %v4950_v55, 256  ;;  %v4012_v28 = vshll.u32 %v6065_v50, 16  ;;  %v4018_v13 = vshll.u32 %v8975_v63, 16  ;;  %v4022_v52 = vshrl.u32 %v8975_v63, 16 }
 0x12f   : > { %v1183_v38 = vadd.f32 %v6439_v40, %v8430_v23  ;;  %v6474_v2 = vpop.f32.mrf.mxu0  ;;  %6645 = vmatprep.mubr.msk.bf16.mxu1 %vm795_vm3, %v8537_v17  ;;  %v3978_v23 = vrot.slane %v3977_v26, 4  ;;  %v4541_v17 = vrot.slane %v8890_v32, 5  ;;  %4956 = vbcast.lane.b32.xlu1 %v4950_v55, 264  ;;  %v4009_v40 = vshrl.u32 %v6065_v50, 16  ;;  %v10239_v32 = vld [vmem:[#allocation9_spill] sm:$0xff] }
 0x130   : > { %v1174_v33 = vpop.f32.mrf.mxu1  ;;  %v8999_v10 = vsel %vm7345_vm7, %v4536_v34, %v4537_v7  ;;  %v6137_v57 = vrot.slane %v6121_v5, 9  ;;  %v3992_v50 = vrot.slane %v3991_v56, 4  ;;  %v4002_v5 = vrot.slane %v4001_v14, 4  ;;  %v9016_v56 = vld [vmem:[%s8555_s27 + $0x8] sm:$0xff]  ;;  %v9028_v14 = vld [vmem:[%s7015_s17 + $0xb0] sm:$0x1] }
 0x131   : > { %v8983_v12 = vadd.f32 %v6473_v44, %v1183_v38  ;;  %v1175_v62 = vadd.f32 %v1174_v33, %v8454_v20  ;;  %v1602_v47 = vpop.f32.mrf.mxu0  ;;  %v10240_v20 = vcombine.low %v8561_v37, %v8598_v45  ;;  %v10241_v38 = vcombine.low %v8641_v1, %v8650_v27  ;;  %s6905_s27 = smov [#allocation2]  }
 0x132   : > { %v6440_v53 = vpop.f32.mrf.mxu1  ;;  %v4543_v33 = vrot.slane %v4541_v17, 4  ;;  %v4544_v37 = vrot.slane %v8964_v61, 5  ;;  %v4011_v1 = vrot.slane %v4009_v40, 4  ;;  %v4014_v27 = vrot.slane %v4012_v28, 5  ;;  %v10254_v28 = vld [vmem:[#allocation25_spill] sm:$0xff]  ;;  %s6831_s29 = sshll.u32 %s6905_s27, 4  ;;  %s6832_s29 = int_to_ptr.vmem [resolvable:$false] %s6831_s29 }
 0x133   : > { %v8990_v26 = vadd.f32 %v1599_v11, %v1175_v62  ;;  %v1186_v44 = vadd.f32 %v6440_v53, %v10239_v32  ;;  %v6477_v60 = vpop.f32.mrf.mxu0  ;;  %6680 = vmatmul.mubr.msk.bf16.gmra.mxu0 %vm795_vm3, %v10240_v20  ;;  %v3983_v11 = vsel %vm7059_vm4, %v3978_v23, %v3982_v41  ;;  %v10243_v62 = vld [vmem:[#allocation11_spill] sm:$0xff]  ;;  %v4006_v53 = vrot.slane %v4004_v42, 5  ;;  %s6833_s7 = scalar_lea.vmem %s6832_s29, 4096  ;;  %p6834_p1 = scmp.lt.s32.totalorder %s10004_s14, %s6832_s29 }
 0x134   : > { %v1177_v55 = vpop.f32.mrf.mxu1  ;;  %6683 = vmatprep.mubr.msk.bf16.mxu0 %vm795_vm3, %v10241_v38  ;;  %v9013_v41 = vrot.slane %v4018_v13, 5  ;;  %v4024_v23 = vrot.slane %v4022_v52, 4  ;;  %v9030_v40 = vcombine.low %v3973_v49, %v3983_v11  ;;  %v9037_v13 = vsel %vm7345_vm7, %v6137_v57, %v4541_v17  ;;  %v6122_v52 = vld [vmem:[%s7015_s17 + $0xa8] sm:$0xe]  ;;  %v10247_v38 = vld [vmem:[#allocation17_spill] sm:$0xff]  ;;  %p6835_p2 = scmp.lt.s32.totalorder %s6833_s7, %s6827_s25 }
 0x135   : > { %v9008_v45 = vadd.f32 %v6474_v2, %v1186_v44  ;;  %v1178_v7 = vadd.f32 %v1177_v55, %v10243_v62  ;;  %v1615_v34 = vpop.f32.mrf.mxu0  ;;  %v10245_v2 = vld [vmem:[#allocation15_spill] sm:$0xff]  ;;  %v4007_v11 = vsel %vm7059_vm4, %v4002_v5, %v4006_v53  ;;  %v4015_v17 = vor.u32 %v4014_v27, %v4011_v1  ;;  %v10252_v27 = vld [vmem:[#allocation5_spill] sm:$0xff] }
 0x136   : > { %v6443_v32 = vpop.f32.mrf.mxu1  ;;  %6646 = vmatmul.mubr.msk.bf16.gmra.mxu1 %vm795_vm3, %v8634_v3  ;;  %v4025_v57 = vor.u32 %v4024_v23, %v9013_v41  ;;  %v10250_v5 = vld [vmem:[#allocation23_spill] sm:$0xff]  ;;  %v6138_v1 = vrot.slane %v6122_v52, 9  ;;  %v4972_v23 = vrot.slane %v9016_v56, %v10252_v27  ;;  %p6836_p3 = por %p6835_p2, %p6834_p1 }
 0x137   : > { %10242 = vst [vmem:[#allocation9_spill] sm:$0xff] %v9008_v45  ;;  %v9018_v61 = vadd.f32 %v1602_v47, %v1178_v7  ;;  %v1199_v44 = vadd.f32 %v6443_v32, %v10245_v2  ;;  %v6478_v20 = vpop.f32.mrf.mxu0  ;;  %6649 = vmatprep.mubr.msk.bf16.mxu1 %vm795_vm3, %v8683_v59  ;;  %v3997_v47 = vsel %vm7059_vm4, %v3992_v50, %v8946_v46  ;;  %v6068_v7 = vld [vmem:[%s7015_s17 + $0xb4] sm:$0xf]  ;;  %v10248_v32 = vld [vmem:[#allocation13_spill] sm:$0xff] }
 0x138   : > { %v1190_v42 = vpop.f32.mrf.mxu1  ;;  %v9041_v59 = vsel %vm7345_vm7, %v4543_v33, %v4544_v37  ;;  %v4961_v46 = vrot.slane %v9016_v56, %v10248_v32  ;;  %v4028_v33 = vshll.u32 %v9028_v14, 16  ;;  %v4548_v37 = vrot.slane %v8975_v63, 5  ;;  %v10253_v63 = vld [vmem:[#allocation24_spill] sm:$0xff]  ;;  %v10257_v52 = vld [vmem:[#allocation19_spill] sm:$0xff]  ;;  %p6837_p5 = pnand %p6836_p3, %p6830_p0 }
 0x139   : > { %10244 = vst [vmem:[#allocation11_spill] sm:$0xff] %v9018_v61  ;;  %v9044_v55 = vadd.f32 %v6477_v60, %v1199_v44  ;;  %v1191_v62 = vadd.f32 %v1190_v42, %v10247_v38  ;;  %v1618_v49 = vpop.f32.mrf.mxu0  ;;  %v9056_v60 = vld [vmem:[%s7015_s17 + $0xb8] sm:$0xf]  ;;  %v10251_v53 = vcombine.low %v8696_v8, %v10250_v5  ;;  %v10255_v3 = vcombine.low %v10253_v63, %v10254_v28  ;;  %v6071_v63 = vld [vmem:[%s7015_s17 + $0xc0] sm:$0xf] }
 0x13a   : > { %v6444_v50 = vpop.f32.mrf.mxu1  ;;  %4963 = vbcast.lane.b32.xlu0 %v4961_v46, 256  ;;  %v4033_v8 = vshrl.u32 %v6068_v7, 16  ;;  %4967 = vbcast.lane.b32.xlu1 %v4961_v46, 264  ;;  %v4046_v28 = vshrl.u32 %v9056_v60, 16  ;;  %v10260_v46 = vld [vmem:[#allocation22_spill] sm:$0xff] }
 0x13b   : > { %10246 = vst [vmem:[#allocation15_spill] sm:$0xff] %v9044_v55  ;;  %v9058_v2 = vadd.f32 %v1615_v34, %v1191_v62  ;;  %v1202_v44 = vadd.f32 %v6444_v50, %v8632_v21  ;;  %v6481_v42 = vpop.f32.mrf.mxu0  ;;  %6684 = vmatmul.mubr.msk.bf16.gmra.mxu0 %vm795_vm3, %v10251_v53  ;;  %v9071_v34 = vcombine.low %v3997_v47, %v4007_v11  ;;  %v4036_v62 = vshll.u32 %v6068_v7, 16  ;;  %v10258_v47 = vld [vmem:[#allocation27_spill] sm:$0xff] }
 0x13c   : > { %v1193_v38 = vpop.f32.mrf.mxu1  ;;  %6687 = vmatprep.mubr.msk.bf16.mxu0 %vm795_vm3, %v10255_v3  ;;  %v4016_v11 = vrot.slane %v4015_v17, 4  ;;  %v4030_v21 = vrot.slane %v4028_v33, 5  ;;  %v4550_v55 = vrot.slane %v4548_v37, 4  ;;  %v4551_v7 = vrot.slane %v9028_v14, 5  ;;  %v9094_v17 = vld [vmem:[%s7015_s17 + $0xc4] sm:$0xf] }
 0x13d   : > { %10249 = vst [vmem:[#allocation17_spill] sm:$0xff] %v9058_v2  ;;  %v9075_v50 = vadd.f32 %v6478_v20, %v1202_v44  ;;  %v1194_v5 = vadd.f32 %v1193_v38, %v10257_v52  ;;  %v1631_v53 = vpop.f32.mrf.mxu0  ;;  %v4042_v2 = vshll.u32 %v9056_v60, 16  ;;  %v4026_v52 = vrot.slane %v4025_v57, 4  ;;  %v6070_v57 = vld [vmem:[%s7015_s17 + $0xbc] sm:$0x1] }
 0x13e   : > { %v6447_v3 = vpop.f32.mrf.mxu1  ;;  %6650 = vmatmul.mubr.msk.bf16.gmra.mxu1 %vm795_vm3, %v10258_v47  ;;  %4974 = vbcast.lane.b32.xlu0 %v4972_v23, 256  ;;  %v4035_v47 = vrot.slane %v4033_v8, 4  ;;  %v4038_v14 = vrot.slane %v4036_v62, 5  ;;  %v4021_v45 = vsel %vm7059_vm4, %v4016_v11, %v9013_v41  ;;  %v9107_v8 = vsel %vm7345_vm7, %v4550_v55, %v4551_v7  ;;  %v6123_v55 = vld [vmem:[%s7015_s17 + $0xb4] sm:$0xe] }
 0x13f   : > { %10256 = vst [vmem:[#allocation13_spill] sm:$0xff] %v9075_v50  ;;  %v9084_v20 = vadd.f32 %v1618_v49, %v1194_v5  ;;  %v1215_v44 = vadd.f32 %v6447_v3, %v10260_v46  ;;  %v6482_v38 = vpop.f32.mrf.mxu0  ;;  %6653 = vmatprep.mubr.msk.bf16.mxu1 %vm795_vm3, %v8871_v36  ;;  %v9091_v50 = vsel %vm7345_vm7, %v6138_v1, %v4548_v37  ;;  %v4057_v49 = vshrl.u32 %v6071_v63, 16  ;;  %v10261_v46 = vld [vmem:[#allocation28_spill] sm:$0xff] }
 0x140   : > { %v1206_v33 = vpop.f32.mrf.mxu1  ;;  %v4060_v5 = vshll.u32 %v6071_v63, 16  ;;  %4978 = vbcast.lane.b32.xlu1 %v4972_v23, 264  ;;  %v9100_v61 = vrot.slane %v4042_v2, 5  ;;  %v4048_v37 = vrot.slane %v4046_v28, 4  ;;  %v4070_v23 = vshrl.u32 %v9094_v17, 16  ;;  %v10262_v63 = vld [vmem:[#allocation30_spill] sm:$0xff] }
 0x141   : > { %10259 = vst [vmem:[#allocation23_spill] sm:$0xff] %v9084_v20  ;;  %v9096_v3 = vadd.f32 %v6481_v42, %v1215_v44  ;;  %v1207_v20 = vadd.f32 %v1206_v33, %v10261_v46  ;;  %v1634_v36 = vpop.f32.mrf.mxu0  ;;  %v4066_v42 = vshll.u32 %v9094_v17, 16  ;;  %v10263_v28 = vcombine.low %v8826_v19, %v8830_v39 }
 0x142   : > { %v6448_v1 = vpop.f32.mrf.mxu1  ;;  %v4031_v41 = vsel %vm7059_vm4, %v4026_v52, %v4030_v21  ;;  %v4555_v11 = vrot.slane %v9056_v60, 5  ;;  %v4052_v33 = vshll.u32 %v6070_v57, 16  ;;  %v4059_v46 = vrot.slane %v4057_v49, 4  ;;  %v9133_v52 = vld [vmem:[%s7015_s17 + $0xc8] sm:$0x1] }
 0x143   : > { %v9111_v62 = vadd.f32 %v1631_v53, %v1207_v20  ;;  %v1218_v44 = vadd.f32 %v6448_v1, %v10262_v63  ;;  %v6485_v2 = vpop.f32.mrf.mxu0  ;;  %6688 = vmatmul.mubr.msk.bf16.gmra.mxu0 %vm795_vm3, %v10263_v28  ;;  %v10264_v53 = vcombine.low %v8853_v35, %v8857_v6  ;;  %v4039_v20 = vor.u32 %v4038_v14, %v4035_v47  ;;  %v6124_v28 = vld [vmem:[%s7015_s17 + $0xc0] sm:$0xe] }
 0x144   : > { %v1209_v7 = vpop.f32.mrf.mxu1  ;;  %v4062_v1 = vrot.slane %v4060_v5, 5  ;;  %v4049_v60 = vor.u32 %v4048_v37, %v9100_v61  ;;  %v9137_v6 = vcombine.low %v4021_v45, %v4031_v41  ;;  %v9139_v47 = vrot.slane %v4066_v42, 5 }
 0x145   : > { %6691 = vmatprep.mubr.msk.bf16.mxu0 %vm795_vm3, %v10264_v53  ;;  %v9126_v19 = vadd.f32 %v6482_v38, %v1218_v44  ;;  %v1210_v39 = vadd.f32 %v1209_v7, %v8808_v48  ;;  %v1647_v63 = vpop.f32.mrf.mxu0  ;;  %v6139_v38 = vrot.slane %v6123_v55, 9  ;;  %v4072_v48 = vrot.slane %v4070_v23, 4  ;;  %v6074_v23 = vld [vmem:[%s7015_s17 + $0xcc] sm:$0xf] }
 0x146   : > { %v6451_v35 = vpop.f32.mrf.mxu1  ;;  %6654 = vmatmul.mubr.msk.bf16.gmra.mxu1 %vm795_vm3, %v8873_v29  ;;  %v4557_v37 = vrot.slane %v4555_v11, 4  ;;  %v4558_v44 = vrot.slane %v6070_v57, 5  ;;  %v9147_v29 = vrot.slane %v4039_v20, 4  ;;  %v9149_v45 = vrot.slane %v4052_v33, 5 }
 0x147   : > { %v9141_v14 = vadd.f32 %v1634_v36, %v1210_v39  ;;  %v1231_v49 = vadd.f32 %v6451_v35, %v8844_v54  ;;  %v6486_v5 = vpop.f32.mrf.mxu0  ;;  %6657 = vmatprep.mubr.msk.bf16.mxu1 %vm795_vm3, %v8944_v4  ;;  %v4063_v41 = vor.u32 %v4062_v1, %v4059_v46  ;;  %v4076_v42 = vshll.u32 %v9133_v52, 16  ;;  %v10266_v1 = vld [vmem:[#allocation14_spill] sm:$0xff]  ;;  %v9178_v35 = vld [vmem:[%s7015_s17 + $0xd0] sm:$0xf] }
 0x148   : > { %v1222_v7 = vpop.f32.mrf.mxu1  ;;  %v9156_v53 = vrot.slane %v4049_v60, 4  ;;  %v4562_v4 = vrot.slane %v9094_v17, 5  ;;  %v9161_v20 = vsel %vm7345_vm7, %v6139_v38, %v4555_v11  ;;  %v4073_v33 = vor.u32 %v4072_v48, %v9139_v47 }
 0x149   : > { %v9153_v36 = vadd.f32 %v6485_v2, %v1231_v49  ;;  %v1223_v54 = vadd.f32 %v1222_v7, %v8864_v16  ;;  %v1650_v55 = vpop.f32.mrf.mxu0  ;;  %v6140_v46 = vrot.slane %v6124_v28, 9  ;;  %v4983_v2 = vrot.slane %v9016_v56, %v10266_v1 }
 0x14a   : > { %v6452_v57 = vpop.f32.mrf.mxu1  ;;  %v10268_v17 = vcombine.low %v8956_v9, %v8960_v43  ;;  %v9175_v11 = vsel %vm7345_vm7, %v4557_v37, %v4558_v44  ;;  %v4081_v38 = vshrl.u32 %v6074_v23, 16  ;;  %v9186_v49 = vrot.slane %v4076_v42, 5  ;;  %v10270_v43 = vld [vmem:[#allocation20_spill] sm:$0xff] }
 0x14b   : > { %10265 = vst [vmem:[#allocation5_spill] sm:$0xff] %v9153_v36  ;;  %v9166_v39 = vadd.f32 %v1647_v63, %v1223_v54  ;;  %v1234_v16 = vadd.f32 %v6452_v57, %v8892_v15  ;;  %v6489_v60 = vpop.f32.mrf.mxu0  ;;  %v10269_v63 = vcombine.low %v8971_v22, %v8999_v10  ;;  %v9184_v15 = vrot.slane %v4063_v41, 4  ;;  %4985 = vbcast.lane.b32.xlu0 %v4983_v2, 256  ;;  %v10273_v57 = vld [vmem:[#allocation7_spill] sm:$0xff] }
 0x14c   : > { %6692 = vmatmul.mubr.msk.bf16.gmra.mxu0 %vm795_vm3, %v10268_v17  ;;  %v1225_v48 = vpop.f32.mrf.mxu1  ;;  %v4565_v9 = vrot.slane %v9133_v52, 5  ;;  %v4994_v37 = vrot.slane %v9016_v56, %v10270_v43  ;;  %v4564_v28 = vrot.slane %v4562_v4, 4  ;;  %v4084_v7 = vshll.u32 %v6074_v23, 16  ;;  %4989 = vbcast.lane.b32.xlu1 %v4983_v2, 264 }
 0x14d   : > { %10267 = vst [vmem:[#allocation24_spill] sm:$0xff] %v9166_v39  ;;  %6695 = vmatprep.mubr.msk.bf16.mxu0 %vm795_vm3, %v10269_v63  ;;  %v9198_v44 = vadd.f32 %v6486_v5, %v1234_v16  ;;  %v1226_v22 = vadd.f32 %v1225_v48, %v8909_v51  ;;  %v1663_v10 = vpop.f32.mrf.mxu0  ;;  %v9203_v41 = vrot.slane %v4073_v33, 4  ;;  %v9207_v42 = vsel %vm7345_vm7, %v6140_v46, %v4562_v4  ;;  %v10274_v33 = vld [vmem:[#allocation31_spill] sm:$0xff]  ;;  %v9221_v4 = vld [vmem:[%s9196_s8] sm:$0xff]  ;;  %v10275_v63 = vld [vmem:[#allocation6_spill] sm:$0xff] }
 0x14e   : > { %v6455_v52 = vpop.f32.mrf.mxu1  ;;  %6658 = vmatmul.mubr.msk.bf16.gmra.mxu1 %vm795_vm3, %v8952_v24  ;;  %v4090_v5 = vshll.u32 %v9178_v35, 16  ;;  %v4094_v54 = vshrl.u32 %v9178_v35, 16  ;;  %v9216_v24 = vrot.slane %v4081_v38, 4  ;;  %v5005_v2 = vrot.slane %v9016_v56, %v10274_v33 }
 0x14f   : > { %10271 = vst [vmem:[#allocation25_spill] sm:$0xff] %v9198_v44  ;;  %v9211_v51 = vadd.f32 %v1650_v55, %v1226_v22  ;;  %v1247_v16 = vadd.f32 %v6455_v52, %v10273_v57  ;;  %v6490_v23 = vpop.f32.mrf.mxu0  ;;  %6661 = vmatprep.mubr.msk.bf16.mxu1 %vm795_vm3, %v9030_v40  ;;  %4996 = vbcast.lane.b32.xlu0 %v4994_v37, 256  ;;  %v4086_v21 = vrot.slane %v4084_v7, 5 }
 0x150   : > { %v1238_v46 = vpop.f32.mrf.mxu1  ;;  %v9225_v55 = vrot.slane %v9221_v4, %v10274_v33  ;;  %v9229_v17 = vrot.slane %v9221_v4, %v8796_v18  ;;  %v9233_v40 = vrot.slane %v9221_v4, %v8915_v25  ;;  %v9237_v38 = vrot.slane %v9221_v4, %v8925_v30  ;;  %5000 = vbcast.lane.b32.xlu1 %v4994_v37, 264 }
 0x151   : > { %10272 = vst [vmem:[#allocation19_spill] sm:$0xff] %v9211_v51  ;;  %v9239_v48 = vadd.f32 %v6489_v60, %v1247_v16  ;;  %v1239_v22 = vadd.f32 %v1238_v46, %v10275_v63  ;;  %v1666_v52 = vpop.f32.mrf.mxu0  ;;  %v9244_v57 = vsel %vm7345_vm7, %v4564_v28, %v4565_v9  ;;  %v9247_v51 = vld [vmem:[%s9196_s8 + $0x8] sm:$0xff]  ;;  %v9249_v39 = vrot.slane %v4090_v5, 5  ;;  %v10276_v9 = vld [vmem:[#allocation8_spill] sm:$0xff] }
 0x152   : > { %v6456_v44 = vpop.f32.mrf.mxu1  ;;  %v4096_v36 = vrot.slane %v4094_v54, 4  ;;  %v9253_v60 = vrot.slane %v9247_v51, %v10274_v33  ;;  %v9257_v16 = vrot.slane %v9247_v51, %v8796_v18  ;;  %v10277_v7 = vcombine.low %v9037_v13, %v9041_v59  ;;  %v6076_v59 = vld [vmem:[%s7015_s17 + $0xd4] sm:$0x1] }
 0x153   : > { %v9259_v46 = vadd.f32 %v1663_v10, %v1239_v22  ;;  %v1250_v28 = vadd.f32 %v6456_v44, %v10276_v9  ;;  %v6493_v37 = vpop.f32.mrf.mxu0  ;;  %v9268_v5 = vrot.slane %v9247_v51, %v8915_v25  ;;  %v9272_v54 = vrot.slane %v9247_v51, %v8925_v30  ;;  %5007 = vbcast.lane.b32.xlu0 %v5005_v2, 256  ;;  %v10280_v9 = vld [vmem:[#allocation10_spill] sm:$0xff] }
 0x154   : > { %6696 = vmatmul.mubr.msk.bf16.gmra.mxu0 %vm795_vm3, %v10277_v7  ;;  %v1241_v33 = vpop.f32.mrf.mxu1  ;;  %v10279_v10 = vcombine.low %v9091_v50, %v9107_v8  ;;  %v4045_v13 = vsel %vm7059_vm4, %v9147_v29, %v9100_v61  ;;  %v4569_v44 = vrot.slane %v9178_v35, 5  ;;  %v5016_v63 = vrot.slane %v9016_v56, %v8796_v18  ;;  %v6125_v8 = vld [vmem:[%s7015_s17 + $0xcc] sm:$0xe]  ;;  %5011 = vbcast.lane.b32.xlu1 %v5005_v2, 264 }
 0x155   : > { %10278 = vst [vmem:[#allocation27_spill] sm:$0xff] %v9272_v54  ;;  %v9286_v22 = vadd.f32 %v6490_v23, %v1250_v28  ;;  %v1242_v7 = vadd.f32 %v1241_v33, %v10280_v9  ;;  %v1679_v54 = vpop.f32.mrf.mxu0  ;;  %v4055_v50 = vsel %vm7059_vm4, %v9156_v53, %v9149_v45  ;;  %v6156_v61 = vcombine.low %v9161_v20, %v9175_v11  ;;  %v10281_v11 = vld [vmem:[#allocation16_spill] sm:$0xff] }
 0x156   : > { %6699 = vmatprep.mubr.msk.bf16.mxu0 %vm795_vm3, %v10279_v10  ;;  %v6459_v29 = vpop.f32.mrf.mxu1  ;;  %6662 = vmatmul.mubr.msk.bf16.gmra.mxu1 %vm795_vm3, %v9071_v34  ;;  %v4069_v18 = vsel %vm7059_vm4, %v9184_v15, %v9139_v47  ;;  %v4079_v35 = vsel %vm7059_vm4, %v9203_v41, %v9186_v49  ;;  %v6157_v45 = vcombine.low %v9207_v42, %v9244_v57  ;;  %v4100_v15 = vshll.u32 %v6076_v59, 16  ;;  %v10282_v42 = vld [vmem:[#allocation18_spill] sm:$0xff] }
 0x157   : > { %v4087_v53 = vor.u32 %v4086_v21, %v9216_v24  ;;  %v9309_v20 = vadd.f32 %v1666_v52, %v1242_v7  ;;  %v1263_v23 = vadd.f32 %v6459_v29, %v10281_v11  ;;  %v6494_v34 = vpop.f32.mrf.mxu0  ;;  %6665 = vmatprep.mubr.msk.bf16.mxu1 %vm795_vm3, %v9137_v6  ;;  %v4097_v47 = vor.u32 %v4096_v36, %v9249_v39  ;;  %v10283_v7 = vld [vmem:[#allocation12_spill] sm:$0xff] }
 0x158   : > { %v1254_v2 = vpop.f32.mrf.mxu1  ;;  %v6141_v28 = vrot.slane %v6125_v8, 9  ;;  %v4571_v33 = vrot.slane %v4569_v44, 4  ;;  %v4572_v49 = vrot.slane %v6076_v59, 5  ;;  %5018 = vbcast.lane.b32.xlu0 %v5016_v63, 256  ;;  %v5027_v41 = vrot.slane %v9016_v56, %v8915_v25  ;;  %5022 = vbcast.lane.b32.xlu1 %v5016_v63, 264 }
 0x159   : > { %v9317_v21 = vadd.f32 %v6493_v37, %v1263_v23  ;;  %v1255_v24 = vadd.f32 %v1254_v2, %v10282_v42  ;;  %v1682_v52 = vpop.f32.mrf.mxu0  ;;  %v6091_v10 = vcombine.low %v4045_v13, %v4055_v50  ;;  %v6092_v6 = vcombine.low %v4069_v18, %v4079_v35  ;;  %v10284_v50 = vld [vmem:[#allocation21_spill] sm:$0xff]  ;;  %v10287_v42 = vld [vmem:[#allocation32_spill] sm:$0xff] }
 0x15a   : > { %v6460_v57 = vpop.f32.mrf.mxu1  ;;  %v4088_v9 = vrot.slane %v4087_v53, 4  ;;  %v4098_v59 = vrot.slane %v4097_v47, 4  ;;  %v4102_v11 = vrot.slane %v4100_v15, 5  ;;  %v4570_v37 = vsel %vm7345_vm7, %v6141_v28, %v4569_v44  ;;  %v10286_v2 = vld [vmem:[#allocation29_spill] sm:$0xff] }
 0x15b   : > { %v9320_v36 = vadd.f32 %v1679_v54, %v1255_v24  ;;  %v1266_v8 = vadd.f32 %v6460_v57, %v10283_v7  ;;  %v6497_v29 = vpop.f32.mrf.mxu0  ;;  %v4573_v13 = vsel %vm7345_vm7, %v4571_v33, %v4572_v49  ;;  %v5038_v54 = vrot.slane %v9016_v56, %v8925_v30 }
 0x15c   : > { %6700 = vmatmul.mubr.msk.bf16.gmra.mxu0 %vm795_vm3, %v6156_v61  ;;  %v1257_v25 = vpop.f32.mrf.mxu1  ;;  %5029 = vbcast.lane.b32.xlu0 %v5027_v41, 256  ;;  %v4093_v44 = vsel %vm7059_vm4, %v4088_v9, %v9249_v39  ;;  %v4103_v30 = vsel %vm7059_vm4, %v4098_v59, %v4102_v11  ;;  %v6158_v56 = vcombine.low %v4570_v37, %v4573_v13 }
 0x15d   : > { %6703 = vmatprep.mubr.msk.bf16.mxu0 %vm795_vm3, %v6157_v45  ;;  %v9331_v63 = vadd.f32 %v6494_v34, %v1266_v8  ;;  %v1258_v18 = vadd.f32 %v1257_v25, %v10284_v50  ;;  %v1695_v61 = vpop.f32.mrf.mxu0  ;;  %5033 = vbcast.lane.b32.xlu1 %v5027_v41, 264  ;;  %v5051_v47 = vrot.slane %v9221_v4, %v10248_v32 }
 0x15e   : > { %v6463_v35 = vpop.f32.mrf.mxu1  ;;  %6666 = vmatmul.mubr.msk.bf16.gmra.mxu1 %vm795_vm3, %v6091_v10  ;;  %v6093_v49 = vcombine.low %v4093_v44, %v4103_v30  ;;  %v5062_v57 = vrot.slane %v9221_v4, %v10252_v27  ;;  %v5073_v37 = vrot.slane %v9221_v4, %v10266_v1  ;;  %v10290_v44 = vld [vmem:[#allocation35_spill] sm:$0xff] }
 0x15f   : > { %v9338_v45 = vadd.f32 %v1682_v52, %v1258_v18  ;;  %v1279_v53 = vadd.f32 %v6463_v35, %v10285_v0  ;;  %v6498_v23 = vpop.f32.mrf.mxu0  ;;  %6669 = vmatprep.mubr.msk.bf16.mxu1 %vm795_vm3, %v6092_v6  ;;  %v10288_v6 = vld [vmem:[#allocation33_spill] sm:$0xff] }
 0x160   : > { %v1270_v34 = vpop.f32.mrf.mxu1  ;;  %5040 = vbcast.lane.b32.xlu0 %v5038_v54, 256 }
 0x161   : > { %v9346_v15 = vadd.f32 %v6497_v29, %v1279_v53  ;;  %v1271_v39 = vadd.f32 %v1270_v34, %v10286_v2  ;;  %v1698_v28 = vpop.f32.mrf.mxu0  ;;  %5044 = vbcast.lane.b32.xlu1 %v5038_v54, 264  ;;  %v10289_v54 = vld [vmem:[#allocation34_spill] sm:$0xff] }
 0x162   : > { %v6464_v33 = vpop.f32.mrf.mxu1 }
 0x163   : > { %v9349_v41 = vadd.f32 %v1695_v61, %v1271_v39  ;;  %v1282_v24 = vadd.f32 %v6464_v33, %v10287_v42  ;;  %v6501_v31 = vpop.f32.mrf.mxu0 }
 0x164   : > { %6704 = vmatmul.mubr.msk.bf16.gmra.mxu0 %vm795_vm3, %v6158_v56  ;;  %v1273_v52 = vpop.f32.mrf.mxu1  ;;  %5053 = vbcast.lane.b32.xlu0 %v5051_v47, 256  ;;  %v10291_v56 = vld [vmem:[#allocation36_spill] sm:$0xff] }
 0x165   : > { %v9355_v10 = vadd.f32 %v6498_v23, %v1282_v24  ;;  %v1274_v9 = vadd.f32 %v1273_v52, %v10288_v6  ;;  %v1711_v7 = vpop.f32.mrf.mxu0  ;;  %5057 = vbcast.lane.b32.xlu1 %v5051_v47, 264 }
 0x166   : > { %v6467_v8 = vpop.f32.mrf.mxu1  ;;  %6670 = vmatmul.mubr.msk.bf16.gmra.mxu1 %vm795_vm3, %v6093_v49 }
 0x167   : > { %v9359_v29 = vadd.f32 %v1698_v28, %v1274_v9  ;;  %v1295_v59 = vadd.f32 %v6467_v8, %v8882_v58  ;;  %v6502_v11 = vpop.f32.mrf.mxu0  ;;  %v5084_v58 = vrot.slane %v9221_v4, %v10270_v43 }
 0x168   : > { %v1286_v25 = vpop.f32.mrf.mxu1  ;;  %5064 = vbcast.lane.b32.xlu0 %v5062_v57, 256 }
 0x169   : > { %v9364_v13 = vadd.f32 %v6501_v31, %v1295_v59  ;;  %v1287_v50 = vadd.f32 %v1286_v25, %v10289_v54  ;;  %v1714_v18 = vpop.f32.mrf.mxu0  ;;  %5068 = vbcast.lane.b32.xlu1 %v5062_v57, 264  ;;  %v10292_v57 = vld [vmem:[#allocation9_spill] sm:$0xff] }
 0x16a   : > { %v6468_v61 = vpop.f32.mrf.mxu1 }
 0x16b   : > { %v9367_v35 = vadd.f32 %v1711_v7, %v1287_v50  ;;  %v1298_v0 = vadd.f32 %v6468_v61, %v10290_v44  ;;  %v6541_v53 = vpop.f32.mrf.mxu0  ;;  %v10295_v44 = vld [vmem:[#allocation17_spill] sm:$0xff] }
 0x16c   : > { %v1289_v23 = vpop.f32.mrf.mxu1  ;;  %5075 = vbcast.lane.b32.xlu0 %v5073_v37, 256 }
 0x16d   : > { %v9372_v30 = vadd.f32 %v6502_v11, %v1298_v0  ;;  %v1290_v34 = vadd.f32 %v1289_v23, %v10291_v56  ;;  %v2684_v47 = vpop.f32.mrf.mxu0  ;;  %5079 = vbcast.lane.b32.xlu1 %v5073_v37, 264  ;;  %v10294_v37 = vld [vmem:[#allocation15_spill] sm:$0xff] }
 0x16e   : > { %v6507_v2 = vpop.f32.mrf.mxu1 }
 0x16f   : > { %v9375_v39 = vadd.f32 %v1714_v18, %v1290_v34  ;;  %v2087_v28 = vadd.f32 %v6507_v2, %v8983_v12  ;;  %v6542_v33 = vpop.f32.mrf.mxu0  ;;  %v10293_v12 = vld [vmem:[#allocation11_spill] sm:$0xff] }
 0x170   : > { %v1958_v49 = vpop.f32.mrf.mxu1  ;;  %5086 = vbcast.lane.b32.xlu0 %v5084_v58, 256 }
 0x171   : > { %v9378_v42 = vadd.f32 %v6541_v53, %v2087_v28  ;;  %v2085_v24 = vadd.f32 %v1958_v49, %v8990_v26  ;;  %v2687_v31 = vpop.f32.mrf.mxu0  ;;  %5090 = vbcast.lane.b32.xlu1 %v5084_v58, 264  ;;  %v10297_v28 = vld [vmem:[#allocation23_spill] sm:$0xff] }
 0x172   : > { %v6508_v4 = vpop.f32.mrf.mxu1 }
 0x173   : > { %v9381_v52 = vadd.f32 %v2684_v47, %v2085_v24  ;;  %v2088_v6 = vadd.f32 %v6508_v4, %v10292_v57  ;;  %v6545_v9 = vpop.f32.mrf.mxu0 }
 0x174   : > { %v1961_v7 = vpop.f32.mrf.mxu1  ;;  %5097 = vbcast.lane.b32.xlu0 %v9225_v55, 256 }
 0x175   : > { %v9385_v8 = vadd.f32 %v6542_v33, %v2088_v6  ;;  %v2086_v59 = vadd.f32 %v1961_v7, %v10293_v12  ;;  %v2700_v11 = vpop.f32.mrf.mxu0  ;;  %5101 = vbcast.lane.b32.xlu1 %v9225_v55, 264  ;;  %v10296_v55 = vld [vmem:[#allocation13_spill] sm:$0xff]  ;;  %v5139_v6 = vrot.slane %v9247_v51, %v10248_v32  ;;  %v5150_v32 = vrot.slane %v9247_v51, %v10252_v27 }
 0x176   : > { %v6511_v25 = vpop.f32.mrf.mxu1 }
 0x177   : > { %v9389_v26 = vadd.f32 %v2687_v31, %v2086_v59  ;;  %v2091_v54 = vadd.f32 %v6511_v25, %v10294_v37  ;;  %v6546_v50 = vpop.f32.mrf.mxu0 }
 0x178   : > { %v1974_v18 = vpop.f32.mrf.mxu1  ;;  %5108 = vbcast.lane.b32.xlu0 %v9229_v17, 256  ;;  %v9415_v59 = vpop.permute.xlu0 %4875 }
 0x179   : > { %v9393_v61 = vadd.f32 %v6545_v9, %v2091_v54  ;;  %v2089_v0 = vadd.f32 %v1974_v18, %v10295_v44  ;;  %v2703_v53 = vpop.f32.mrf.mxu0  ;;  %5112 = vbcast.lane.b32.xlu1 %v9229_v17, 264  ;;  %v9420_v37 = vpop.permute.xlu1 %4886 }
 0x17a   : > { %v6512_v23 = vpop.f32.mrf.mxu1 }
 0x17b   : > { %v9397_v58 = vadd.f32 %v2700_v11, %v2089_v0  ;;  %v2092_v56 = vadd.f32 %v6512_v23, %v10296_v55  ;;  %v6549_v34 = vpop.f32.mrf.mxu0  ;;  %v10298_v0 = vld [vmem:[#allocation5_spill] sm:$0xff]  ;;  %v5161_v55 = vrot.slane %v9247_v51, %v10266_v1  ;;  %v5172_v1 = vrot.slane %v9247_v51, %v10270_v43 }
 0x17c   : > { %v1977_v47 = vpop.f32.mrf.mxu1  ;;  %5119 = vbcast.lane.b32.xlu0 %v9233_v40, 256 }
 0x17d   : > { %v9401_v2 = vadd.f32 %v6546_v50, %v2092_v56  ;;  %v2090_v33 = vadd.f32 %v1977_v47, %v10297_v28  ;;  %v2716_v49 = vpop.f32.mrf.mxu0  ;;  %5123 = vbcast.lane.b32.xlu1 %v9233_v40, 264  ;;  %v9432_v56 = vpop.permute.xlu0 %4879 }
 0x17e   : > { %v6515_v24 = vpop.f32.mrf.mxu1  ;;  %v9437_v28 = vpop.permute.xlu1 %4890 }
 0x17f   : > { %v9405_v31 = vadd.f32 %v2703_v53, %v2090_v33  ;;  %v2095_v17 = vadd.f32 %v6515_v24, %v9096_v3  ;;  %v6550_v4 = vpop.f32.mrf.mxu0  ;;  %v10300_v24 = vld [vmem:[#allocation25_spill] sm:$0xff] }
 0x180   : > { %v1990_v57 = vpop.f32.mrf.mxu1  ;;  %5130 = vbcast.lane.b32.xlu0 %v9237_v38, 256 }
 0x181   : > { %v9411_v9 = vadd.f32 %v6549_v34, %v2095_v17  ;;  %v2093_v7 = vadd.f32 %v1990_v57, %v9111_v62  ;;  %v2719_v12 = vpop.f32.mrf.mxu0  ;;  %5134 = vbcast.lane.b32.xlu1 %v9237_v38, 264  ;;  %v10299_v34 = vld [vmem:[#allocation24_spill] sm:$0xff] }
 0x182   : > { %v6516_v40 = vpop.f32.mrf.mxu1 }
 0x183   : > { %v9417_v11 = vadd.f32 %v2716_v49, %v2093_v7  ;;  %v2096_v3 = vadd.f32 %v6516_v40, %v9126_v19  ;;  %v6553_v25 = vpop.f32.mrf.mxu0  ;;  %v10302_v7 = vld [vmem:[#allocation19_spill] sm:$0xff] }
 0x184   : > { %v1993_v54 = vpop.f32.mrf.mxu1  ;;  %5141 = vbcast.lane.b32.xlu0 %v5139_v6, 256 }
 0x185   : > { %v9424_v50 = vadd.f32 %v6550_v4, %v2096_v3  ;;  %v2094_v62 = vadd.f32 %v1993_v54, %v9141_v14  ;;  %v2732_v38 = vpop.f32.mrf.mxu0  ;;  %5145 = vbcast.lane.b32.xlu1 %v5139_v6, 264 }
 0x186   : > { %v6519_v18 = vpop.f32.mrf.mxu1 }
 0x187   : > { %v9427_v44 = vadd.f32 %v2719_v12, %v2094_v62  ;;  %v2099_v53 = vadd.f32 %v6519_v18, %v10298_v0  ;;  %v6554_v19 = vpop.f32.mrf.mxu0 }
 0x188   : > { %v2006_v23 = vpop.f32.mrf.mxu1  ;;  %5152 = vbcast.lane.b32.xlu0 %v5150_v32, 256 }
 0x189   : > { %v9434_v27 = vadd.f32 %v6553_v25, %v2099_v53  ;;  %v2097_v47 = vadd.f32 %v2006_v23, %v10299_v34  ;;  %v2735_v14 = vpop.f32.mrf.mxu0  ;;  %5156 = vbcast.lane.b32.xlu1 %v5150_v32, 264  ;;  %v9447_v25 = vpop.permute.xlu0 %4897 }
 0x18a   : > { %v6520_v33 = vpop.f32.mrf.mxu1 }
 0x18b   : > { %v9439_v49 = vadd.f32 %v2732_v38, %v2097_v47  ;;  %v2100_v17 = vadd.f32 %v6520_v33, %v10300_v24  ;;  %v6557_v4 = vpop.f32.mrf.mxu0  ;;  %v9452_v38 = vpop.permute.xlu1 %4901 }
 0x18c   : > { %v2009_v57 = vpop.f32.mrf.mxu1  ;;  %5163 = vbcast.lane.b32.xlu0 %v5161_v55, 256 }
 0x18d   : > { %v9444_v6 = vadd.f32 %v6554_v19, %v2100_v17  ;;  %v2098_v12 = vadd.f32 %v2009_v57, %v10302_v7  ;;  %v2748_v40 = vpop.f32.mrf.mxu0  ;;  %5167 = vbcast.lane.b32.xlu1 %v5161_v55, 264 }
 0x18e   : > { %v6523_v3 = vpop.f32.mrf.mxu1 }
 0x18f   : > { %10301 = vst [vmem:[#allocation22_spill] sm:$0xff] %v9444_v6  ;;  %v9449_v54 = vadd.f32 %v2735_v14, %v2098_v12  ;;  %v2103_v32 = vadd.f32 %v6523_v3, %v9239_v48  ;;  %v6558_v62 = vpop.f32.mrf.mxu0  ;;  %v9461_v48 = vpop.permute.xlu0 %4908 }
 0x190   : > { %v2022_v18 = vpop.f32.mrf.mxu1  ;;  %5174 = vbcast.lane.b32.xlu0 %v5172_v1, 256 }
 0x191   : > { %10303 = vst [vmem:[#allocation28_spill] sm:$0xff] %v9449_v54  ;;  %v9454_v0 = vadd.f32 %v6557_v4, %v2103_v32  ;;  %v2101_v43 = vadd.f32 %v2022_v18, %v9259_v46  ;;  %v2751_v51 = vpop.f32.mrf.mxu0  ;;  %5178 = vbcast.lane.b32.xlu1 %v5172_v1, 264  ;;  %v9467_v46 = vpop.permute.xlu1 %4912 }
 0x192   : > { %v6524_v53 = vpop.f32.mrf.mxu1 }
 0x193   : > { %10304 = vst [vmem:[#allocation30_spill] sm:$0xff] %v9454_v0  ;;  %v9457_v19 = vadd.f32 %v2748_v40, %v2101_v43  ;;  %v2104_v23 = vadd.f32 %v6524_v53, %v9286_v22  ;;  %v6561_v55 = vpop.f32.mrf.mxu0 }
 0x194   : > { %v2025_v34 = vpop.f32.mrf.mxu1  ;;  %5185 = vbcast.lane.b32.xlu0 %v9253_v60, 256 }
 0x195   : > { %10305 = vst [vmem:[#allocation14_spill] sm:$0xff] %v9457_v19  ;;  %v9463_v47 = vadd.f32 %v6558_v62, %v2104_v23  ;;  %v2102_v14 = vadd.f32 %v2025_v34, %v9309_v20  ;;  %v2764_v33 = vpop.f32.mrf.mxu0  ;;  %5189 = vbcast.lane.b32.xlu1 %v9253_v60, 264  ;;  %v9477_v60 = vpop.permute.xlu0 %4919 }
 0x196   : > { %v6527_v24 = vpop.f32.mrf.mxu1  ;;  %10309 = vst [vmem:[#allocation6_spill] sm:$0xff] %v9477_v60 }
 0x197   : > { %10306 = vst [vmem:[#allocation20_spill] sm:$0xff] %v9463_v47  ;;  %v9469_v17 = vadd.f32 %v2751_v51, %v2102_v14  ;;  %v2107_v22 = vadd.f32 %v6527_v24, %v9317_v21  ;;  %v6562_v4 = vpop.f32.mrf.mxu0  ;;  %v9482_v21 = vpop.permute.xlu1 %4923 }
 0x198   : > { %v2038_v57 = vpop.f32.mrf.mxu1  ;;  %5196 = vbcast.lane.b32.xlu0 %v9257_v16, 256  ;;  %10311 = vst [vmem:[#allocation10_spill] sm:$0xff] %v9482_v21 }
 0x199   : > { %10307 = vst [vmem:[#allocation7_spill] sm:$0xff] %v9469_v17  ;;  %v9473_v1 = vadd.f32 %v6561_v55, %v2107_v22  ;;  %v2105_v7 = vadd.f32 %v2038_v57, %v9320_v36  ;;  %v2767_v12 = vpop.f32.mrf.mxu0  ;;  %5200 = vbcast.lane.b32.xlu1 %v9257_v16, 264  ;;  %v10314_v55 = vld [vmem:[#allocation27_spill] sm:$0xff]  ;;  %v9493_v34 = vpop.permute.xlu0 %4930 }
 0x19a   : > { %v6528_v20 = vpop.f32.mrf.mxu1  ;;  %10315 = vst [vmem:[#allocation12_spill] sm:$0xff] %v9493_v34 }
 0x19b   : > { %10308 = vst [vmem:[#allocation31_spill] sm:$0xff] %v9473_v1  ;;  %v9479_v40 = vadd.f32 %v2764_v33, %v2105_v7  ;;  %v2108_v3 = vadd.f32 %v6528_v20, %v9331_v63  ;;  %v6565_v32 = vpop.f32.mrf.mxu0 }
 0x19c   : > { %v2041_v62 = vpop.f32.mrf.mxu1  ;;  %5207 = vbcast.lane.b32.xlu0 %v9268_v5, 256 }
 0x19d   : > { %10310 = vst [vmem:[#allocation8_spill] sm:$0xff] %v9479_v40  ;;  %v9485_v18 = vadd.f32 %v6562_v4, %v2108_v3  ;;  %v2106_v36 = vadd.f32 %v2041_v62, %v9338_v45  ;;  %v2780_v43 = vpop.f32.mrf.mxu0  ;;  %5211 = vbcast.lane.b32.xlu1 %v9268_v5, 264  ;;  %v9499_v45 = vpop.permute.xlu1 %4934 }
 0x19e   : > { %v6531_v16 = vpop.f32.mrf.mxu1  ;;  %10317 = vst [vmem:[#allocation26_spill] sm:$0xff] %v9499_v45 }
 0x19f   : > { %10312 = vst [vmem:[#allocation16_spill] sm:$0xff] %v9485_v18  ;;  %v9489_v51 = vadd.f32 %v2767_v12, %v2106_v36  ;;  %v2111_v53 = vadd.f32 %v6531_v16, %v9346_v15  ;;  %v6566_v23 = vpop.f32.mrf.mxu0 }
 0x1a0   : > { %v2054_v63 = vpop.f32.mrf.mxu1  ;;  %5218 = vbcast.lane.b32.xlu0 %v10314_v55, 256 }
 0x1a1   : > { %10313 = vst [vmem:[#allocation18_spill] sm:$0xff] %v9489_v51  ;;  %v9495_v14 = vadd.f32 %v6565_v32, %v2111_v53  ;;  %v2109_v33 = vadd.f32 %v2054_v63, %v9349_v41  ;;  %v2783_v24 = vpop.f32.mrf.mxu0  ;;  %5222 = vbcast.lane.b32.xlu1 %v10314_v55, 264  ;;  %v9507_v32 = vpop.permute.xlu0 %4941 }
 0x1a2   : > { %v6532_v5 = vpop.f32.mrf.mxu1  ;;  %10320 = vst [vmem:[#allocation33_spill] sm:$0xff] %v9507_v32  ;;  %v9512_v16 = vpop.permute.xlu1 %4945 }
 0x1a3   : > { %10316 = vst [vmem:[#allocation21_spill] sm:$0xff] %v9495_v14  ;;  %v9501_v22 = vadd.f32 %v2780_v43, %v2109_v33  ;;  %v2112_v15 = vadd.f32 %v6532_v5, %v9355_v10  ;;  %v6569_v4 = vpop.f32.mrf.mxu0  ;;  %10322 = vst [vmem:[#allocation35_spill] sm:$0xff] %v9512_v16 }
 0x1a4   : > { %v2057_v57 = vpop.f32.mrf.mxu1 }
 0x1a5   : > { %10318 = vst [vmem:[#allocation29_spill] sm:$0xff] %v9501_v22  ;;  %v9504_v7 = vadd.f32 %v6566_v23, %v2112_v15  ;;  %v2110_v12 = vadd.f32 %v2057_v57, %v9359_v29  ;;  %v2796_v20 = vpop.f32.mrf.mxu0  ;;  %v9522_v5 = vpop.permute.xlu0 %4952 }
 0x1a6   : > { %v6535_v3 = vpop.f32.mrf.mxu1  ;;  %10325 = vst [vmem:[#allocation11_spill] sm:$0xff] %v9522_v5 }
 0x1a7   : > { %10319 = vst [vmem:[#allocation32_spill] sm:$0xff] %v9504_v7  ;;  %v9509_v41 = vadd.f32 %v2783_v24, %v2110_v12  ;;  %v2115_v62 = vadd.f32 %v6535_v3, %v9364_v13  ;;  %v6570_v36 = vpop.f32.mrf.mxu0 }
 0x1a8   : > { %v2070_v43 = vpop.f32.mrf.mxu1 }
 0x1a9   : > { %10321 = vst [vmem:[#allocation34_spill] sm:$0xff] %v9509_v41  ;;  %v9514_v53 = vadd.f32 %v6569_v4, %v2115_v62  ;;  %v2113_v10 = vadd.f32 %v2070_v43, %v9367_v35  ;;  %v2799_v23 = vpop.f32.mrf.mxu0  ;;  %v9529_v4 = vpop.permute.xlu1 %4956 }
 0x1aa   : > { %v6536_v63 = vpop.f32.mrf.mxu1  ;;  %10327 = vst [vmem:[#allocation17_spill] sm:$0xff] %v9529_v4 }
 0x1ab   : > { %10323 = vst [vmem:[#allocation36_spill] sm:$0xff] %v9514_v53  ;;  %v9517_v55 = vadd.f32 %v2796_v20, %v2113_v10  ;;  %v2116_v29 = vadd.f32 %v6536_v63, %v9372_v30  ;;  %v9520_v33 = vpop.f32.mrf.mxu0 }
 0x1ac   : > { %v2073_v24 = vpop.f32.mrf.mxu1 }
 0x1ad   : > { %10324 = vst [vmem:[#allocation9_spill] sm:$0xff] %v9517_v55  ;;  %v9524_v13 = vadd.f32 %v6570_v36, %v2116_v29  ;;  %v2114_v15 = vadd.f32 %v2073_v24, %v9375_v39  ;;  %v9527_v57 = vpop.f32.mrf.mxu0  ;;  %v9543_v36 = vpop.permute.xlu0 %4963 }
 0x1ae   : > { %v9531_v35 = vpop.f32.mrf.mxu1  ;;  %10329 = vst [vmem:[#allocation23_spill] sm:$0xff] %v9543_v36  ;;  %v9547_v39 = vpop.permute.xlu1 %4967 }
 0x1af   : > { %10326 = vst [vmem:[#allocation15_spill] sm:$0xff] %v9524_v13  ;;  %v9533_v12 = vadd.f32 %v2799_v23, %v2114_v15  ;;  %v9535_v20 = vpop.f32.mrf.mxu0  ;;  %10330 = vst [vmem:[#allocation5_spill] sm:$0xff] %v9547_v39 }
 0x1b0   : > { %v9537_v30 = vpop.f32.mrf.mxu1 }
 0x1b1   : > { %10328 = vst [vmem:[#allocation13_spill] sm:$0xff] %v9533_v12  ;;  %v9539_v3 = vpop.f32.mrf.mxu0  ;;  %v9559_v15 = vpop.permute.xlu0 %4974 }
 0x1b2   : > { %v9541_v62 = vpop.f32.mrf.mxu1  ;;  %10331 = vst [vmem:[#allocation24_spill] sm:$0xff] %v9559_v15  ;;  %v9563_v13 = vpop.permute.xlu1 %4978 }
 0x1b3   : > { %v9545_v43 = vpop.f32.mrf.mxu0  ;;  %10332 = vst [vmem:[#allocation25_spill] sm:$0xff] %v9563_v13 }
 0x1b4   : > { %v9549_v10 = vpop.f32.mrf.mxu1 }
 0x1b5   : > { %v9551_v63 = vpop.f32.mrf.mxu0 }
 0x1b6   : > { %v9553_v23 = vpop.f32.mrf.mxu1 }
 0x1b7   : > { %v9555_v29 = vpop.f32.mrf.mxu0 }
 0x1b8   : > { %v9557_v24 = vpop.f32.mrf.mxu1 }
 0x1b9   : > { %v9561_v12 = vpop.f32.mrf.mxu0 }
 0x1ba   : > { %v9565_v55 = vpop.f32.mrf.mxu1 }
 0x1bb   : > { %v9567_v53 = vpop.f32.mrf.mxu0 }
 0x1bc   : > { %v9569_v41 = vpop.f32.mrf.mxu1 }
 0x1bd   : > { %v9571_v7 = vpop.f32.mrf.mxu0  ;;  %v9575_v39 = vpop.permute.xlu0 %4985 }
 0x1be   : > { %v9573_v22 = vpop.f32.mrf.mxu1  ;;  %10333 = vst [vmem:[#allocation19_spill] sm:$0xff] %v9575_v39  ;;  %v9579_v51 = vpop.permute.xlu1 %4989 }
 0x1bf   : > { %v9577_v14 = vpop.f32.mrf.mxu0  ;;  %10334 = vst [vmem:[#allocation27_spill] sm:$0xff] %v9579_v51 }
 0x1c0   : > { %v9581_v36 = vpop.f32.mrf.mxu1 }
 0x1c1   : > { %v9583_v15 = vpop.f32.mrf.mxu0  ;;  %v9587_v18 = vpop.permute.xlu0 %4996 }
 0x1c2   : > { %v9585_v13 = vpop.f32.mrf.mxu1  ;;  %10335 = vst [vmem:[#allocation37_spill] sm:$0xff] %v9587_v18  ;;  %v9591_v16 = vpop.permute.xlu1 %5000 }
 0x1c3   : > { %v9589_v40 = vpop.f32.mrf.mxu0  ;;  %10337 = vst [vmem:[#allocation39_spill] sm:$0xff] %v9591_v16 }
 0x1c4   : > { %10336 = vst [vmem:[#allocation38_spill] sm:$0xff] %v9589_v40  ;;  %v9593_v4 = vpop.f32.mrf.mxu1 }
 0x1c5   : > { %v9595_v1 = vpop.f32.mrf.mxu0  ;;  %v9599_v17 = vpop.permute.xlu0 %5007 }
 0x1c6   : > { %10338 = vst [vmem:[#allocation40_spill] sm:$0xff] %v9595_v1  ;;  %v9597_v39 = vpop.f32.mrf.mxu1  ;;  %10339 = vst [vmem:[#allocation41_spill] sm:$0xff] %v9599_v17  ;;  %v9603_v32 = vpop.permute.xlu1 %5011 }
 0x1c7   : > { %v9601_v51 = vpop.f32.mrf.mxu0  ;;  %10341 = vst [vmem:[#allocation43_spill] sm:$0xff] %v9603_v32 }
 0x1c8   : > { %10340 = vst [vmem:[#allocation42_spill] sm:$0xff] %v9601_v51  ;;  %v9605_v47 = vpop.f32.mrf.mxu1 }
 0x1c9   : > { %10342 = vst [vmem:[#allocation44_spill] sm:$0xff] %v9605_v47  ;;  %v9607_v5 = vpop.f32.mrf.mxu0 }
 0x1ca   : > { %10343 = vst [vmem:[#allocation45_spill] sm:$0xff] %v9607_v5  ;;  %v9609_v18 = vpop.f32.mrf.mxu1  ;;  %v9611_v19 = vpop.permute.xlu0 %5018 }
 0x1cb   : > { %10344 = vst [vmem:[#allocation46_spill] sm:$0xff] %v9609_v18  ;;  %10345 = vst [vmem:[#allocation47_spill] sm:$0xff] %v9611_v19  ;;  %v9613_v16 = vpop.f32.mrf.mxu0  ;;  %v9615_v21 = vpop.permute.xlu1 %5022 }
 0x1cc   : > { %10346 = vst [vmem:[#allocation48_spill] sm:$0xff] %v9613_v16  ;;  %10347 = vst [vmem:[#allocation49_spill] sm:$0xff] %v9615_v21  ;;  %v9617_v45 = vpop.f32.mrf.mxu1 }
 0x1cd   : > { %10348 = vst [vmem:[#allocation50_spill] sm:$0xff] %v9617_v45  ;;  %v9619_v0 = vpop.f32.mrf.mxu0 }
 0x1ce   : > { %10349 = vst [vmem:[#allocation51_spill] sm:$0xff] %v9619_v0  ;;  %v9621_v17 = vpop.f32.mrf.mxu1  ;;  %v9623_v51 = vpop.permute.xlu0 %5029 }
 0x1cf   : > { %10350 = vst [vmem:[#allocation52_spill] sm:$0xff] %v9621_v17  ;;  %10351 = vst [vmem:[#allocation53_spill] sm:$0xff] %v9623_v51  ;;  %v9625_v32 = vpop.f32.mrf.mxu0  ;;  %v9627_v54 = vpop.permute.xlu1 %5033 }
 0x1d0   : > { %10352 = vst [vmem:[#allocation54_spill] sm:$0xff] %v9625_v32  ;;  %10353 = vst [vmem:[#allocation55_spill] sm:$0xff] %v9627_v54  ;;  %v9629_v5 = vpop.f32.mrf.mxu1 }
 0x1d1   : > { %10354 = vst [vmem:[#allocation56_spill] sm:$0xff] %v9629_v5  ;;  %v9631_v1 = vpop.f32.mrf.mxu0 }
 0x1d2   : > { %10355 = vst [vmem:[#allocation57_spill] sm:$0xff] %v9631_v1  ;;  %v9633_v19 = vpop.f32.mrf.mxu1  ;;  %v9635_v16 = vpop.permute.xlu0 %5040 }
 0x1d3   : > { %10356 = vst [vmem:[#allocation58_spill] sm:$0xff] %v9633_v19  ;;  %10357 = vst [vmem:[#allocation59_spill] sm:$0xff] %v9635_v16  ;;  %v9637_v21 = vpop.f32.mrf.mxu0  ;;  %v9639_v45 = vpop.permute.xlu1 %5044 }
 0x1d4   : > { %10358 = vst [vmem:[#allocation60_spill] sm:$0xff] %v9637_v21  ;;  %10359 = vst [vmem:[#allocation61_spill] sm:$0xff] %v9639_v45  ;;  %v9641_v0 = vpop.f32.mrf.mxu1 }
 0x1d5   : > { %10360 = vst [vmem:[#allocation62_spill] sm:$0xff] %v9641_v0  ;;  %v9643_v17 = vpop.f32.mrf.mxu0 }
 0x1d6   : > { %10361 = vst [vmem:[#allocation63_spill] sm:$0xff] %v9643_v17  ;;  %v9645_v51 = vpop.f32.mrf.mxu1  ;;  %v9647_v32 = vpop.permute.xlu0 %5053 }
 0x1d7   : > { %10362 = vst [vmem:[#allocation64_spill] sm:$0xff] %v9645_v51  ;;  %v9649_v54 = vpop.f32.mrf.mxu0  ;;  %v9651_v5 = vpop.permute.xlu1 %5057 }
 0x1d8   : > { %10363 = vst [vmem:[#allocation65_spill] sm:$0xff] %v9649_v54  ;;  %v9653_v1 = vpop.f32.mrf.mxu1 }
 0x1d9   : > { %10364 = vst [vmem:[#allocation66_spill] sm:$0xff] %v9653_v1  ;;  %v9655_v19 = vpop.f32.mrf.mxu0 }
 0x1da   : > { %10365 = vst [vmem:[#allocation67_spill] sm:$0xff] %v9655_v19  ;;  %v9657_v16 = vpop.f32.mrf.mxu1  ;;  %v9659_v21 = vpop.permute.xlu0 %5064 }
 0x1db   : > { %10366 = vst [vmem:[#allocation68_spill] sm:$0xff] %v9657_v16  ;;  %v9661_v45 = vpop.f32.mrf.mxu0  ;;  %v9663_v0 = vpop.permute.xlu1 %5068 }
 0x1dc   : > { %10367 = vst [vmem:[#allocation69_spill] sm:$0xff] %v9661_v45  ;;  %v9665_v17 = vpop.f32.mrf.mxu1 }
 0x1dd   : > { %10368 = vst [vmem:[#allocation70_spill] sm:$0xff] %v9665_v17  ;;  %v9667_v51 = vpop.f32.mrf.mxu0 }
 0x1de   : > { %10369 = vst [vmem:[#allocation71_spill] sm:$0xff] %v9667_v51  ;;  %v9669_v60 = vpop.f32.mrf.mxu1  ;;  %v9673_v34 = vpop.permute.xlu0 %5075 }
 0x1df   : > { %10370 = vst [vmem:[#allocation72_spill] sm:$0xff] %v9669_v60  ;;  %v9671_v54 = vpop.f32.mrf.mxu0  ;;  %v9679_v16 = vpop.permute.xlu1 %5079 }
 0x1e0   : > { %10371 = vst [vmem:[#allocation73_spill] sm:$0xff] %v9671_v54  ;;  %v9675_v1 = vpop.f32.mrf.mxu1  ;;  %10374 = vst [vmem:[#allocation76_spill] sm:$0xff] %v9679_v16 }
 0x1e1   : > { %10372 = vst [vmem:[#allocation74_spill] sm:$0xff] %v9675_v1  ;;  %v9677_v19 = vpop.f32.mrf.mxu0 }
 0x1e2   : > { %10373 = vst [vmem:[#allocation75_spill] sm:$0xff] %v9677_v19  ;;  %v9681_v18 = vpop.f32.mrf.mxu1  ;;  %v9689_v51 = vpop.permute.xlu0 %5086  ;;  %v3283_v19 = vadd.f32 %v9531_v35, %v9378_v42 }
 0x1e3   : > { %10375 = vst [vmem:[#allocation77_spill] sm:$0xff] %v9681_v18  ;;  %v9683_v45 = vpop.f32.mrf.mxu0  ;;  %v9695_v40 = vpop.permute.xlu1 %5090 }
 0x1e4   : > { %10376 = vst [vmem:[#allocation78_spill] sm:$0xff] %v9683_v45  ;;  %v9685_v6 = vpop.f32.mrf.mxu1  ;;  %10381 = vst [vmem:[#allocation83_spill] sm:$0xff] %v9695_v40 }
 0x1e5   : > { %10377 = vst [vmem:[#allocation79_spill] sm:$0xff] %v9685_v6  ;;  %v9687_v17 = vpop.f32.mrf.mxu0 }
 0x1e6   : > { %10378 = vst [vmem:[#allocation80_spill] sm:$0xff] %v9687_v17  ;;  %v9691_v60 = vpop.f32.mrf.mxu1  ;;  %v3281_v17 = vadd.f32 %v9537_v30, %v9381_v52  ;;  %v9707_v16 = vpop.permute.xlu0 %5097  ;;  %v3282_v52 = vadd.f32 %v9549_v10, %v9389_v26  ;;  %v9729_v26 = vld [vmem:[%s10059_s2] ss:$0 sm:$0xff] }
 0x1e7   : > { %10379 = vst [vmem:[#allocation81_spill] sm:$0xff] %v9691_v60  ;;  %v9693_v54 = vpop.f32.mrf.mxu0  ;;  %10385 = vst [vmem:[#allocation87_spill] sm:$0xff] %v9707_v16  ;;  %v9714_v42 = vpop.permute.xlu1 %5101 }
 0x1e8   : > { %10380 = vst [vmem:[#allocation82_spill] sm:$0xff] %v9693_v54  ;;  %v9697_v1 = vpop.f32.mrf.mxu1  ;;  %v3642_v54 = vadd.f32 %v9520_v33, %v3283_v19 }
 0x1e9   : > { %10382 = vst [vmem:[#allocation84_spill] sm:$0xff] %v9697_v1  ;;  %v9701_v18 = vpop.f32.mrf.mxu0  ;;  %v3284_v1 = vadd.f32 %v9541_v62, %v9385_v8  ;;  %v3287_v62 = vadd.f32 %v9553_v23, %v9393_v61  ;;  %v3288_v61 = vadd.f32 %v9565_v55, %v9401_v2 }
 0x1ea   : > { %10383 = vst [vmem:[#allocation85_spill] sm:$0xff] %v9701_v18  ;;  %v9703_v45 = vpop.f32.mrf.mxu1  ;;  %v3640_v18 = vadd.f32 %v9527_v57, %v3281_v17  ;;  %v9720_v8 = vpop.permute.xlu0 %5108  ;;  %v3285_v17 = vadd.f32 %v9557_v24, %v9397_v58 }
 0x1eb   : > { %10384 = vst [vmem:[#allocation86_spill] sm:$0xff] %v9703_v45  ;;  %v6677_v6 = vpop.f32.mrf.mxu0 }
 0x1ec   : > { %v9709_v60 = vpop.f32.mrf.mxu1 }
 0x1ed   : > { %10386 = vst [vmem:[#allocation88_spill] sm:$0xff] %v9709_v60  ;;  %v4709_v40 = vpop.f32.mrf.mxu0  ;;  %v3643_v60 = vadd.f32 %v9535_v20, %v3284_v1  ;;  %v9734_v20 = vpop.permute.xlu1 %5112 }
 0x1ee   : > { %v6643_v35 = vpop.f32.mrf.mxu1 }
 0x1ef   : > { %v4368_v30 = vadd.f32 %v6643_v35, %v3642_v54  ;;  %v6678_v45 = vpop.f32.mrf.mxu0 }
 0x1f0   : > { %v4239_v16 = vpop.f32.mrf.mxu1 }
 0x1f1   : > { %v4838_v47 = vadd.f32 %v6677_v6, %v4368_v30  ;;  %v4366_v19 = vadd.f32 %v4239_v16, %v3640_v18  ;;  %v4712_v33 = vpop.f32.mrf.mxu0  ;;  %v3641_v6 = vadd.f32 %v9539_v3, %v3282_v52  ;;  %v9751_v30 = vpop.permute.xlu0 %5119 }
 0x1f2   : > { %v6644_v54 = vpop.f32.mrf.mxu1 }
 0x1f3   : > { %v5226_v1 = vmul.f32 %v9420_v37, %v4838_v47  ;;  %v4836_v18 = vadd.f32 %v4709_v40, %v4366_v19  ;;  %v4369_v16 = vadd.f32 %v6644_v54, %v3643_v60  ;;  %v6681_v57 = vpop.f32.mrf.mxu0  ;;  %v3646_v37 = vadd.f32 %v9545_v43, %v3287_v62 }
 0x1f4   : > { %v4242_v58 = vpop.f32.mrf.mxu1  ;;  %v3644_v47 = vadd.f32 %v9551_v63, %v3285_v17  ;;  %v3286_v60 = vadd.f32 %v9569_v41, %v9405_v31  ;;  %v3647_v19 = vadd.f32 %v9555_v29, %v3288_v61  ;;  %v3291_v43 = vadd.f32 %v9573_v22, %v9411_v9 }
 0x1f5   : > { %v5224_v10 = vmul.f32 %v9415_v59, %v4836_v18  ;;  %v4839_v23 = vadd.f32 %v6678_v45, %v4369_v16  ;;  %v4367_v24 = vadd.f32 %v4242_v58, %v3641_v6  ;;  %v5265_v3 = vadd.f32 %v9729_v26, %v5226_v1  ;;  %v4725_v35 = vpop.f32.mrf.mxu0 }
 0x1f6   : > { %v6647_v40 = vpop.f32.mrf.mxu1  ;;  %v3645_v54 = vadd.f32 %v9561_v12, %v3286_v60  ;;  %v3289_v29 = vadd.f32 %v9581_v36, %v9417_v11  ;;  %v3650_v12 = vadd.f32 %v9567_v53, %v3291_v43  ;;  %v3292_v11 = vadd.f32 %v9585_v13, %v9424_v50 }
 0x1f7   : > { %v5263_v2 = vadd.f32 %v9729_v26, %v5224_v10  ;;  %v5227_v59 = vmul.f32 %v9437_v28, %v4839_v23  ;;  %v4837_v55 = vadd.f32 %v4712_v33, %v4367_v24  ;;  %v5297_v52 = vmul.f32 %v5265_v3, %v9659_v21  ;;  %v6682_v45 = vpop.f32.mrf.mxu0  ;;  %v9758_v21 = vpop.permute.xlu1 %5123 }
 0x1f8   : > { %v4372_v63 = vadd.f32 %v6647_v40, %v3646_v37  ;;  %v4255_v31 = vpop.f32.mrf.mxu1  ;;  %v3648_v53 = vadd.f32 %v9571_v7, %v3289_v29  ;;  %v3290_v50 = vadd.f32 %v9593_v4, %v9427_v44  ;;  %v3295_v7 = vadd.f32 %v9597_v39, %v9434_v27  ;;  %v10387_v27 = vld [vmem:[#allocation44_spill] sm:$0xff]  ;;  %v10390_v29 = vld [vmem:[#allocation22_spill] sm:$0xff] }
 0x1f9   : > { %v5295_v41 = vmul.f32 %v5263_v2, %v9647_v32  ;;  %v5225_v62 = vmul.f32 %v9432_v56, %v4837_v55  ;;  %v6217_v28 = vpack.c.bf16 %v5297_v52, %v5297_v52  ;;  %v4370_v33 = vadd.f32 %v4255_v31, %v3644_v47  ;;  %v4728_v17 = vpop.f32.mrf.mxu0 }
 0x1fa   : > { %v4842_v6 = vadd.f32 %v6681_v57, %v4372_v63  ;;  %v5266_v9 = vadd.f32 %v9729_v26, %v5227_v59  ;;  %v6648_v22 = vpop.f32.mrf.mxu1  ;;  %v3651_v2 = vadd.f32 %v9577_v14, %v3292_v11  ;;  %v3293_v39 = vadd.f32 %v10387_v27, %v9439_v49  ;;  %v10392_v49 = vld [vmem:[#allocation12_spill] sm:$0xff] }
 0x1fb   : > { %v6215_v1 = vpack.c.bf16 %v5295_v41, %v5295_v41  ;;  %v5264_v18 = vadd.f32 %v9729_v26, %v5225_v62  ;;  %5458 = vst.msk [vmem:[%s9766_s12 + $0x8] sm:$0xf] %vm5455_vm8, %v6217_v28  ;;  %v4840_v56 = vadd.f32 %v4725_v35, %v4370_v33  ;;  %v4373_v32 = vadd.f32 %v6648_v22, %v3647_v19  ;;  %v6685_v16 = vpop.f32.mrf.mxu0  ;;  %v9779_v35 = vpop.permute.xlu0 %5130  ;;  %v10388_v62 = vld [vmem:[#allocation83_spill] sm:$0xff] }
 0x1fc   : > { %v5230_v36 = vmul.f32 %v9461_v48, %v4842_v6  ;;  %v5298_v57 = vmul.f32 %v5266_v9, %v9663_v0  ;;  %v4258_v61 = vpop.f32.mrf.mxu1  ;;  %v9787_v40 = vpop.permute.xlu1 %5134  ;;  %v3649_v19 = vadd.f32 %v9583_v15, %v3290_v50  ;;  %v10391_v15 = vld [vmem:[#allocation46_spill] sm:$0xff] }
 0x1fd   : > { %5456 = vst.msk [vmem:[%s9766_s12] sm:$0xf] %vm5455_vm8, %v6215_v1  ;;  %v5296_v58 = vmul.f32 %v5264_v18, %v9651_v5  ;;  %v5228_v10 = vmul.f32 %v9447_v25, %v4840_v56  ;;  %v4843_v23 = vadd.f32 %v6682_v45, %v4373_v32  ;;  %v4371_v24 = vadd.f32 %v4258_v61, %v3645_v54  ;;  %v4741_v3 = vpop.f32.mrf.mxu0  ;;  %v10393_v18 = vld [vmem:[#allocation76_spill] sm:$0xff]  ;;  %v10394_v32 = vld [vmem:[#allocation6_spill] sm:$0xff] }
 0x1fe   : > { %v6218_v0 = vpack.c.bf16 %v5298_v57, %v5298_v57  ;;  %v5269_v48 = vadd.f32 %v9729_v26, %v5230_v36  ;;  %v6651_v13 = vpop.f32.mrf.mxu1  ;;  %v3296_v6 = vadd.f32 %v10391_v15, %v10390_v29  ;;  %v10395_v61 = vld [vmem:[#allocation40_spill] sm:$0xff]  ;;  %v10407_v29 = vld [vmem:[#allocation11_spill] sm:$0xff] }
 0x1ff   : > { %v6216_v37 = vpack.c.bf16 %v5296_v58, %v5296_v58  ;;  %v5267_v5 = vadd.f32 %v9729_v26, %v5228_v10  ;;  %v5231_v25 = vmul.f32 %v9467_v46, %v4843_v23  ;;  %v4841_v47 = vadd.f32 %v4728_v17, %v4371_v24  ;;  %v6686_v60 = vpop.f32.mrf.mxu0  ;;  %v9805_v33 = vpop.permute.xlu0 %5141  ;;  %v10389_v17 = vld [vmem:[#allocation38_spill] sm:$0xff]  ;;  %v10396_v10 = vld [vmem:[#allocation28_spill] sm:$0xff] }
 0x200   : > { %5459 = vst.msk [vmem:[%s9766_s12 + $0xc] sm:$0xf] %vm5455_vm8, %v6218_v0  ;;  %v5301_v44 = vmul.f32 %v5269_v48, %v9689_v51  ;;  %v4376_v4 = vadd.f32 %v6651_v13, %v3650_v12  ;;  %v4271_v59 = vpop.f32.mrf.mxu1  ;;  %v3654_v54 = vadd.f32 %v10389_v17, %v3295_v7  ;;  %v9817_v57 = vpop.permute.xlu1 %5145  ;;  %v3652_v58 = vadd.f32 %v10395_v61, %v3293_v39  ;;  %v10397_v23 = vld [vmem:[#allocation50_spill] sm:$0xff]  ;;  %v10400_v7 = vld [vmem:[#allocation52_spill] sm:$0xff]  ;;  %v10411_v61 = vld [vmem:[#allocation33_spill] sm:$0xff] }
 0x201   : > { %5457 = vst.msk [vmem:[%s9766_s12 + $0x4] sm:$0xf] %vm5455_vm8, %v6216_v37  ;;  %v5299_v55 = vmul.f32 %v5267_v5, %v9673_v34  ;;  %v5229_v46 = vmul.f32 %v9452_v38, %v4841_v47  ;;  %v4374_v52 = vadd.f32 %v4271_v59, %v3648_v53  ;;  %v5270_v45 = vadd.f32 %v9729_v26, %v5231_v25  ;;  %v4744_v14 = vpop.f32.mrf.mxu0  ;;  %v10398_v25 = vld [vmem:[#allocation42_spill] sm:$0xff] }
 0x202   : > { %v6221_v51 = vpack.c.bf16 %v5301_v44, %v5301_v44  ;;  %v4846_v43 = vadd.f32 %v6685_v16, %v4376_v4  ;;  %v6652_v63 = vpop.f32.mrf.mxu1  ;;  %v3294_v24 = vadd.f32 %v10397_v23, %v10396_v10  ;;  %v3655_v47 = vadd.f32 %v10398_v25, %v3296_v6  ;;  %v10401_v4 = vld [vmem:[#allocation26_spill] sm:$0xff] }
 0x203   : > { %v6219_v31 = vpack.c.bf16 %v5299_v55, %v5299_v55  ;;  %v5268_v41 = vadd.f32 %v9729_v26, %v5229_v46  ;;  %v4844_v34 = vadd.f32 %v4741_v3, %v4374_v52  ;;  %v5302_v38 = vmul.f32 %v5270_v45, %v10388_v62  ;;  %v6689_v28 = vpop.f32.mrf.mxu0  ;;  %v10402_v46 = vld [vmem:[#allocation87_spill] sm:$0xff]  ;;  %v10403_v45 = vld [vmem:[#allocation10_spill] sm:$0xff] }
 0x204   : > { %5462 = vst.msk [vmem:[%s9766_s12 + $0x18] sm:$0xf] %vm5455_vm8, %v6221_v51  ;;  %v5234_v9 = vmul.f32 %v10392_v49, %v4846_v43  ;;  %v4377_v22 = vadd.f32 %v6652_v63, %v3651_v2  ;;  %v4274_v1 = vpop.f32.mrf.mxu1  ;;  %v10399_v2 = vld [vmem:[#allocation30_spill] sm:$0xff]  ;;  %v9835_v51 = vpop.permute.xlu0 %5152  ;;  %v10404_v43 = vld [vmem:[#allocation45_spill] sm:$0xff] }
 0x205   : > { %5460 = vst.msk [vmem:[%s9766_s12 + $0x10] sm:$0xf] %vm5455_vm8, %v6219_v31  ;;  %v5300_v56 = vmul.f32 %v5268_v41, %v10393_v18  ;;  %v5232_v16 = vmul.f32 %v10394_v32, %v4844_v34  ;;  %v6222_v12 = vpack.c.bf16 %v5302_v38, %v5302_v38  ;;  %v4375_v11 = vadd.f32 %v4274_v1, %v3649_v19  ;;  %v4757_v36 = vpop.f32.mrf.mxu0  ;;  %v10405_v31 = vld [vmem:[#allocation14_spill] sm:$0xff]  ;;  %v10406_v41 = vld [vmem:[#allocation56_spill] sm:$0xff]  ;;  %v9843_v49 = vpop.permute.xlu1 %5156 }
 0x206   : > { %v4847_v3 = vadd.f32 %v6686_v60, %v4377_v22  ;;  %v5273_v53 = vadd.f32 %v9729_v26, %v5234_v9  ;;  %v6655_v50 = vpop.f32.mrf.mxu1  ;;  %v3299_v44 = vadd.f32 %v10400_v7, %v10399_v2  ;;  %v3653_v63 = vadd.f32 %v10404_v43, %v3294_v24  ;;  %v10408_v9 = vld [vmem:[#allocation48_spill] sm:$0xff]  ;;  %v10410_v18 = vld [vmem:[#allocation58_spill] sm:$0xff]  ;;  %v10412_v24 = vld [vmem:[#allocation51_spill] sm:$0xff] }
 0x207   : > { %v6220_v0 = vpack.c.bf16 %v5300_v56, %v5300_v56  ;;  %5463 = vst.msk [vmem:[%s9766_s12 + $0x1c] sm:$0xf] %vm5455_vm8, %v6222_v12  ;;  %v5271_v48 = vadd.f32 %v9729_v26, %v5232_v16  ;;  %v4845_v13 = vadd.f32 %v4744_v14, %v4375_v11  ;;  %v4380_v37 = vadd.f32 %v6655_v50, %v3654_v54  ;;  %v6690_v5 = vpop.f32.mrf.mxu0  ;;  %v10409_v1 = vld [vmem:[#allocation20_spill] sm:$0xff]  ;;  %v10414_v50 = vld [vmem:[#allocation62_spill] sm:$0xff] }
 0x208   : > { %v5235_v59 = vmul.f32 %v10401_v4, %v4847_v3  ;;  %v5305_v60 = vmul.f32 %v5273_v53, %v9720_v8  ;;  %v4287_v55 = vpop.f32.mrf.mxu1  ;;  %v3297_v34 = vadd.f32 %v10406_v41, %v10405_v31  ;;  %v3658_v22 = vadd.f32 %v10408_v9, %v3299_v44  ;;  %v10413_v53 = vld [vmem:[#allocation7_spill] sm:$0xff]  ;;  %v9861_v7 = vpop.permute.xlu0 %5163  ;;  %v10415_v44 = vld [vmem:[#allocation54_spill] sm:$0xff]  ;;  %v10420_v31 = vld [vmem:[#allocation57_spill] sm:$0xff] }
 0x209   : > { %5461 = vst.msk [vmem:[%s9766_s12 + $0x14] sm:$0xf] %vm5455_vm8, %v6220_v0  ;;  %v5303_v52 = vmul.f32 %v5271_v48, %v10402_v46  ;;  %v5233_v19 = vmul.f32 %v10403_v45, %v4845_v13  ;;  %v4850_v27 = vadd.f32 %v6689_v28, %v4380_v37  ;;  %v4378_v14 = vadd.f32 %v4287_v55, %v3652_v58  ;;  %v4760_v39 = vpop.f32.mrf.mxu0  ;;  %v10418_v46 = vld [vmem:[#allocation17_spill] sm:$0xff] }
 0x20a   : > { %v6225_v8 = vpack.c.bf16 %v5305_v60, %v5305_v60  ;;  %v5274_v62 = vadd.f32 %v9729_v26, %v5235_v59  ;;  %v6656_v38 = vpop.f32.mrf.mxu1  ;;  %v3300_v56 = vadd.f32 %v10410_v18, %v10409_v1  ;;  %v3656_v3 = vadd.f32 %v10412_v24, %v3297_v34  ;;  %v10416_v59 = vld [vmem:[#allocation31_spill] sm:$0xff]  ;;  %v10417_v60 = vld [vmem:[#allocation64_spill] sm:$0xff] }
 0x20b   : > { %v6223_v17 = vpack.c.bf16 %v5303_v52, %v5303_v52  ;;  %v5272_v54 = vadd.f32 %v9729_v26, %v5233_v19  ;;  %v5238_v28 = vmul.f32 %v10407_v29, %v4850_v27  ;;  %v4848_v15 = vadd.f32 %v4757_v36, %v4378_v14  ;;  %v10421_v34 = vld [vmem:[#allocation8_spill] sm:$0xff] }
 0x20c   : > { %v6693_v6 = vpop.f32.mrf.mxu0  ;;  %5466 = vst.msk [vmem:[%s9766_s12 + $0x28] sm:$0xf] %vm5455_vm8, %v6225_v8  ;;  %v5306_v32 = vmul.f32 %v5274_v62, %v9734_v20  ;;  %v4381_v16 = vadd.f32 %v6656_v38, %v3655_v47  ;;  %v4290_v12 = vpop.f32.mrf.mxu1  ;;  %v3298_v0 = vadd.f32 %v10414_v50, %v10413_v53  ;;  %v3659_v4 = vadd.f32 %v10415_v44, %v3300_v56  ;;  %v10422_v8 = vld [vmem:[#allocation66_spill] sm:$0xff]  ;;  %v10424_v18 = vld [vmem:[#allocation16_spill] sm:$0xff]  ;;  %v10428_v53 = vld [vmem:[#allocation63_spill] sm:$0xff] }
 0x20d   : > { %5464 = vst.msk [vmem:[%s9766_s12 + $0x20] sm:$0xf] %vm5455_vm8, %v6223_v17  ;;  %v5304_v11 = vmul.f32 %v5272_v54, %v9714_v42  ;;  %v5236_v36 = vmul.f32 %v10411_v61, %v4848_v15  ;;  %v4379_v58 = vadd.f32 %v4290_v12, %v3653_v63  ;;  %v5277_v10 = vadd.f32 %v9729_v26, %v5238_v28  ;;  %v9873_v63 = vpop.permute.xlu1 %5167  ;;  %v10425_v56 = vld [vmem:[#allocation68_spill] sm:$0xff] }
 0x20e   : > { %v4773_v23 = vpop.f32.mrf.mxu0  ;;  %v6226_v20 = vpack.c.bf16 %v5306_v32, %v5306_v32  ;;  %v4851_v48 = vadd.f32 %v6690_v5, %v4381_v16  ;;  %v6659_v13 = vpop.f32.mrf.mxu1  ;;  %v3303_v55 = vadd.f32 %v10417_v60, %v10416_v59  ;;  %v3657_v41 = vadd.f32 %v10420_v31, %v3298_v0  ;;  %v10426_v16 = vld [vmem:[#allocation24_spill] sm:$0xff]  ;;  %v10429_v0 = vld [vmem:[#allocation18_spill] sm:$0xff]  ;;  %v10432_v59 = vld [vmem:[#allocation65_spill] sm:$0xff] }
 0x20f   : > { %v6224_v37 = vpack.c.bf16 %v5304_v11, %v5304_v11  ;;  %v5275_v25 = vadd.f32 %v9729_v26, %v5236_v36  ;;  %v4849_v42 = vadd.f32 %v4760_v39, %v4379_v58  ;;  %v5309_v47 = vmul.f32 %v5277_v10, %v9779_v35  ;;  %v10419_v35 = vld [vmem:[#allocation35_spill] sm:$0xff] }
 0x210   : > { %v6694_v2 = vpop.f32.mrf.mxu0  ;;  %5467 = vst.msk [vmem:[%s9766_s12 + $0x2c] sm:$0xf] %vm5455_vm8, %v6226_v20  ;;  %v5239_v52 = vmul.f32 %v10418_v46, %v4851_v48  ;;  %v4384_v5 = vadd.f32 %v6659_v13, %v3658_v22  ;;  %v4303_v45 = vpop.f32.mrf.mxu1  ;;  %v3301_v62 = vadd.f32 %v10422_v8, %v10421_v34  ;;  %v10423_v22 = vld [vmem:[#allocation60_spill] sm:$0xff]  ;;  %v3304_v32 = vadd.f32 %v10425_v56, %v10424_v18  ;;  %v10427_v36 = vld [vmem:[#allocation23_spill] sm:$0xff]  ;;  %v10430_v20 = vld [vmem:[#allocation70_spill] sm:$0xff] }
 0x211   : > { %5465 = vst.msk [vmem:[%s9766_s12 + $0x24] sm:$0xf] %vm5455_vm8, %v6224_v37  ;;  %v5307_v19 = vmul.f32 %v5275_v25, %v9751_v30  ;;  %v5237_v27 = vmul.f32 %v10419_v35, %v4849_v42  ;;  %v6229_v14 = vpack.c.bf16 %v5309_v47, %v5309_v47  ;;  %v4382_v39 = vadd.f32 %v4303_v45, %v3656_v3  ;;  %v5175_v3 = vpop.permute.xlu0 %5174  ;;  %v10431_v42 = vld [vmem:[#allocation25_spill] sm:$0xff]  ;;  %v10434_v46 = vld [vmem:[#allocation72_spill] sm:$0xff] }
 0x212   : > { %v4776_v43 = vpop.f32.mrf.mxu0  ;;  %v4854_v38 = vadd.f32 %v6693_v6, %v4384_v5  ;;  %v5278_v17 = vadd.f32 %v9729_v26, %v5239_v52  ;;  %v6660_v54 = vpop.f32.mrf.mxu1  ;;  %v3662_v1 = vadd.f32 %v10423_v22, %v3303_v55  ;;  %v3660_v50 = vadd.f32 %v10428_v53, %v3301_v62  ;;  %v10433_v55 = vld [vmem:[#allocation21_spill] sm:$0xff]  ;;  %v10438_v62 = vld [vmem:[#allocation74_spill] sm:$0xff]  ;;  %v10440_v56 = vld [vmem:[#allocation32_spill] sm:$0xff] }
 0x213   : > { %v6227_v29 = vpack.c.bf16 %v5307_v19, %v5307_v19  ;;  %v5276_v30 = vadd.f32 %v9729_v26, %v5237_v27  ;;  %5470 = vst.msk [vmem:[%s9766_s12 + $0x38] sm:$0xf] %vm5455_vm8, %v6229_v14  ;;  %v4852_v28 = vadd.f32 %v4773_v23, %v4382_v39  ;;  %v4385_v15 = vadd.f32 %v6660_v54, %v3659_v4  ;;  %v9897_v4 = vpop.permute.xlu1 %5178  ;;  %v10435_v27 = vld [vmem:[#allocation5_spill] sm:$0xff]  ;;  %v10444_v53 = vld [vmem:[#allocation71_spill] sm:$0xff] }
 0x214   : > { %v6697_v9 = vpop.f32.mrf.mxu0  ;;  %v5242_v12 = vmul.f32 %v10426_v16, %v4854_v38  ;;  %v5310_v6 = vmul.f32 %v5278_v17, %v9787_v40  ;;  %v4306_v11 = vpop.f32.mrf.mxu1  ;;  %v3302_v48 = vadd.f32 %v10430_v20, %v10429_v0  ;;  %v3663_v60 = vadd.f32 %v10432_v59, %v3304_v32  ;;  %v10437_v8 = vld [vmem:[#allocation29_spill] sm:$0xff]  ;;  %v10445_v0 = vld [vmem:[#allocation34_spill] sm:$0xff]  ;;  %v10446_v20 = vld [vmem:[#allocation79_spill] sm:$0xff] }
 0x215   : > { %5468 = vst.msk [vmem:[%s9766_s12 + $0x30] sm:$0xf] %vm5455_vm8, %v6227_v29  ;;  %v5308_v61 = vmul.f32 %v5276_v30, %v9758_v21  ;;  %v5240_v58 = vmul.f32 %v10427_v36, %v4852_v28  ;;  %v4855_v10 = vadd.f32 %v6694_v2, %v4385_v15  ;;  %v4383_v23 = vadd.f32 %v4306_v11, %v3657_v41  ;;  %v10436_v41 = vld [vmem:[#allocation67_spill] sm:$0xff]  ;;  %v9915_v22 = vpop.permute.xlu0 %5185  ;;  %v10441_v32 = vld [vmem:[#allocation77_spill] sm:$0xff] }
 0x216   : > { %v4789_v24 = vpop.f32.mrf.mxu0  ;;  %v6230_v13 = vpack.c.bf16 %v5310_v6, %v5310_v6  ;;  %v5281_v40 = vadd.f32 %v9729_v26, %v5242_v12  ;;  %v6663_v37 = vpop.f32.mrf.mxu1  ;;  %v3307_v52 = vadd.f32 %v10434_v46, %v10433_v55  ;;  %v3661_v34 = vadd.f32 %v10436_v41, %v3302_v48  ;;  %v10442_v12 = vld [vmem:[#allocation37_spill] sm:$0xff]  ;;  %v10452_v41 = vld [vmem:[#allocation75_spill] sm:$0xff] }
 0x217   : > { %v6228_v25 = vpack.c.bf16 %v5308_v61, %v5308_v61  ;;  %v5279_v21 = vadd.f32 %v9729_v26, %v5240_v58  ;;  %v5243_v47 = vmul.f32 %v10431_v42, %v4855_v10  ;;  %v4853_v2 = vadd.f32 %v4776_v43, %v4383_v23  ;;  %v10449_v55 = vld [vmem:[#allocation81_spill] sm:$0xff] }
 0x218   : > { %v6698_v44 = vpop.f32.mrf.mxu0  ;;  %5471 = vst.msk [vmem:[%s9766_s12 + $0x3c] sm:$0xf] %vm5455_vm8, %v6230_v13  ;;  %v5313_v5 = vmul.f32 %v5281_v40, %v9835_v51  ;;  %v4388_v45 = vadd.f32 %v6663_v37, %v3662_v1  ;;  %v4319_v19 = vpop.f32.mrf.mxu1  ;;  %v3305_v38 = vadd.f32 %v10438_v62, %v10437_v8  ;;  %v10439_v1 = vld [vmem:[#allocation69_spill] sm:$0xff]  ;;  %v3308_v16 = vadd.f32 %v10441_v32, %v10440_v56  ;;  %v10454_v62 = vld [vmem:[#allocation84_spill] sm:$0xff]  ;;  %v10457_v56 = vld [vmem:[#allocation15_spill] sm:$0xff] }
 0x219   : > { %5469 = vst.msk [vmem:[%s9766_s12 + $0x34] sm:$0xf] %vm5455_vm8, %v6228_v25  ;;  %v5311_v35 = vmul.f32 %v5279_v21, %v9805_v33  ;;  %v5241_v14 = vmul.f32 %v10435_v27, %v4853_v2  ;;  %v4386_v39 = vadd.f32 %v4319_v19, %v3660_v50  ;;  %v5282_v43 = vadd.f32 %v9729_v26, %v5243_v47  ;;  %v10447_v2 = vld [vmem:[#allocation73_spill] sm:$0xff]  ;;  %v10458_v32 = vld [vmem:[#allocation86_spill] sm:$0xff] }
 0x21a   : > { %v4792_v31 = vpop.f32.mrf.mxu0  ;;  %v6233_v51 = vpack.c.bf16 %v5313_v5, %v5313_v5  ;;  %v4858_v17 = vadd.f32 %v6697_v9, %v4388_v45  ;;  %v6664_v54 = vpop.f32.mrf.mxu1  ;;  %v3666_v18 = vadd.f32 %v10439_v1, %v3307_v52  ;;  %v3664_v50 = vadd.f32 %v10444_v53, %v3305_v38  ;;  %v10450_v52 = vld [vmem:[#allocation39_spill] sm:$0xff]  ;;  %v10453_v8 = vld [vmem:[#allocation9_spill] sm:$0xff]  ;;  %v10456_v1 = vld [vmem:[#allocation78_spill] sm:$0xff] }
 0x21b   : > { %v6231_v29 = vpack.c.bf16 %v5311_v35, %v5311_v35  ;;  %v5280_v30 = vadd.f32 %v9729_v26, %v5241_v14  ;;  %v4856_v33 = vadd.f32 %v4789_v24, %v4386_v39  ;;  %v5314_v28 = vmul.f32 %v5282_v43, %v9843_v49  ;;  %v10443_v49 = vld [vmem:[#allocation19_spill] sm:$0xff]  ;;  %v9927_v24 = vpop.permute.xlu1 %5189  ;;  %v10461_v53 = vld [vmem:[#allocation13_spill] sm:$0xff] }
 0x21c   : > { %v6701_v15 = vpop.f32.mrf.mxu0  ;;  %5474 = vst.msk [vmem:[%s9766_s12 + $0x48] sm:$0xf] %vm5455_vm8, %v6233_v51  ;;  %v5246_v6 = vmul.f32 %v10442_v12, %v4858_v17  ;;  %v4389_v9 = vadd.f32 %v6664_v54, %v3663_v60  ;;  %v4322_v11 = vpop.f32.mrf.mxu1  ;;  %v3306_v48 = vadd.f32 %v10446_v20, %v10445_v0  ;;  %v3667_v59 = vadd.f32 %v10447_v2, %v3308_v16  ;;  %v10448_v60 = vld [vmem:[#allocation36_spill] sm:$0xff]  ;;  %v10451_v35 = vld [vmem:[#allocation27_spill] sm:$0xff]  ;;  %v10464_v2 = vld [vmem:[#allocation49_spill] sm:$0xff] }
 0x21d   : > { %5472 = vst.msk [vmem:[%s9766_s12 + $0x40] sm:$0xf] %vm5455_vm8, %v6231_v29  ;;  %v5312_v61 = vmul.f32 %v5280_v30, %v9817_v57  ;;  %v5244_v36 = vmul.f32 %v10443_v49, %v4856_v33  ;;  %v6234_v58 = vpack.c.bf16 %v5314_v28, %v5314_v28  ;;  %v4387_v10 = vadd.f32 %v4322_v11, %v3661_v34  ;;  %v10455_v29 = vld [vmem:[#allocation47_spill] sm:$0xff] }
 0x21e   : > { %v4805_v23 = vpop.f32.mrf.mxu0  ;;  %v4859_v13 = vadd.f32 %v6698_v44, %v4389_v9  ;;  %v5285_v40 = vadd.f32 %v9729_v26, %v5246_v6  ;;  %v6667_v37 = vpop.f32.mrf.mxu1  ;;  %v3311_v46 = vadd.f32 %v10449_v55, %v10448_v60  ;;  %v3665_v34 = vadd.f32 %v10452_v41, %v3306_v48 }
 0x21f   : > { %v6232_v25 = vpack.c.bf16 %v5312_v61, %v5312_v61  ;;  %5475 = vst.msk [vmem:[%s9766_s12 + $0x4c] sm:$0xf] %vm5455_vm8, %v6234_v58  ;;  %v5283_v57 = vadd.f32 %v9729_v26, %v5244_v36  ;;  %v4857_v21 = vadd.f32 %v4792_v31, %v4387_v10  ;;  %v4392_v42 = vadd.f32 %v6667_v37, %v3666_v18  ;;  %v5197_v31 = vpop.permute.xlu0 %5196  ;;  %v10459_v61 = vld [vmem:[#allocation41_spill] sm:$0xff]  ;;  %v10460_v10 = vld [vmem:[#allocation80_spill] sm:$0xff] }
 0x220   : > { %v6702_v47 = vpop.f32.mrf.mxu0  ;;  %v5247_v5 = vmul.f32 %v10450_v52, %v4859_v13  ;;  %v5317_v45 = vmul.f32 %v5285_v40, %v5175_v3  ;;  %v4335_v44 = vpop.f32.mrf.mxu1  ;;  %v3309_v38 = vadd.f32 %v10454_v62, %v10453_v8  ;;  %v3670_v18 = vadd.f32 %v10456_v1, %v3311_v46  ;;  %v10465_v46 = vld [vmem:[#allocation43_spill] sm:$0xff] }
 0x221   : > { %5473 = vst.msk [vmem:[%s9766_s12 + $0x44] sm:$0xf] %vm5455_vm8, %v6232_v25  ;;  %v5315_v19 = vmul.f32 %v5283_v57, %v9861_v7  ;;  %v5245_v27 = vmul.f32 %v10451_v35, %v4857_v21  ;;  %v4862_v14 = vadd.f32 %v6701_v15, %v4392_v42  ;;  %v4390_v39 = vadd.f32 %v4335_v44, %v3664_v50  ;;  %v5201_v15 = vpop.permute.xlu1 %5200  ;;  %v10462_v50 = vld [vmem:[#allocation88_spill] sm:$0xff]  ;;  %v10463_v21 = vld [vmem:[#allocation82_spill] sm:$0xff]  ;;  %v10467_v8 = vld [vmem:[#allocation59_spill] sm:$0xff] }
 0x222   : > { %v4808_v43 = vpop.f32.mrf.mxu0  ;;  %v6237_v51 = vpack.c.bf16 %v5317_v45, %v5317_v45  ;;  %v5286_v3 = vadd.f32 %v9729_v26, %v5247_v5  ;;  %v6668_v17 = vpop.f32.mrf.mxu1  ;;  %v3312_v16 = vadd.f32 %v10458_v32, %v10457_v56  ;;  %v3310_v0 = vadd.f32 %v10462_v50, %v10461_v53  ;;  %v10469_v56 = vld [vmem:[#allocation61_spill] sm:$0xff] }
 0x223   : > { %v6235_v54 = vpack.c.bf16 %v5315_v19, %v5315_v19  ;;  %v5284_v7 = vadd.f32 %v9729_v26, %v5245_v27  ;;  %v5250_v30 = vmul.f32 %v10455_v29, %v4862_v14  ;;  %v4860_v33 = vadd.f32 %v4805_v23, %v4390_v39  ;;  %v5208_v57 = vpop.permute.xlu0 %5207  ;;  %v10466_v19 = vld [vmem:[#allocation85_spill] sm:$0xff] }
 0x224   : > { %v6705_v28 = vpop.f32.mrf.mxu0  ;;  %5478 = vst.msk [vmem:[%s9766_s12 + $0x58] sm:$0xf] %vm5455_vm8, %v6237_v51  ;;  %v5318_v12 = vmul.f32 %v5286_v3, %v9897_v4  ;;  %v4393_v6 = vadd.f32 %v6668_v17, %v3667_v59  ;;  %v4338_v9 = vpop.f32.mrf.mxu1  ;;  %v3668_v23 = vadd.f32 %v10460_v10, %v3309_v38  ;;  %v3671_v42 = vadd.f32 %v10463_v21, %v3312_v16  ;;  %v10468_v17 = vld [vmem:[#allocation53_spill] sm:$0xff] }
 0x225   : > { %5476 = vst.msk [vmem:[%s9766_s12 + $0x50] sm:$0xf] %vm5455_vm8, %v6235_v54  ;;  %v5316_v11 = vmul.f32 %v5284_v7, %v9873_v63  ;;  %v5248_v49 = vmul.f32 %v10459_v61, %v4860_v33  ;;  %v4391_v36 = vadd.f32 %v4338_v9, %v3665_v34  ;;  %v5289_v58 = vadd.f32 %v9729_v26, %v5250_v30  ;;  %v5212_v44 = vpop.permute.xlu1 %5211  ;;  %v10470_v9 = vld [vmem:[#allocation55_spill] sm:$0xff] }
 0x226   : > { %v6238_v20 = vpack.c.bf16 %v5318_v12, %v5318_v12  ;;  %v4863_v4 = vadd.f32 %v6702_v47, %v4393_v6  ;;  %v6671_v48 = vpop.f32.mrf.mxu1  ;;  %v4821_v13 = vpop.f32.mrf.mxu0  ;;  %v3669_v35 = vadd.f32 %v10466_v19, %v3310_v0 }
 0x227   : > { %v6236_v40 = vpack.c.bf16 %v5316_v11, %v5316_v11  ;;  %v5287_v37 = vadd.f32 %v9729_v26, %v5248_v49  ;;  %v4861_v63 = vadd.f32 %v4808_v43, %v4391_v36  ;;  %v5321_v25 = vmul.f32 %v5289_v58, %v5197_v31  ;;  %v5219_v30 = vpop.permute.xlu0 %5218 }
 0x228   : > { %5479 = vst.msk [vmem:[%s9766_s12 + $0x5c] sm:$0xf] %vm5455_vm8, %v6238_v20  ;;  %v5251_v59 = vmul.f32 %v10464_v2, %v4863_v4  ;;  %v4396_v60 = vadd.f32 %v6671_v48, %v3670_v18  ;;  %v4351_v55 = vpop.f32.mrf.mxu1  ;;  %v6706_v43 = vpop.f32.mrf.mxu0 }
 0x229   : > { %5477 = vst.msk [vmem:[%s9766_s12 + $0x54] sm:$0xf] %vm5455_vm8, %v6236_v40  ;;  %v5319_v47 = vmul.f32 %v5287_v37, %v9915_v22  ;;  %v5249_v52 = vmul.f32 %v10465_v46, %v4861_v63  ;;  %v6241_v5 = vpack.c.bf16 %v5321_v25, %v5321_v25  ;;  %v4394_v45 = vadd.f32 %v4351_v55, %v3668_v23  ;;  %v5223_v12 = vpop.permute.xlu1 %5222 }
 0x22a   : > { %v4866_v27 = vadd.f32 %v6705_v28, %v4396_v60  ;;  %v5290_v14 = vadd.f32 %v9729_v26, %v5251_v59  ;;  %v6672_v39 = vpop.f32.mrf.mxu1  ;;  %v4824_v28 = vpop.f32.mrf.mxu0 }
 0x22b   : > { %v6239_v31 = vpack.c.bf16 %v5319_v47, %v5319_v47  ;;  %v5288_v41 = vadd.f32 %v9729_v26, %v5249_v52  ;;  %5482 = vst.msk [vmem:[%s9766_s12 + $0x68] sm:$0xf] %vm5455_vm8, %v6241_v5  ;;  %v4864_v34 = vadd.f32 %v4821_v13, %v4394_v45  ;;  %v4397_v22 = vadd.f32 %v6672_v39, %v3671_v42 }
 0x22c   : > { %v5254_v62 = vmul.f32 %v10467_v8, %v4866_v27  ;;  %v5322_v38 = vmul.f32 %v5290_v14, %v5201_v15  ;;  %v4354_v51 = vpop.f32.mrf.mxu1 }
 0x22d   : > { %5480 = vst.msk [vmem:[%s9766_s12 + $0x60] sm:$0xf] %vm5455_vm8, %v6239_v31  ;;  %v5320_v3 = vmul.f32 %v5288_v41, %v9927_v24  ;;  %v5252_v54 = vmul.f32 %v10468_v17, %v4864_v34  ;;  %v4867_v7 = vadd.f32 %v6706_v43, %v4397_v22  ;;  %v4395_v29 = vadd.f32 %v4354_v51, %v3669_v35 }
 0x22e   : > { %v6242_v33 = vpack.c.bf16 %v5322_v38, %v5322_v38  ;;  %v5293_v1 = vadd.f32 %v9729_v26, %v5254_v62 }
 0x22f   : > { %v6240_v18 = vpack.c.bf16 %v5320_v3, %v5320_v3  ;;  %v5291_v15 = vadd.f32 %v9729_v26, %v5252_v54  ;;  %v5255_v32 = vmul.f32 %v10469_v56, %v4867_v7  ;;  %v4865_v16 = vadd.f32 %v4824_v28, %v4395_v29 }
 0x230   : > { %5483 = vst.msk [vmem:[%s9766_s12 + $0x6c] sm:$0xf] %vm5455_vm8, %v6242_v33  ;;  %v5325_v24 = vmul.f32 %v5293_v1, %v5219_v30 }
 0x231   : > { %5481 = vst.msk [vmem:[%s9766_s12 + $0x64] sm:$0xf] %vm5455_vm8, %v6240_v18  ;;  %v5323_v6 = vmul.f32 %v5291_v15, %v5208_v57  ;;  %v5253_v11 = vmul.f32 %v10470_v9, %v4865_v16  ;;  %v5294_v61 = vadd.f32 %v9729_v26, %v5255_v32 }
 0x232   : > { %v6245_v49 = vpack.c.bf16 %v5325_v24, %v5325_v24 }
 0x233   : > { %v6243_v36 = vpack.c.bf16 %v5323_v6, %v5323_v6  ;;  %v5292_v58 = vadd.f32 %v9729_v26, %v5253_v11  ;;  %v5326_v10 = vmul.f32 %v5294_v61, %v5223_v12 }
 0x234   : > { %5486 = vst.msk [vmem:[%s9766_s12 + $0x78] sm:$0xf] %vm5455_vm8, %v6245_v49 }
 0x235   : > { %5484 = vst.msk [vmem:[%s9766_s12 + $0x70] sm:$0xf] %vm5455_vm8, %v6243_v36  ;;  %v5324_v23 = vmul.f32 %v5292_v58, %v5212_v44  ;;  %v6246_v53 = vpack.c.bf16 %v5326_v10, %v5326_v10 }
 0x237   : > { %v6244_v26 = vpack.c.bf16 %v5324_v23, %v5324_v23  ;;  %5487 = vst.msk [vmem:[%s9766_s12 + $0x7c] sm:$0xf] %vm5455_vm8, %v6246_v53 }
 0x239   : > { %5485 = vst.msk [vmem:[%s9766_s12 + $0x74] sm:$0xf] %vm5455_vm8, %v6244_v26 }
 0x23a   : > { %6840 = shalt.err (!%p6837_p5)
}
 0x23b   : > { %s6841_s8 = scalar_lea.hbm %s10002_s24, 2048  ;;  %s6845_s9 = scalar_lea.hbm %s10062_s5, 4096 }
 0x23c   : > { %p6842_p6 = scmp.ne.s32.totalorder %s10002_s24, %s6841_s8  ;;  %p6846_p10 = scmp.lt.s32.totalorder %s10002_s24, %s10062_s5 }
 0x23d   : > { %p6847_p11 = scmp.lt.s32.totalorder %s6845_s9, %s6841_s8 }
 0x23e   : > { %p6843_p7 = pnand %p6842_p6, %p6978_p4 }
 0x23f   : > { %p6848_p12 = por %p6847_p11, %p6846_p10 }
 0x240   : > { %p6844_p9 = pneg %p6843_p7 }
 0x242   : > { %p6849_p13 = pnand %p6848_p12, %p6844_p9 }
 0x244   : > { %6852 = shalt.err (!%p6849_p13)
}
 0x245   : > { %s6906_s13 = smov 64   ;;  %s6907_s15 = smov 4  }
 0x246   : > { %6720 = dma.vmem_to_hbm [thread:$0]  (%p6978_p4), %s10004_s14, 2048, %s10002_s24, %s10012_s21, %s6906_s13, %s6906_s13, %s6907_s15  }
 0x247 PF: > { %p6726_p0 = scmp.ge.s32.totalorder %s6903_s23, 2  ;;  %s5518_s16 = sand.u32 1, %s6883_s18  }
 0x248   : > { %s5519_s25 = scalar_lea.sflag [#allocation3], %s5518_s16 }
 0x249   : > { %p6723_p1 = pnand %p6726_p0, %p6985_p8 }
 0x24b   : > { %p6724_p2 = pneg %p6723_p1 }
 0x24d   : > { %6878 = dma.done.wait (%p6724_p2), %s5519_s25, 2048  }
 0x24e   : > { %6880 = vsyncadd (%p6724_p2), %s5519_s25, 4294965248  ;;  %s18_s23 = sadd.s32 1, %s6903_s23   ;;  %s10471_s18 = smov %s6887_s19 }
 0x24f   : > { %p15_p3 = scmp.ge.s32.totalorder %s18_s23, 4   ;;  %s10472_s19 = smov %s6891_s20 }
 0x250   : > { %s10473_s20 = smov %s6991_s6  ;;  %s10474_s21 = smov %s6899_s22 }
 0x251   : > { %s10475_s22 = smov %s10477_s26  ;;  %17 = sbr.rel (!%p15_p3) target bundleno = 4 (0x4), region = 97 }
 0x256   :  { %5524 = vsyncpa [#allocation3], 1 }
 0x257   :  { %5526 = vsyncpa [#allocation3 + $0x1], 1 }

</bundles_post_ra>
